<compile_context>
chip_gen: v7x
topology: tpu7x:2x2x1
jax: 0.10.0
libtpu: 0.0.40
codegen_flags: <defaults>
</compile_context>

<pallas_src>
import functools

import jax
import jax.numpy as jnp
from jax.experimental import pallas as pl
from jax.experimental.pallas import tpu as pltpu

BN_EPS = 1e-5
VMEM_LIMIT_BYTES = 64 * 1024 * 1024  # explicit scoped-VMEM cap, safe on v5e/v6e/v7x


def _round_up(x, m):
    return ((x + m - 1) // m) * m


def _pick_bh(H, W, cin, cout):
    """Row-block size: multiple of 8, grown only while the double-buffered
    in+out blocks stay well under a few MB (fits v7x's 64 MiB VMEM)."""
    bh = 8
    while (bh * 4 <= H and bh < 64
           and 2 * (2 * bh) * W * (cin + cout) * 2 <= (4 << 20)):
        bh *= 2
    return bh


# ----------------------------------------------------------------------------
# Kernel: [optional fused BN+ReLU of the previous layer on the input window]
#         -> 3x3 conv via in-VMEM im2col (9 accumulated MXU dots, f32 acc)
#         -> bf16 z tile + per-tile BN partial sums (from the f32 accumulator)
# ----------------------------------------------------------------------------
def _conv_bn_stats_kernel(*refs, apply_bn, bh, H, W):
    if apply_bn:
        (scale_ref, shift_ref, w_ref, prev_ref, cur_ref, nxt_ref,
         z_ref, psum_ref, psq_ref) = refs
    else:
        (w_ref, prev_ref, cur_ref, nxt_ref,
         z_ref, psum_ref, psq_ref) = refs

    j = pl.program_id(1)
    cin = cur_ref.shape[-1]
    cout = z_ref.shape[-1]

    # Assemble the halo'd (bh+2, W, Cin) row window in VMEM (no HBM im2col).
    top = prev_ref[0]            # (1,  W, Cin)  row j*bh - 1   (clamped fetch)
    mid = cur_ref[0]             # (bh, W, Cin)  rows j*bh .. j*bh + bh - 1
    bot = nxt_ref[0]             # (1,  W, Cin)  row j*bh + bh  (clamped fetch)
    xw = jnp.concatenate([top, mid, bot], axis=0)            # (bh+2, W, Cin)

    if apply_bn:
        # Fused previous-layer BatchNorm + ReLU applied to the input window (f32).
        xw = jnp.maximum(
            xw.astype(jnp.float32) * scale_ref[0] + shift_ref[0], 0.0)

    # Zero rows outside the valid image: conv zero-padding rows and clamped halo
    # rows.  Mask AFTER the BN so relu(shift) never leaks into the padding.
    row = jax.lax.broadcasted_iota(jnp.int32, (bh + 2, 1, 1), 0)
    grow = j * bh - 1 + row
    xw = jnp.where((grow >= 0) & (grow < H), xw, 0.0).astype(jnp.bfloat16)

    # Zero column padding for the 3x3 conv (padding=1 along W).
    zcol = jnp.zeros((bh + 2, 1, cin), jnp.bfloat16)
    xw = jnp.concatenate([zcol, xw, zcol], axis=1)            # (bh+2, W+2, Cin)

    # 9-tap conv as 9 accumulated MXU matmuls: (bh*W, Cin) @ (Cin, Cout), f32 acc.
    acc = jnp.zeros((bh * W, cout), jnp.float32)
    for ky in range(3):
        for kx in range(3):
            tap = xw[ky:ky + bh, kx:kx + W, :].reshape(bh * W, cin)
            acc = acc + jnp.dot(tap, w_ref[ky, kx],
                                preferred_element_type=jnp.float32)
    acc = acc.reshape(bh, W, cout)

    # Mask rows beyond H (only the last row-block can have them) so the BN
    # statistics are exact.
    orow = jax.lax.broadcasted_iota(jnp.int32, (bh, 1, 1), 0)
    acc = jnp.where(j * bh + orow < H, acc, 0.0)

    z_ref[...] = acc.astype(z_ref.dtype).reshape(1, bh, W, cout)
    # BN partials taken from the f32 accumulator, BEFORE the bf16 cast.
    psum_ref[...] = jnp.sum(acc, axis=(0, 1)).reshape(1, 1, 1, cout)
    psq_ref[...] = jnp.sum(acc * acc, axis=(0, 1)).reshape(1, 1, 1, cout)


# ----------------------------------------------------------------------------
# Kernel: final BatchNorm (precomputed per-channel scale/shift) + ReLU
# ----------------------------------------------------------------------------
def _bn_relu_kernel(scale_ref, shift_ref, z_ref, y_ref):
    y_ref[...] = jnp.maximum(
        z_ref[...].astype(jnp.float32) * scale_ref[0] + shift_ref[0], 0.0)


# ----------------------------------------------------------------------------
# Wrappers
# ----------------------------------------------------------------------------
def _conv_bn_stats(x_c, w_hwio, scale_in, shift_in, *, H, bh, apply_bn):
    """x_c: (N, HB, W, Cin) bf16 canonical row-padded activation.
    Returns z (N, HB, W, Cout) bf16 plus global per-channel sum / sum-of-squares
    of the pre-BN conv output (valid positions only)."""
    n, hb, wsp, cin = x_c.shape
    cout = w_hwio.shape[-1]
    assert hb % bh == 0
    gh = hb // bh

    kern = functools.partial(_conv_bn_stats_kernel,
                             apply_bn=apply_bn, bh=bh, H=H, W=wsp)

    act_prev = pl.BlockSpec(
        (1, 1, wsp, cin), lambda b, j: (b, jnp.maximum(j * bh - 1, 0), 0, 0))
    act_cur = pl.BlockSpec((1, bh, wsp, cin), lambda b, j: (b, j, 0, 0))
    act_nxt = pl.BlockSpec(
        (1, 1, wsp, cin), lambda b, j: (b, jnp.minimum((j + 1) * bh, hb - 1), 0, 0))
    w_spec = pl.BlockSpec((3, 3, cin, cout), lambda b, j: (0, 0, 0, 0))
    vec_spec = pl.BlockSpec((1, cin), lambda b, j: (0, 0))

    if apply_bn:
        in_specs = [vec_spec, vec_spec, w_spec, act_prev, act_cur, act_nxt]
        args = [scale_in.reshape(1, cin).astype(jnp.float32),
                shift_in.reshape(1, cin).astype(jnp.float32),
                w_hwio.astype(jnp.bfloat16), x_c, x_c, x_c]
    else:
        in_specs = [w_spec, act_prev, act_cur, act_nxt]
        args = [w_hwio.astype(jnp.bfloat16), x_c, x_c, x_c]

    z, psum, psq = pl.pallas_call(
        kern,
        out_shape=(jax.ShapeDtypeStruct((n, hb, wsp, cout), jnp.bfloat16),
                   jax.ShapeDtypeStruct((n, gh, 1, cout), jnp.float32),
                   jax.ShapeDtypeStruct((n, gh, 1, cout), jnp.float32)),
        grid_spec=pltpu.PrefetchScalarGridSpec(
            num_scalar_prefetch=0,
            grid=(n, gh),
            in_specs=in_specs,
            out_specs=[pl.BlockSpec((1, bh, wsp, cout), lambda b, j: (b, j, 0, 0)),
                       pl.BlockSpec((1, 1, 1, cout), lambda b, j: (b, j, 0, 0)),
                       pl.BlockSpec((1, 1, 1, cout), lambda b, j: (b, j, 0, 0))]),
        compiler_params=pltpu.CompilerParams(
            dimension_semantics=("parallel", "parallel"),
            vmem_limit_bytes=VMEM_LIMIT_BYTES),
    )(*args)

    s = jnp.sum(psum, axis=(0, 1, 2))    # (Cout,)
    sq = jnp.sum(psq, axis=(0, 1, 2))    # (Cout,)
    return z, s, sq


def _scale_shift(s, sq, gamma, beta, count):
    """Training-mode BN: batch mean, biased variance.  f32 E[x^2]-E[x]^2
    (NOTE: can cancel for |mean| >> std at extreme production scales)."""
    mean = s / count
    var = jnp.maximum(sq / count - mean * mean, 0.0)
    scale = gamma.astype(jnp.float32) * jax.lax.rsqrt(var + BN_EPS)
    shift = beta.astype(jnp.float32) - mean * scale
    return scale, shift


def _bn_relu(z, scale, shift, *, bh):
    n, hb, wsp, c = z.shape
    gh = hb // bh
    return pl.pallas_call(
        _bn_relu_kernel,
        out_shape=jax.ShapeDtypeStruct((n, hb, wsp, c), jnp.float32),
        grid_spec=pltpu.PrefetchScalarGridSpec(
            num_scalar_prefetch=0,
            grid=(n, gh),
            in_specs=[pl.BlockSpec((1, c), lambda b, j: (0, 0)),
                      pl.BlockSpec((1, c), lambda b, j: (0, 0)),
                      pl.BlockSpec((1, bh, wsp, c), lambda b, j: (b, j, 0, 0))],
            out_specs=pl.BlockSpec((1, bh, wsp, c), lambda b, j: (b, j, 0, 0))),
        compiler_params=pltpu.CompilerParams(
            dimension_semantics=("parallel", "parallel"),
            vmem_limit_bytes=VMEM_LIMIT_BYTES),
    )(scale.reshape(1, c), shift.reshape(1, c), z)


# ----------------------------------------------------------------------------
# Glue: bilinear x2 upsample with align_corners=True (PyTorch nn.Upsample)
# ----------------------------------------------------------------------------
def upsample_bilinear_x2_align_corners(x):  # NHWC
    N, H, W, C = x.shape
    Ho, Wo = 2 * H, 2 * W

    def axis_idx(out_size, in_size):
        if in_size == 1:
            src = jnp.zeros((out_size,), jnp.float32)
        else:
            src = jnp.arange(out_size, dtype=jnp.float32) * (
                (in_size - 1) / (out_size - 1))
        i0 = jnp.clip(jnp.floor(src).astype(jnp.int32), 0, in_size - 1)
        i1 = jnp.clip(i0 + 1, 0, in_size - 1)
        frac = src - i0.astype(jnp.float32)
        return i0, i1, frac

    h0, h1, fh = axis_idx(Ho, H)
    w0, w1, fw = axis_idx(Wo, W)
    xh = (x[:, h0, :, :] * (1.0 - fh)[None, :, None, None]
          + x[:, h1, :, :] * fh[None, :, None, None])
    out = (xh[:, :, w0, :] * (1.0 - fw)[None, None, :, None]
           + xh[:, :, w1, :] * fw[None, None, :, None])
    return out


# ----------------------------------------------------------------------------
# Full `up` forward (NCHW in / NCHW out, like the PyTorch module)
# ----------------------------------------------------------------------------
@jax.jit
def up_forward(x1_nchw, x2_nchw, params):
    x1 = jnp.transpose(x1_nchw, (0, 2, 3, 1)).astype(jnp.float32)  # NHWC
    x2 = jnp.transpose(x2_nchw, (0, 2, 3, 1)).astype(jnp.float32)

    x1 = upsample_bilinear_x2_align_corners(x1)
    diffY = x2.shape[1] - x1.shape[1]
    diffX = x2.shape[2] - x1.shape[2]
    x1 = jnp.pad(x1, ((0, 0),
                      (diffY // 2, diffY - diffY // 2),
                      (diffX // 2, diffX - diffX // 2),
                      (0, 0)))
    x = jnp.concatenate([x2, x1], axis=-1)            # (N, H, W, Cin)

    n, H, W, cin = x.shape
    c1 = params["w1"].shape[-1]
    c2 = params["w2"].shape[-1]
    bh = _pick_bh(H, W, cin, max(c1, c2))
    hb = _round_up(H, bh)
    x_c = jnp.pad(x.astype(jnp.bfloat16),
                  ((0, 0), (0, hb - H), (0, 0), (0, 0)))  # canonical row-padded bf16

    count = n * H * W

    # Layer 1: conv (no bias; it cancels under training-mode BN) + BN partials.
    z1, s1, q1 = _conv_bn_stats(x_c, params["w1"], None, None,
                                H=H, bh=bh, apply_bn=False)
    sc1, sh1 = _scale_shift(s1, q1, params["g1"], params["be1"], count)

    # Layer 2: layer-1's BN+ReLU fused into the input window of layer-2's conv.
    z2, s2, q2 = _conv_bn_stats(z1, params["w2"], sc1, sh1,
                                H=H, bh=bh, apply_bn=True)
    sc2, sh2 = _scale_shift(s2, q2, params["g2"], params["be2"], count)

    y = _bn_relu(z2, sc2, sh2, bh=bh)                 # (N, HB, W, C2) f32
    return jnp.transpose(y[:, :H], (0, 3, 1, 2))      # back to NCHW


# ----------------------------------------------------------------------------
# Pure-JAX f32 reference (includes conv bias — it cancels under BN)
# ----------------------------------------------------------------------------
def _ref_conv_bn_relu(x, w, b, gamma, beta):
    y = jax.lax.conv_general_dilated(
        x, w, window_strides=(1, 1), padding=((1, 1), (1, 1)),
        dimension_numbers=("NHWC", "HWIO", "NHWC"))
    y = y + b
    mean = y.mean(axis=(0, 1, 2), keepdims=True)
    var = ((y - mean) ** 2).mean(axis=(0, 1, 2), keepdims=True)
    y = (y - mean) * jax.lax.rsqrt(var + BN_EPS) * gamma + beta
    return jnp.maximum(y, 0.0)


def _ref_up_forward(x1_nchw, x2_nchw, params):
    x1 = jnp.transpose(x1_nchw, (0, 2, 3, 1)).astype(jnp.float32)
    x2 = jnp.transpose(x2_nchw, (0, 2, 3, 1)).astype(jnp.float32)
    x1 = upsample_bilinear_x2_align_corners(x1)
    diffY = x2.shape[1] - x1.shape[1]
    diffX = x2.shape[2] - x1.shape[2]
    x1 = jnp.pad(x1, ((0, 0),
                      (diffY // 2, diffY - diffY // 2),
                      (diffX // 2, diffX - diffX // 2),
                      (0, 0)))
    x = jnp.concatenate([x2, x1], axis=-1)
    y = _ref_conv_bn_relu(x, params["w1"], params["b1"], params["g1"], params["be1"])
    y = _ref_conv_bn_relu(y, params["w2"], params["b2"], params["g2"], params["be2"])
    return jnp.transpose(y, (0, 3, 1, 2))


# ----------------------------------------------------------------------------
if __name__ == "__main__":
    # Small shapes: up(in_ch=8, out_ch=4, bilinear=True)
    #   x1: deeper feature (N, in_ch//2, 7, 8) -> upsampled to (14,16), padded
    #   x2: skip feature   (N, in_ch//2, 16, 16)
    N, C_half, out_ch = 2, 4, 4
    in_ch = 2 * C_half  # 8 channels after concat

    key = jax.random.PRNGKey(0)
    k_x1, k_x2, k_w1, k_b1, k_w2, k_b2 = jax.random.split(key, 6)

    x1 = jax.random.normal(k_x1, (N, C_half, 7, 8), jnp.float32)
    x2 = jax.random.normal(k_x2, (N, C_half, 16, 16), jnp.float32)

    def conv_init(kw, kb, cin, cout):
        fan_in = cin * 9
        w = jax.random.normal(kw, (3, 3, cin, cout), jnp.float32) / jnp.sqrt(fan_in)
        b = jax.random.uniform(kb, (cout,), jnp.float32,
                               -1.0 / jnp.sqrt(fan_in), 1.0 / jnp.sqrt(fan_in))
        return w, b

    w1, b1 = conv_init(k_w1, k_b1, in_ch, out_ch)
    w2, b2 = conv_init(k_w2, k_b2, out_ch, out_ch)
    params = {
        "w1": w1, "b1": b1, "g1": jnp.ones((out_ch,)), "be1": jnp.zeros((out_ch,)),
        "w2": w2, "b2": b2, "g2": jnp.ones((out_ch,)), "be2": jnp.zeros((out_ch,)),
    }

    out = up_forward(x1, x2, params)
    out = jax.block_until_ready(out)
    assert out.shape == (N, out_ch, 16, 16), out.shape

    ref = jax.block_until_ready(_ref_up_forward(x1, x2, params))
    # bf16 MXU operands + bf16 inter-layer activation vs the pure-f32 reference.
    max_err = float(jnp.max(jnp.abs(out - ref)))
    assert jnp.allclose(out, ref, atol=5e-2, rtol=5e-2), max_err

    print("KERNEL_OK")
</pallas_src>

<mosaic_0001>
module attributes {stable_mosaic.version = 11 : i64} {
  func.func @_conv_bn_stats_kernel(%arg0: i32, %arg1: i32, %arg2: memref<3x3x8x4xbf16, #tpu.memory_space<vmem>>, %arg3: memref<1x1x16x8xbf16, #tpu.memory_space<vmem>>, %arg4: memref<1x8x16x8xbf16, #tpu.memory_space<vmem>>, %arg5: memref<1x1x16x8xbf16, #tpu.memory_space<vmem>>, %arg6: memref<1x8x16x4xbf16, #tpu.memory_space<vmem>>, %arg7: memref<1x1x1x4xf32, #tpu.memory_space<vmem>>, %arg8: memref<1x1x1x4xf32, #tpu.memory_space<vmem>>) attributes {dimension_semantics = [#tpu.dimension_semantics<parallel>, #tpu.dimension_semantics<parallel>], iteration_bounds = array<i64: 2, 2>, scalar_prefetch = 0 : i64, scratch_operands = 0 : i64, tpu.core_type = #tpu.core_type<tc>, window_params = [{pipeline_mode = #tpu.pipeline_mode<synchronous>, transform_indices = @transform_0, window_bounds = array<i64: 3, 3, 8, 4>}, {transform_indices = @transform_1, window_bounds = array<i64: 1, 1, 16, 8>}, {transform_indices = @transform_2, window_bounds = array<i64: 1, 8, 16, 8>}, {transform_indices = @transform_3, window_bounds = array<i64: 1, 1, 16, 8>}, {transform_indices = @transform_4, window_bounds = array<i64: 1, 8, 16, 4>}, {transform_indices = @transform_5, window_bounds = array<i64: 1, 1, 1, 4>}, {transform_indices = @transform_6, window_bounds = array<i64: 1, 1, 1, 4>}]} {
    %c0 = arith.constant 0 : index
    %c0_0 = arith.constant 0 : index
    %c0_1 = arith.constant 0 : index
    %c0_2 = arith.constant 0 : index
    %0 = vector.load %arg3[%c0, %c0_0, %c0_1, %c0_2] : memref<1x1x16x8xbf16, #tpu.memory_space<vmem>>, vector<1x1x16x8xbf16>
    %1 = vector.shape_cast %0 : vector<1x1x16x8xbf16> to vector<1x16x8xbf16>
    %c0_3 = arith.constant 0 : index
    %c0_4 = arith.constant 0 : index
    %c0_5 = arith.constant 0 : index
    %c0_6 = arith.constant 0 : index
    %2 = vector.load %arg4[%c0_3, %c0_4, %c0_5, %c0_6] : memref<1x8x16x8xbf16, #tpu.memory_space<vmem>>, vector<1x8x16x8xbf16>
    %3 = vector.shape_cast %2 : vector<1x8x16x8xbf16> to vector<8x16x8xbf16>
    %c0_7 = arith.constant 0 : index
    %c0_8 = arith.constant 0 : index
    %c0_9 = arith.constant 0 : index
    %c0_10 = arith.constant 0 : index
    %4 = vector.load %arg5[%c0_7, %c0_8, %c0_9, %c0_10] : memref<1x1x16x8xbf16, #tpu.memory_space<vmem>>, vector<1x1x16x8xbf16>
    %5 = vector.shape_cast %4 : vector<1x1x16x8xbf16> to vector<1x16x8xbf16>
    %6 = tpu.concatenate %1, %3, %5 in 0 : vector<1x16x8xbf16>, vector<8x16x8xbf16>, vector<1x16x8xbf16> -> vector<10x16x8xbf16>
    %7 = tpu.iota {dimensions = array<i32: 0>} : vector<10x1x1xi32>
    %c8_i32 = arith.constant 8 : i32
    %8 = arith.muli %arg1, %c8_i32 : i32
    %c1_i32 = arith.constant 1 : i32
    %9 = arith.subi %8, %c1_i32 : i32
    %10 = vector.broadcast %9 : i32 to vector<10x1x1xi32>
    %11 = arith.addi %10, %7 : vector<10x1x1xi32>
    %c0_i32 = arith.constant 0 : i32
    %12 = vector.broadcast %c0_i32 : i32 to vector<10x1x1xi32>
    %13 = arith.cmpi sge, %11, %12 : vector<10x1x1xi32>
    %c16_i32 = arith.constant 16 : i32
    %14 = vector.broadcast %c16_i32 : i32 to vector<10x1x1xi32>
    %15 = arith.cmpi slt, %11, %14 : vector<10x1x1xi32>
    %16 = arith.andi %13, %15 : vector<10x1x1xi1>
    %cst = arith.constant 0.000000e+00 : f32
    %17 = arith.truncf %cst : f32 to bf16
    %18 = vector.shape_cast %16 : vector<10x1x1xi1> to vector<10x1x1xi1>
    %19 = vector.broadcast %18 : vector<10x1x1xi1> to vector<10x16x8xi1>
    %20 = vector.broadcast %17 : bf16 to vector<10x16x8xbf16>
    %21 = arith.select %19, %6, %20 : vector<10x16x8xi1>, vector<10x16x8xbf16>
    %cst_11 = arith.constant 0.000000e+00 : bf16
    %22 = vector.broadcast %cst_11 : bf16 to vector<10x1x8xbf16>
    %23 = tpu.concatenate %22, %21, %22 in 1 : vector<10x1x8xbf16>, vector<10x16x8xbf16>, vector<10x1x8xbf16> -> vector<10x18x8xbf16>
    %cst_12 = arith.constant 0.000000e+00 : f32
    %24 = vector.broadcast %cst_12 : f32 to vector<128x4xf32>
    %25 = vector.extract_strided_slice %23 {offsets = [0, 0, 0], sizes = [8, 16, 8], strides = [1, 1, 1]} : vector<10x18x8xbf16> to vector<8x16x8xbf16>
    %26 = vector.shape_cast %25 : vector<8x16x8xbf16> to vector<128x8xbf16>
    %c0_13 = arith.constant 0 : index
    %c0_14 = arith.constant 0 : index
    %c0_15 = arith.constant 0 : index
    %c0_16 = arith.constant 0 : index
    %27 = vector.load %arg2[%c0_13, %c0_14, %c0_15, %c0_16] : memref<3x3x8x4xbf16, #tpu.memory_space<vmem>>, vector<1x1x8x4xbf16>
    %28 = vector.shape_cast %27 : vector<1x1x8x4xbf16> to vector<8x4xbf16>
    %cst_17 = arith.constant dense<0.000000e+00> : vector<128x4xf32>
    %29 = tpu.matmul %26, %28, %cst_17 {dimension_numbers = #tpu.dot_dimension_numbers<[1], [0], [0], [1], [0, 0, 1, 1], [], []>} : vector<128x8xbf16>, vector<8x4xbf16>, vector<128x4xf32> -> vector<128x4xf32>
    %30 = arith.addf %24, %29 : vector<128x4xf32>
    %31 = vector.extract_strided_slice %23 {offsets = [0, 1, 0], sizes = [8, 16, 8], strides = [1, 1, 1]} : vector<10x18x8xbf16> to vector<8x16x8xbf16>
    %32 = vector.shape_cast %31 : vector<8x16x8xbf16> to vector<128x8xbf16>
    %c0_18 = arith.constant 0 : index
    %c1 = arith.constant 1 : index
    %c0_19 = arith.constant 0 : index
    %c0_20 = arith.constant 0 : index
    %33 = vector.load %arg2[%c0_18, %c1, %c0_19, %c0_20] : memref<3x3x8x4xbf16, #tpu.memory_space<vmem>>, vector<1x1x8x4xbf16>
    %34 = vector.shape_cast %33 : vector<1x1x8x4xbf16> to vector<8x4xbf16>
    %cst_21 = arith.constant dense<0.000000e+00> : vector<128x4xf32>
    %35 = tpu.matmul %32, %34, %cst_21 {dimension_numbers = #tpu.dot_dimension_numbers<[1], [0], [0], [1], [0, 0, 1, 1], [], []>} : vector<128x8xbf16>, vector<8x4xbf16>, vector<128x4xf32> -> vector<128x4xf32>
    %36 = arith.addf %30, %35 : vector<128x4xf32>
    %37 = vector.extract_strided_slice %23 {offsets = [0, 2, 0], sizes = [8, 16, 8], strides = [1, 1, 1]} : vector<10x18x8xbf16> to vector<8x16x8xbf16>
    %38 = vector.shape_cast %37 : vector<8x16x8xbf16> to vector<128x8xbf16>
    %c0_22 = arith.constant 0 : index
    %c2 = arith.constant 2 : index
    %c0_23 = arith.constant 0 : index
    %c0_24 = arith.constant 0 : index
    %39 = vector.load %arg2[%c0_22, %c2, %c0_23, %c0_24] : memref<3x3x8x4xbf16, #tpu.memory_space<vmem>>, vector<1x1x8x4xbf16>
    %40 = vector.shape_cast %39 : vector<1x1x8x4xbf16> to vector<8x4xbf16>
    %cst_25 = arith.constant dense<0.000000e+00> : vector<128x4xf32>
    %41 = tpu.matmul %38, %40, %cst_25 {dimension_numbers = #tpu.dot_dimension_numbers<[1], [0], [0], [1], [0, 0, 1, 1], [], []>} : vector<128x8xbf16>, vector<8x4xbf16>, vector<128x4xf32> -> vector<128x4xf32>
    %42 = arith.addf %36, %41 : vector<128x4xf32>
    %43 = vector.extract_strided_slice %23 {offsets = [1, 0, 0], sizes = [8, 16, 8], strides = [1, 1, 1]} : vector<10x18x8xbf16> to vector<8x16x8xbf16>
    %44 = vector.shape_cast %43 : vector<8x16x8xbf16> to vector<128x8xbf16>
    %c1_26 = arith.constant 1 : index
    %c0_27 = arith.constant 0 : index
    %c0_28 = arith.constant 0 : index
    %c0_29 = arith.constant 0 : index
    %45 = vector.load %arg2[%c1_26, %c0_27, %c0_28, %c0_29] : memref<3x3x8x4xbf16, #tpu.memory_space<vmem>>, vector<1x1x8x4xbf16>
    %46 = vector.shape_cast %45 : vector<1x1x8x4xbf16> to vector<8x4xbf16>
    %cst_30 = arith.constant dense<0.000000e+00> : vector<128x4xf32>
    %47 = tpu.matmul %44, %46, %cst_30 {dimension_numbers = #tpu.dot_dimension_numbers<[1], [0], [0], [1], [0, 0, 1, 1], [], []>} : vector<128x8xbf16>, vector<8x4xbf16>, vector<128x4xf32> -> vector<128x4xf32>
    %48 = arith.addf %42, %47 : vector<128x4xf32>
    %49 = vector.extract_strided_slice %23 {offsets = [1, 1, 0], sizes = [8, 16, 8], strides = [1, 1, 1]} : vector<10x18x8xbf16> to vector<8x16x8xbf16>
    %50 = vector.shape_cast %49 : vector<8x16x8xbf16> to vector<128x8xbf16>
    %c1_31 = arith.constant 1 : index
    %c1_32 = arith.constant 1 : index
    %c0_33 = arith.constant 0 : index
    %c0_34 = arith.constant 0 : index
    %51 = vector.load %arg2[%c1_31, %c1_32, %c0_33, %c0_34] : memref<3x3x8x4xbf16, #tpu.memory_space<vmem>>, vector<1x1x8x4xbf16>
    %52 = vector.shape_cast %51 : vector<1x1x8x4xbf16> to vector<8x4xbf16>
    %cst_35 = arith.constant dense<0.000000e+00> : vector<128x4xf32>
    %53 = tpu.matmul %50, %52, %cst_35 {dimension_numbers = #tpu.dot_dimension_numbers<[1], [0], [0], [1], [0, 0, 1, 1], [], []>} : vector<128x8xbf16>, vector<8x4xbf16>, vector<128x4xf32> -> vector<128x4xf32>
    %54 = arith.addf %48, %53 : vector<128x4xf32>
    %55 = vector.extract_strided_slice %23 {offsets = [1, 2, 0], sizes = [8, 16, 8], strides = [1, 1, 1]} : vector<10x18x8xbf16> to vector<8x16x8xbf16>
    %56 = vector.shape_cast %55 : vector<8x16x8xbf16> to vector<128x8xbf16>
    %c1_36 = arith.constant 1 : index
    %c2_37 = arith.constant 2 : index
    %c0_38 = arith.constant 0 : index
    %c0_39 = arith.constant 0 : index
    %57 = vector.load %arg2[%c1_36, %c2_37, %c0_38, %c0_39] : memref<3x3x8x4xbf16, #tpu.memory_space<vmem>>, vector<1x1x8x4xbf16>
    %58 = vector.shape_cast %57 : vector<1x1x8x4xbf16> to vector<8x4xbf16>
    %cst_40 = arith.constant dense<0.000000e+00> : vector<128x4xf32>
    %59 = tpu.matmul %56, %58, %cst_40 {dimension_numbers = #tpu.dot_dimension_numbers<[1], [0], [0], [1], [0, 0, 1, 1], [], []>} : vector<128x8xbf16>, vector<8x4xbf16>, vector<128x4xf32> -> vector<128x4xf32>
    %60 = arith.addf %54, %59 : vector<128x4xf32>
    %61 = vector.extract_strided_slice %23 {offsets = [2, 0, 0], sizes = [8, 16, 8], strides = [1, 1, 1]} : vector<10x18x8xbf16> to vector<8x16x8xbf16>
    %62 = vector.shape_cast %61 : vector<8x16x8xbf16> to vector<128x8xbf16>
    %c2_41 = arith.constant 2 : index
    %c0_42 = arith.constant 0 : index
    %c0_43 = arith.constant 0 : index
    %c0_44 = arith.constant 0 : index
    %63 = vector.load %arg2[%c2_41, %c0_42, %c0_43, %c0_44] : memref<3x3x8x4xbf16, #tpu.memory_space<vmem>>, vector<1x1x8x4xbf16>
    %64 = vector.shape_cast %63 : vector<1x1x8x4xbf16> to vector<8x4xbf16>
    %cst_45 = arith.constant dense<0.000000e+00> : vector<128x4xf32>
    %65 = tpu.matmul %62, %64, %cst_45 {dimension_numbers = #tpu.dot_dimension_numbers<[1], [0], [0], [1], [0, 0, 1, 1], [], []>} : vector<128x8xbf16>, vector<8x4xbf16>, vector<128x4xf32> -> vector<128x4xf32>
    %66 = arith.addf %60, %65 : vector<128x4xf32>
    %67 = vector.extract_strided_slice %23 {offsets = [2, 1, 0], sizes = [8, 16, 8], strides = [1, 1, 1]} : vector<10x18x8xbf16> to vector<8x16x8xbf16>
    %68 = vector.shape_cast %67 : vector<8x16x8xbf16> to vector<128x8xbf16>
    %c2_46 = arith.constant 2 : index
    %c1_47 = arith.constant 1 : index
    %c0_48 = arith.constant 0 : index
    %c0_49 = arith.constant 0 : index
    %69 = vector.load %arg2[%c2_46, %c1_47, %c0_48, %c0_49] : memref<3x3x8x4xbf16, #tpu.memory_space<vmem>>, vector<1x1x8x4xbf16>
    %70 = vector.shape_cast %69 : vector<1x1x8x4xbf16> to vector<8x4xbf16>
    %cst_50 = arith.constant dense<0.000000e+00> : vector<128x4xf32>
    %71 = tpu.matmul %68, %70, %cst_50 {dimension_numbers = #tpu.dot_dimension_numbers<[1], [0], [0], [1], [0, 0, 1, 1], [], []>} : vector<128x8xbf16>, vector<8x4xbf16>, vector<128x4xf32> -> vector<128x4xf32>
    %72 = arith.addf %66, %71 : vector<128x4xf32>
    %73 = vector.extract_strided_slice %23 {offsets = [2, 2, 0], sizes = [8, 16, 8], strides = [1, 1, 1]} : vector<10x18x8xbf16> to vector<8x16x8xbf16>
    %74 = vector.shape_cast %73 : vector<8x16x8xbf16> to vector<128x8xbf16>
    %c2_51 = arith.constant 2 : index
    %c2_52 = arith.constant 2 : index
    %c0_53 = arith.constant 0 : index
    %c0_54 = arith.constant 0 : index
    %75 = vector.load %arg2[%c2_51, %c2_52, %c0_53, %c0_54] : memref<3x3x8x4xbf16, #tpu.memory_space<vmem>>, vector<1x1x8x4xbf16>
    %76 = vector.shape_cast %75 : vector<1x1x8x4xbf16> to vector<8x4xbf16>
    %cst_55 = arith.constant dense<0.000000e+00> : vector<128x4xf32>
    %77 = tpu.matmul %74, %76, %cst_55 {dimension_numbers = #tpu.dot_dimension_numbers<[1], [0], [0], [1], [0, 0, 1, 1], [], []>} : vector<128x8xbf16>, vector<8x4xbf16>, vector<128x4xf32> -> vector<128x4xf32>
    %78 = arith.addf %72, %77 : vector<128x4xf32>
    %79 = vector.shape_cast %78 : vector<128x4xf32> to vector<8x16x4xf32>
    %80 = tpu.iota {dimensions = array<i32: 0>} : vector<8x1x1xi32>
    %c8_i32_56 = arith.constant 8 : i32
    %81 = arith.muli %arg1, %c8_i32_56 : i32
    %82 = vector.broadcast %81 : i32 to vector<8x1x1xi32>
    %83 = arith.addi %82, %80 : vector<8x1x1xi32>
    %c16_i32_57 = arith.constant 16 : i32
    %84 = vector.broadcast %c16_i32_57 : i32 to vector<8x1x1xi32>
    %85 = arith.cmpi slt, %83, %84 : vector<8x1x1xi32>
    %cst_58 = arith.constant 0.000000e+00 : f32
    %86 = vector.shape_cast %85 : vector<8x1x1xi1> to vector<8x1x1xi1>
    %87 = vector.broadcast %86 : vector<8x1x1xi1> to vector<8x16x4xi1>
    %88 = vector.broadcast %cst_58 : f32 to vector<8x16x4xf32>
    %89 = arith.select %87, %79, %88 : vector<8x16x4xi1>, vector<8x16x4xf32>
    %90 = arith.truncf %89 : vector<8x16x4xf32> to vector<8x16x4xbf16>
    %91 = vector.shape_cast %90 : vector<8x16x4xbf16> to vector<1x8x16x4xbf16>
    %c0_59 = arith.constant 0 : index
    %c0_60 = arith.constant 0 : index
    %c0_61 = arith.constant 0 : index
    %c0_62 = arith.constant 0 : index
    %92 = vector.load %arg6[%c0_59, %c0_60, %c0_61, %c0_62] : memref<1x8x16x4xbf16, #tpu.memory_space<vmem>>, vector<1x8x16x4xbf16>
    tpu.vector_store %arg6[%c0_59, %c0_60, %c0_61, %c0_62], %91 {strides = array<i32>} : memref<1x8x16x4xbf16, #tpu.memory_space<vmem>>, vector<1x8x16x4xbf16>,
    %cst_63 = arith.constant dense<0.000000e+00> : vector<4xf32>
    %93 = vector.multi_reduction <add>, %89, %cst_63 [0, 1] : vector<8x16x4xf32> to vector<4xf32>
    %94 = vector.shape_cast %93 : vector<4xf32> to vector<1x1x1x4xf32>
    %c0_64 = arith.constant 0 : index
    %c0_65 = arith.constant 0 : index
    %c0_66 = arith.constant 0 : index
    %c0_67 = arith.constant 0 : index
    %95 = vector.load %arg7[%c0_64, %c0_65, %c0_66, %c0_67] : memref<1x1x1x4xf32, #tpu.memory_space<vmem>>, vector<1x1x1x4xf32>
    tpu.vector_store %arg7[%c0_64, %c0_65, %c0_66, %c0_67], %94 {strides = array<i32>} : memref<1x1x1x4xf32, #tpu.memory_space<vmem>>, vector<1x1x1x4xf32>,
    %96 = arith.mulf %89, %89 : vector<8x16x4xf32>
    %cst_68 = arith.constant dense<0.000000e+00> : vector<4xf32>
    %97 = vector.multi_reduction <add>, %96, %cst_68 [0, 1] : vector<8x16x4xf32> to vector<4xf32>
    %98 = vector.shape_cast %97 : vector<4xf32> to vector<1x1x1x4xf32>
    %c0_69 = arith.constant 0 : index
    %c0_70 = arith.constant 0 : index
    %c0_71 = arith.constant 0 : index
    %c0_72 = arith.constant 0 : index
    %99 = vector.load %arg8[%c0_69, %c0_70, %c0_71, %c0_72] : memref<1x1x1x4xf32, #tpu.memory_space<vmem>>, vector<1x1x1x4xf32>
    tpu.vector_store %arg8[%c0_69, %c0_70, %c0_71, %c0_72], %98 {strides = array<i32>} : memref<1x1x1x4xf32, #tpu.memory_space<vmem>>, vector<1x1x1x4xf32>,
    return
  }
  func.func @transform_0(%arg0: i32, %arg1: i32) -> (i32, i32, i32, i32) {
    %c0_i32 = arith.constant 0 : i32
    %c0_i32_0 = arith.constant 0 : i32
    %c0_i32_1 = arith.constant 0 : i32
    %c0_i32_2 = arith.constant 0 : i32
    %c0_i32_3 = arith.constant 0 : i32
    return %c0_i32, %c0_i32_0, %c0_i32_1, %c0_i32_2 : i32, i32, i32, i32
  }
  func.func @transform_1(%arg0: i32, %arg1: i32) -> (i32, i32, i32, i32) {
    %c8_i32 = arith.constant 8 : i32
    %0 = arith.muli %arg1, %c8_i32 : i32
    %c1_i32 = arith.constant 1 : i32
    %1 = arith.subi %0, %c1_i32 : i32
    %c0_i32 = arith.constant 0 : i32
    %2 = arith.maxsi %1, %c0_i32 : i32
    %c0_i32_0 = arith.constant 0 : i32
    %c0_i32_1 = arith.constant 0 : i32
    %c0_i32_2 = arith.constant 0 : i32
    return %arg0, %2, %c0_i32_0, %c0_i32_1 : i32, i32, i32, i32
  }
  func.func @transform_2(%arg0: i32, %arg1: i32) -> (i32, i32, i32, i32) {
    %c0_i32 = arith.constant 0 : i32
    %c0_i32_0 = arith.constant 0 : i32
    %c0_i32_1 = arith.constant 0 : i32
    return %arg0, %arg1, %c0_i32, %c0_i32_0 : i32, i32, i32, i32
  }
  func.func @transform_3(%arg0: i32, %arg1: i32) -> (i32, i32, i32, i32) {
    %c1_i32 = arith.constant 1 : i32
    %0 = arith.addi %arg1, %c1_i32 : i32
    %c8_i32 = arith.constant 8 : i32
    %1 = arith.muli %0, %c8_i32 : i32
    %c15_i32 = arith.constant 15 : i32
    %2 = arith.minsi %1, %c15_i32 : i32
    %c0_i32 = arith.constant 0 : i32
    %c0_i32_0 = arith.constant 0 : i32
    %c0_i32_1 = arith.constant 0 : i32
    return %arg0, %2, %c0_i32, %c0_i32_0 : i32, i32, i32, i32
  }
  func.func @transform_4(%arg0: i32, %arg1: i32) -> (i32, i32, i32, i32) {
    %c0_i32 = arith.constant 0 : i32
    %c0_i32_0 = arith.constant 0 : i32
    %c0_i32_1 = arith.constant 0 : i32
    return %arg0, %arg1, %c0_i32, %c0_i32_0 : i32, i32, i32, i32
  }
  func.func @transform_5(%arg0: i32, %arg1: i32) -> (i32, i32, i32, i32) {
    %c0_i32 = arith.constant 0 : i32
    %c0_i32_0 = arith.constant 0 : i32
    %c0_i32_1 = arith.constant 0 : i32
    return %arg0, %arg1, %c0_i32, %c0_i32_0 : i32, i32, i32, i32
  }
  func.func @transform_6(%arg0: i32, %arg1: i32) -> (i32, i32, i32, i32) {
    %c0_i32 = arith.constant 0 : i32
    %c0_i32_0 = arith.constant 0 : i32
    %c0_i32_1 = arith.constant 0 : i32
    return %arg0, %arg1, %c0_i32, %c0_i32_0 : i32, i32, i32, i32
  }
}

module attributes {stable_mosaic.version = 11 : i64} {
  func.func @_conv_bn_stats_kernel(%arg0: i32, %arg1: i32, %arg2: memref<1x4xf32, #tpu.memory_space<vmem>>, %arg3: memref<1x4xf32, #tpu.memory_space<vmem>>, %arg4: memref<3x3x4x4xbf16, #tpu.memory_space<vmem>>, %arg5: memref<1x1x16x4xbf16, #tpu.memory_space<vmem>>, %arg6: memref<1x8x16x4xbf16, #tpu.memory_space<vmem>>, %arg7: memref<1x1x16x4xbf16, #tpu.memory_space<vmem>>, %arg8: memref<1x8x16x4xbf16, #tpu.memory_space<vmem>>, %arg9: memref<1x1x1x4xf32, #tpu.memory_space<vmem>>, %arg10: memref<1x1x1x4xf32, #tpu.memory_space<vmem>>) attributes {dimension_semantics = [#tpu.dimension_semantics<parallel>, #tpu.dimension_semantics<parallel>], iteration_bounds = array<i64: 2, 2>, scalar_prefetch = 0 : i64, scratch_operands = 0 : i64, tpu.core_type = #tpu.core_type<tc>, window_params = [{pipeline_mode = #tpu.pipeline_mode<synchronous>, transform_indices = @transform_0, window_bounds = array<i64: 1, 4>}, {pipeline_mode = #tpu.pipeline_mode<synchronous>, transform_indices = @transform_1, window_bounds = array<i64: 1, 4>}, {pipeline_mode = #tpu.pipeline_mode<synchronous>, transform_indices = @transform_2, window_bounds = array<i64: 3, 3, 4, 4>}, {transform_indices = @transform_3, window_bounds = array<i64: 1, 1, 16, 4>}, {transform_indices = @transform_4, window_bounds = array<i64: 1, 8, 16, 4>}, {transform_indices = @transform_5, window_bounds = array<i64: 1, 1, 16, 4>}, {transform_indices = @transform_6, window_bounds = array<i64: 1, 8, 16, 4>}, {transform_indices = @transform_7, window_bounds = array<i64: 1, 1, 1, 4>}, {transform_indices = @transform_8, window_bounds = array<i64: 1, 1, 1, 4>}]} {
    %c0 = arith.constant 0 : index
    %c0_0 = arith.constant 0 : index
    %c0_1 = arith.constant 0 : index
    %c0_2 = arith.constant 0 : index
    %0 = vector.load %arg5[%c0, %c0_0, %c0_1, %c0_2] : memref<1x1x16x4xbf16, #tpu.memory_space<vmem>>, vector<1x1x16x4xbf16>
    %1 = vector.shape_cast %0 : vector<1x1x16x4xbf16> to vector<1x16x4xbf16>
    %c0_3 = arith.constant 0 : index
    %c0_4 = arith.constant 0 : index
    %c0_5 = arith.constant 0 : index
    %c0_6 = arith.constant 0 : index
    %2 = vector.load %arg6[%c0_3, %c0_4, %c0_5, %c0_6] : memref<1x8x16x4xbf16, #tpu.memory_space<vmem>>, vector<1x8x16x4xbf16>
    %3 = vector.shape_cast %2 : vector<1x8x16x4xbf16> to vector<8x16x4xbf16>
    %c0_7 = arith.constant 0 : index
    %c0_8 = arith.constant 0 : index
    %c0_9 = arith.constant 0 : index
    %c0_10 = arith.constant 0 : index
    %4 = vector.load %arg7[%c0_7, %c0_8, %c0_9, %c0_10] : memref<1x1x16x4xbf16, #tpu.memory_space<vmem>>, vector<1x1x16x4xbf16>
    %5 = vector.shape_cast %4 : vector<1x1x16x4xbf16> to vector<1x16x4xbf16>
    %6 = tpu.concatenate %1, %3, %5 in 0 : vector<1x16x4xbf16>, vector<8x16x4xbf16>, vector<1x16x4xbf16> -> vector<10x16x4xbf16>
    %7 = arith.extf %6 : vector<10x16x4xbf16> to vector<10x16x4xf32>
    %c0_11 = arith.constant 0 : index
    %c0_12 = arith.constant 0 : index
    %8 = vector.load %arg2[%c0_11, %c0_12] : memref<1x4xf32, #tpu.memory_space<vmem>>, vector<1x4xf32>
    %9 = vector.shape_cast %8 : vector<1x4xf32> to vector<4xf32>
    %10 = vector.shape_cast %9 : vector<4xf32> to vector<1x1x4xf32>
    %11 = vector.broadcast %10 : vector<1x1x4xf32> to vector<10x16x4xf32>
    %12 = arith.mulf %7, %11 : vector<10x16x4xf32>
    %c0_13 = arith.constant 0 : index
    %c0_14 = arith.constant 0 : index
    %13 = vector.load %arg3[%c0_13, %c0_14] : memref<1x4xf32, #tpu.memory_space<vmem>>, vector<1x4xf32>
    %14 = vector.shape_cast %13 : vector<1x4xf32> to vector<4xf32>
    %15 = vector.shape_cast %14 : vector<4xf32> to vector<1x1x4xf32>
    %16 = vector.broadcast %15 : vector<1x1x4xf32> to vector<10x16x4xf32>
    %17 = arith.addf %12, %16 : vector<10x16x4xf32>
    %cst = arith.constant 0.000000e+00 : f32
    %18 = vector.broadcast %cst : f32 to vector<10x16x4xf32>
    %19 = arith.maximumf %17, %18 : vector<10x16x4xf32>
    %20 = tpu.iota {dimensions = array<i32: 0>} : vector<10x1x1xi32>
    %c8_i32 = arith.constant 8 : i32
    %21 = arith.muli %arg1, %c8_i32 : i32
    %c1_i32 = arith.constant 1 : i32
    %22 = arith.subi %21, %c1_i32 : i32
    %23 = vector.broadcast %22 : i32 to vector<10x1x1xi32>
    %24 = arith.addi %23, %20 : vector<10x1x1xi32>
    %c0_i32 = arith.constant 0 : i32
    %25 = vector.broadcast %c0_i32 : i32 to vector<10x1x1xi32>
    %26 = arith.cmpi sge, %24, %25 : vector<10x1x1xi32>
    %c16_i32 = arith.constant 16 : i32
    %27 = vector.broadcast %c16_i32 : i32 to vector<10x1x1xi32>
    %28 = arith.cmpi slt, %24, %27 : vector<10x1x1xi32>
    %29 = arith.andi %26, %28 : vector<10x1x1xi1>
    %cst_15 = arith.constant 0.000000e+00 : f32
    %30 = vector.shape_cast %29 : vector<10x1x1xi1> to vector<10x1x1xi1>
    %31 = vector.broadcast %30 : vector<10x1x1xi1> to vector<10x16x4xi1>
    %32 = vector.broadcast %cst_15 : f32 to vector<10x16x4xf32>
    %33 = arith.select %31, %19, %32 : vector<10x16x4xi1>, vector<10x16x4xf32>
    %34 = arith.truncf %33 : vector<10x16x4xf32> to vector<10x16x4xbf16>
    %cst_16 = arith.constant 0.000000e+00 : bf16
    %35 = vector.broadcast %cst_16 : bf16 to vector<10x1x4xbf16>
    %36 = tpu.concatenate %35, %34, %35 in 1 : vector<10x1x4xbf16>, vector<10x16x4xbf16>, vector<10x1x4xbf16> -> vector<10x18x4xbf16>
    %cst_17 = arith.constant 0.000000e+00 : f32
    %37 = vector.broadcast %cst_17 : f32 to vector<128x4xf32>
    %38 = vector.extract_strided_slice %36 {offsets = [0, 0, 0], sizes = [8, 16, 4], strides = [1, 1, 1]} : vector<10x18x4xbf16> to vector<8x16x4xbf16>
    %39 = vector.shape_cast %38 : vector<8x16x4xbf16> to vector<128x4xbf16>
    %c0_18 = arith.constant 0 : index
    %c0_19 = arith.constant 0 : index
    %c0_20 = arith.constant 0 : index
    %c0_21 = arith.constant 0 : index
    %40 = vector.load %arg4[%c0_18, %c0_19, %c0_20, %c0_21] : memref<3x3x4x4xbf16, #tpu.memory_space<vmem>>, vector<1x1x4x4xbf16>
    %41 = vector.shape_cast %40 : vector<1x1x4x4xbf16> to vector<4x4xbf16>
    %cst_22 = arith.constant dense<0.000000e+00> : vector<128x4xf32>
    %42 = tpu.matmul %39, %41, %cst_22 {dimension_numbers = #tpu.dot_dimension_numbers<[1], [0], [0], [1], [0, 0, 1, 1], [], []>} : vector<128x4xbf16>, vector<4x4xbf16>, vector<128x4xf32> -> vector<128x4xf32>
    %43 = arith.addf %37, %42 : vector<128x4xf32>
    %44 = vector.extract_strided_slice %36 {offsets = [0, 1, 0], sizes = [8, 16, 4], strides = [1, 1, 1]} : vector<10x18x4xbf16> to vector<8x16x4xbf16>
    %45 = vector.shape_cast %44 : vector<8x16x4xbf16> to vector<128x4xbf16>
    %c0_23 = arith.constant 0 : index
    %c1 = arith.constant 1 : index
    %c0_24 = arith.constant 0 : index
    %c0_25 = arith.constant 0 : index
    %46 = vector.load %arg4[%c0_23, %c1, %c0_24, %c0_25] : memref<3x3x4x4xbf16, #tpu.memory_space<vmem>>, vector<1x1x4x4xbf16>
    %47 = vector.shape_cast %46 : vector<1x1x4x4xbf16> to vector<4x4xbf16>
    %cst_26 = arith.constant dense<0.000000e+00> : vector<128x4xf32>
    %48 = tpu.matmul %45, %47, %cst_26 {dimension_numbers = #tpu.dot_dimension_numbers<[1], [0], [0], [1], [0, 0, 1, 1], [], []>} : vector<128x4xbf16>, vector<4x4xbf16>, vector<128x4xf32> -> vector<128x4xf32>
    %49 = arith.addf %43, %48 : vector<128x4xf32>
    %50 = vector.extract_strided_slice %36 {offsets = [0, 2, 0], sizes = [8, 16, 4], strides = [1, 1, 1]} : vector<10x18x4xbf16> to vector<8x16x4xbf16>
    %51 = vector.shape_cast %50 : vector<8x16x4xbf16> to vector<128x4xbf16>
    %c0_27 = arith.constant 0 : index
    %c2 = arith.constant 2 : index
    %c0_28 = arith.constant 0 : index
    %c0_29 = arith.constant 0 : index
    %52 = vector.load %arg4[%c0_27, %c2, %c0_28, %c0_29] : memref<3x3x4x4xbf16, #tpu.memory_space<vmem>>, vector<1x1x4x4xbf16>
    %53 = vector.shape_cast %52 : vector<1x1x4x4xbf16> to vector<4x4xbf16>
    %cst_30 = arith.constant dense<0.000000e+00> : vector<128x4xf32>
    %54 = tpu.matmul %51, %53, %cst_30 {dimension_numbers = #tpu.dot_dimension_numbers<[1], [0], [0], [1], [0, 0, 1, 1], [], []>} : vector<128x4xbf16>, vector<4x4xbf16>, vector<128x4xf32> -> vector<128x4xf32>
    %55 = arith.addf %49, %54 : vector<128x4xf32>
    %56 = vector.extract_strided_slice %36 {offsets = [1, 0, 0], sizes = [8, 16, 4], strides = [1, 1, 1]} : vector<10x18x4xbf16> to vector<8x16x4xbf16>
    %57 = vector.shape_cast %56 : vector<8x16x4xbf16> to vector<128x4xbf16>
    %c1_31 = arith.constant 1 : index
    %c0_32 = arith.constant 0 : index
    %c0_33 = arith.constant 0 : index
    %c0_34 = arith.constant 0 : index
    %58 = vector.load %arg4[%c1_31, %c0_32, %c0_33, %c0_34] : memref<3x3x4x4xbf16, #tpu.memory_space<vmem>>, vector<1x1x4x4xbf16>
    %59 = vector.shape_cast %58 : vector<1x1x4x4xbf16> to vector<4x4xbf16>
    %cst_35 = arith.constant dense<0.000000e+00> : vector<128x4xf32>
    %60 = tpu.matmul %57, %59, %cst_35 {dimension_numbers = #tpu.dot_dimension_numbers<[1], [0], [0], [1], [0, 0, 1, 1], [], []>} : vector<128x4xbf16>, vector<4x4xbf16>, vector<128x4xf32> -> vector<128x4xf32>
    %61 = arith.addf %55, %60 : vector<128x4xf32>
    %62 = vector.extract_strided_slice %36 {offsets = [1, 1, 0], sizes = [8, 16, 4], strides = [1, 1, 1]} : vector<10x18x4xbf16> to vector<8x16x4xbf16>
    %63 = vector.shape_cast %62 : vector<8x16x4xbf16> to vector<128x4xbf16>
    %c1_36 = arith.constant 1 : index
    %c1_37 = arith.constant 1 : index
    %c0_38 = arith.constant 0 : index
    %c0_39 = arith.constant 0 : index
    %64 = vector.load %arg4[%c1_36, %c1_37, %c0_38, %c0_39] : memref<3x3x4x4xbf16, #tpu.memory_space<vmem>>, vector<1x1x4x4xbf16>
    %65 = vector.shape_cast %64 : vector<1x1x4x4xbf16> to vector<4x4xbf16>
    %cst_40 = arith.constant dense<0.000000e+00> : vector<128x4xf32>
    %66 = tpu.matmul %63, %65, %cst_40 {dimension_numbers = #tpu.dot_dimension_numbers<[1], [0], [0], [1], [0, 0, 1, 1], [], []>} : vector<128x4xbf16>, vector<4x4xbf16>, vector<128x4xf32> -> vector<128x4xf32>
    %67 = arith.addf %61, %66 : vector<128x4xf32>
    %68 = vector.extract_strided_slice %36 {offsets = [1, 2, 0], sizes = [8, 16, 4], strides = [1, 1, 1]} : vector<10x18x4xbf16> to vector<8x16x4xbf16>
    %69 = vector.shape_cast %68 : vector<8x16x4xbf16> to vector<128x4xbf16>
    %c1_41 = arith.constant 1 : index
    %c2_42 = arith.constant 2 : index
    %c0_43 = arith.constant 0 : index
    %c0_44 = arith.constant 0 : index
    %70 = vector.load %arg4[%c1_41, %c2_42, %c0_43, %c0_44] : memref<3x3x4x4xbf16, #tpu.memory_space<vmem>>, vector<1x1x4x4xbf16>
    %71 = vector.shape_cast %70 : vector<1x1x4x4xbf16> to vector<4x4xbf16>
    %cst_45 = arith.constant dense<0.000000e+00> : vector<128x4xf32>
    %72 = tpu.matmul %69, %71, %cst_45 {dimension_numbers = #tpu.dot_dimension_numbers<[1], [0], [0], [1], [0, 0, 1, 1], [], []>} : vector<128x4xbf16>, vector<4x4xbf16>, vector<128x4xf32> -> vector<128x4xf32>
    %73 = arith.addf %67, %72 : vector<128x4xf32>
    %74 = vector.extract_strided_slice %36 {offsets = [2, 0, 0], sizes = [8, 16, 4], strides = [1, 1, 1]} : vector<10x18x4xbf16> to vector<8x16x4xbf16>
    %75 = vector.shape_cast %74 : vector<8x16x4xbf16> to vector<128x4xbf16>
    %c2_46 = arith.constant 2 : index
    %c0_47 = arith.constant 0 : index
    %c0_48 = arith.constant 0 : index
    %c0_49 = arith.constant 0 : index
    %76 = vector.load %arg4[%c2_46, %c0_47, %c0_48, %c0_49] : memref<3x3x4x4xbf16, #tpu.memory_space<vmem>>, vector<1x1x4x4xbf16>
    %77 = vector.shape_cast %76 : vector<1x1x4x4xbf16> to vector<4x4xbf16>
    %cst_50 = arith.constant dense<0.000000e+00> : vector<128x4xf32>
    %78 = tpu.matmul %75, %77, %cst_50 {dimension_numbers = #tpu.dot_dimension_numbers<[1], [0], [0], [1], [0, 0, 1, 1], [], []>} : vector<128x4xbf16>, vector<4x4xbf16>, vector<128x4xf32> -> vector<128x4xf32>
    %79 = arith.addf %73, %78 : vector<128x4xf32>
    %80 = vector.extract_strided_slice %36 {offsets = [2, 1, 0], sizes = [8, 16, 4], strides = [1, 1, 1]} : vector<10x18x4xbf16> to vector<8x16x4xbf16>
    %81 = vector.shape_cast %80 : vector<8x16x4xbf16> to vector<128x4xbf16>
    %c2_51 = arith.constant 2 : index
    %c1_52 = arith.constant 1 : index
    %c0_53 = arith.constant 0 : index
    %c0_54 = arith.constant 0 : index
    %82 = vector.load %arg4[%c2_51, %c1_52, %c0_53, %c0_54] : memref<3x3x4x4xbf16, #tpu.memory_space<vmem>>, vector<1x1x4x4xbf16>
    %83 = vector.shape_cast %82 : vector<1x1x4x4xbf16> to vector<4x4xbf16>
    %cst_55 = arith.constant dense<0.000000e+00> : vector<128x4xf32>
    %84 = tpu.matmul %81, %83, %cst_55 {dimension_numbers = #tpu.dot_dimension_numbers<[1], [0], [0], [1], [0, 0, 1, 1], [], []>} : vector<128x4xbf16>, vector<4x4xbf16>, vector<128x4xf32> -> vector<128x4xf32>
    %85 = arith.addf %79, %84 : vector<128x4xf32>
    %86 = vector.extract_strided_slice %36 {offsets = [2, 2, 0], sizes = [8, 16, 4], strides = [1, 1, 1]} : vector<10x18x4xbf16> to vector<8x16x4xbf16>
    %87 = vector.shape_cast %86 : vector<8x16x4xbf16> to vector<128x4xbf16>
    %c2_56 = arith.constant 2 : index
    %c2_57 = arith.constant 2 : index
    %c0_58 = arith.constant 0 : index
    %c0_59 = arith.constant 0 : index
    %88 = vector.load %arg4[%c2_56, %c2_57, %c0_58, %c0_59] : memref<3x3x4x4xbf16, #tpu.memory_space<vmem>>, vector<1x1x4x4xbf16>
    %89 = vector.shape_cast %88 : vector<1x1x4x4xbf16> to vector<4x4xbf16>
    %cst_60 = arith.constant dense<0.000000e+00> : vector<128x4xf32>
    %90 = tpu.matmul %87, %89, %cst_60 {dimension_numbers = #tpu.dot_dimension_numbers<[1], [0], [0], [1], [0, 0, 1, 1], [], []>} : vector<128x4xbf16>, vector<4x4xbf16>, vector<128x4xf32> -> vector<128x4xf32>
    %91 = arith.addf %85, %90 : vector<128x4xf32>
    %92 = vector.shape_cast %91 : vector<128x4xf32> to vector<8x16x4xf32>
    %93 = tpu.iota {dimensions = array<i32: 0>} : vector<8x1x1xi32>
    %c8_i32_61 = arith.constant 8 : i32
    %94 = arith.muli %arg1, %c8_i32_61 : i32
    %95 = vector.broadcast %94 : i32 to vector<8x1x1xi32>
    %96 = arith.addi %95, %93 : vector<8x1x1xi32>
    %c16_i32_62 = arith.constant 16 : i32
    %97 = vector.broadcast %c16_i32_62 : i32 to vector<8x1x1xi32>
    %98 = arith.cmpi slt, %96, %97 : vector<8x1x1xi32>
    %cst_63 = arith.constant 0.000000e+00 : f32
    %99 = vector.shape_cast %98 : vector<8x1x1xi1> to vector<8x1x1xi1>
    %100 = vector.broadcast %99 : vector<8x1x1xi1> to vector<8x16x4xi1>
    %101 = vector.broadcast %cst_63 : f32 to vector<8x16x4xf32>
    %102 = arith.select %100, %92, %101 : vector<8x16x4xi1>, vector<8x16x4xf32>
    %103 = arith.truncf %102 : vector<8x16x4xf32> to vector<8x16x4xbf16>
    %104 = vector.shape_cast %103 : vector<8x16x4xbf16> to vector<1x8x16x4xbf16>
    %c0_64 = arith.constant 0 : index
    %c0_65 = arith.constant 0 : index
    %c0_66 = arith.constant 0 : index
    %c0_67 = arith.constant 0 : index
    %105 = vector.load %arg8[%c0_64, %c0_65, %c0_66, %c0_67] : memref<1x8x16x4xbf16, #tpu.memory_space<vmem>>, vector<1x8x16x4xbf16>
    tpu.vector_store %arg8[%c0_64, %c0_65, %c0_66, %c0_67], %104 {strides = array<i32>} : memref<1x8x16x4xbf16, #tpu.memory_space<vmem>>, vector<1x8x16x4xbf16>,
    %cst_68 = arith.constant dense<0.000000e+00> : vector<4xf32>
    %106 = vector.multi_reduction <add>, %102, %cst_68 [0, 1] : vector<8x16x4xf32> to vector<4xf32>
    %107 = vector.shape_cast %106 : vector<4xf32> to vector<1x1x1x4xf32>
    %c0_69 = arith.constant 0 : index
    %c0_70 = arith.constant 0 : index
    %c0_71 = arith.constant 0 : index
    %c0_72 = arith.constant 0 : index
    %108 = vector.load %arg9[%c0_69, %c0_70, %c0_71, %c0_72] : memref<1x1x1x4xf32, #tpu.memory_space<vmem>>, vector<1x1x1x4xf32>
    tpu.vector_store %arg9[%c0_69, %c0_70, %c0_71, %c0_72], %107 {strides = array<i32>} : memref<1x1x1x4xf32, #tpu.memory_space<vmem>>, vector<1x1x1x4xf32>,
    %109 = arith.mulf %102, %102 : vector<8x16x4xf32>
    %cst_73 = arith.constant dense<0.000000e+00> : vector<4xf32>
    %110 = vector.multi_reduction <add>, %109, %cst_73 [0, 1] : vector<8x16x4xf32> to vector<4xf32>
    %111 = vector.shape_cast %110 : vector<4xf32> to vector<1x1x1x4xf32>
    %c0_74 = arith.constant 0 : index
    %c0_75 = arith.constant 0 : index
    %c0_76 = arith.constant 0 : index
    %c0_77 = arith.constant 0 : index
    %112 = vector.load %arg10[%c0_74, %c0_75, %c0_76, %c0_77] : memref<1x1x1x4xf32, #tpu.memory_space<vmem>>, vector<1x1x1x4xf32>
    tpu.vector_store %arg10[%c0_74, %c0_75, %c0_76, %c0_77], %111 {strides = array<i32>} : memref<1x1x1x4xf32, #tpu.memory_space<vmem>>, vector<1x1x1x4xf32>,
    return
  }
  func.func @transform_0(%arg0: i32, %arg1: i32) -> (i32, i32) {
    %c0_i32 = arith.constant 0 : i32
    %c0_i32_0 = arith.constant 0 : i32
    %c0_i32_1 = arith.constant 0 : i32
    return %c0_i32, %c0_i32_0 : i32, i32
  }
  func.func @transform_1(%arg0: i32, %arg1: i32) -> (i32, i32) {
    %c0_i32 = arith.constant 0 : i32
    %c0_i32_0 = arith.constant 0 : i32
    %c0_i32_1 = arith.constant 0 : i32
    return %c0_i32, %c0_i32_0 : i32, i32
  }
  func.func @transform_2(%arg0: i32, %arg1: i32) -> (i32, i32, i32, i32) {
    %c0_i32 = arith.constant 0 : i32
    %c0_i32_0 = arith.constant 0 : i32
    %c0_i32_1 = arith.constant 0 : i32
    %c0_i32_2 = arith.constant 0 : i32
    %c0_i32_3 = arith.constant 0 : i32
    return %c0_i32, %c0_i32_0, %c0_i32_1, %c0_i32_2 : i32, i32, i32, i32
  }
  func.func @transform_3(%arg0: i32, %arg1: i32) -> (i32, i32, i32, i32) {
    %c8_i32 = arith.constant 8 : i32
    %0 = arith.muli %arg1, %c8_i32 : i32
    %c1_i32 = arith.constant 1 : i32
    %1 = arith.subi %0, %c1_i32 : i32
    %c0_i32 = arith.constant 0 : i32
    %2 = arith.maxsi %1, %c0_i32 : i32
    %c0_i32_0 = arith.constant 0 : i32
    %c0_i32_1 = arith.constant 0 : i32
    %c0_i32_2 = arith.constant 0 : i32
    return %arg0, %2, %c0_i32_0, %c0_i32_1 : i32, i32, i32, i32
  }
  func.func @transform_4(%arg0: i32, %arg1: i32) -> (i32, i32, i32, i32) {
    %c0_i32 = arith.constant 0 : i32
    %c0_i32_0 = arith.constant 0 : i32
    %c0_i32_1 = arith.constant 0 : i32
    return %arg0, %arg1, %c0_i32, %c0_i32_0 : i32, i32, i32, i32
  }
  func.func @transform_5(%arg0: i32, %arg1: i32) -> (i32, i32, i32, i32) {
    %c1_i32 = arith.constant 1 : i32
    %0 = arith.addi %arg1, %c1_i32 : i32
    %c8_i32 = arith.constant 8 : i32
    %1 = arith.muli %0, %c8_i32 : i32
    %c15_i32 = arith.constant 15 : i32
    %2 = arith.minsi %1, %c15_i32 : i32
    %c0_i32 = arith.constant 0 : i32
    %c0_i32_0 = arith.constant 0 : i32
    %c0_i32_1 = arith.constant 0 : i32
    return %arg0, %2, %c0_i32, %c0_i32_0 : i32, i32, i32, i32
  }
  func.func @transform_6(%arg0: i32, %arg1: i32) -> (i32, i32, i32, i32) {
    %c0_i32 = arith.constant 0 : i32
    %c0_i32_0 = arith.constant 0 : i32
    %c0_i32_1 = arith.constant 0 : i32
    return %arg0, %arg1, %c0_i32, %c0_i32_0 : i32, i32, i32, i32
  }
  func.func @transform_7(%arg0: i32, %arg1: i32) -> (i32, i32, i32, i32) {
    %c0_i32 = arith.constant 0 : i32
    %c0_i32_0 = arith.constant 0 : i32
    %c0_i32_1 = arith.constant 0 : i32
    return %arg0, %arg1, %c0_i32, %c0_i32_0 : i32, i32, i32, i32
  }
  func.func @transform_8(%arg0: i32, %arg1: i32) -> (i32, i32, i32, i32) {
    %c0_i32 = arith.constant 0 : i32
    %c0_i32_0 = arith.constant 0 : i32
    %c0_i32_1 = arith.constant 0 : i32
    return %arg0, %arg1, %c0_i32, %c0_i32_0 : i32, i32, i32, i32
  }
}

module attributes {stable_mosaic.version = 11 : i64} {
  func.func @_bn_relu_kernel(%arg0: i32, %arg1: i32, %arg2: memref<1x4xf32, #tpu.memory_space<vmem>>, %arg3: memref<1x4xf32, #tpu.memory_space<vmem>>, %arg4: memref<1x8x16x4xbf16, #tpu.memory_space<vmem>>, %arg5: memref<1x8x16x4xf32, #tpu.memory_space<vmem>>) attributes {dimension_semantics = [#tpu.dimension_semantics<parallel>, #tpu.dimension_semantics<parallel>], iteration_bounds = array<i64: 2, 2>, scalar_prefetch = 0 : i64, scratch_operands = 0 : i64, tpu.core_type = #tpu.core_type<tc>, window_params = [{pipeline_mode = #tpu.pipeline_mode<synchronous>, transform_indices = @transform_0, window_bounds = array<i64: 1, 4>}, {pipeline_mode = #tpu.pipeline_mode<synchronous>, transform_indices = @transform_1, window_bounds = array<i64: 1, 4>}, {transform_indices = @transform_2, window_bounds = array<i64: 1, 8, 16, 4>}, {transform_indices = @transform_3, window_bounds = array<i64: 1, 8, 16, 4>}]} {
    %c0 = arith.constant 0 : index
    %c0_0 = arith.constant 0 : index
    %c0_1 = arith.constant 0 : index
    %c0_2 = arith.constant 0 : index
    %0 = vector.load %arg4[%c0, %c0_0, %c0_1, %c0_2] : memref<1x8x16x4xbf16, #tpu.memory_space<vmem>>, vector<1x8x16x4xbf16>
    %1 = arith.extf %0 : vector<1x8x16x4xbf16> to vector<1x8x16x4xf32>
    %c0_3 = arith.constant 0 : index
    %c0_4 = arith.constant 0 : index
    %2 = vector.load %arg2[%c0_3, %c0_4] : memref<1x4xf32, #tpu.memory_space<vmem>>, vector<1x4xf32>
    %3 = vector.shape_cast %2 : vector<1x4xf32> to vector<4xf32>
    %4 = vector.shape_cast %3 : vector<4xf32> to vector<1x1x1x4xf32>
    %5 = vector.broadcast %4 : vector<1x1x1x4xf32> to vector<1x8x16x4xf32>
    %6 = arith.mulf %1, %5 : vector<1x8x16x4xf32>
    %c0_5 = arith.constant 0 : index
    %c0_6 = arith.constant 0 : index
    %7 = vector.load %arg3[%c0_5, %c0_6] : memref<1x4xf32, #tpu.memory_space<vmem>>, vector<1x4xf32>
    %8 = vector.shape_cast %7 : vector<1x4xf32> to vector<4xf32>
    %9 = vector.shape_cast %8 : vector<4xf32> to vector<1x1x1x4xf32>
    %10 = vector.broadcast %9 : vector<1x1x1x4xf32> to vector<1x8x16x4xf32>
    %11 = arith.addf %6, %10 : vector<1x8x16x4xf32>
    %cst = arith.constant 0.000000e+00 : f32
    %12 = vector.broadcast %cst : f32 to vector<1x8x16x4xf32>
    %13 = arith.maximumf %11, %12 : vector<1x8x16x4xf32>
    %c0_7 = arith.constant 0 : index
    %c0_8 = arith.constant 0 : index
    %c0_9 = arith.constant 0 : index
    %c0_10 = arith.constant 0 : index
    %14 = vector.load %arg5[%c0_7, %c0_8, %c0_9, %c0_10] : memref<1x8x16x4xf32, #tpu.memory_space<vmem>>, vector<1x8x16x4xf32>
    tpu.vector_store %arg5[%c0_7, %c0_8, %c0_9, %c0_10], %13 {strides = array<i32>} : memref<1x8x16x4xf32, #tpu.memory_space<vmem>>, vector<1x8x16x4xf32>,
    return
  }
  func.func @transform_0(%arg0: i32, %arg1: i32) -> (i32, i32) {
    %c0_i32 = arith.constant 0 : i32
    %c0_i32_0 = arith.constant 0 : i32
    %c0_i32_1 = arith.constant 0 : i32
    return %c0_i32, %c0_i32_0 : i32, i32
  }
  func.func @transform_1(%arg0: i32, %arg1: i32) -> (i32, i32) {
    %c0_i32 = arith.constant 0 : i32
    %c0_i32_0 = arith.constant 0 : i32
    %c0_i32_1 = arith.constant 0 : i32
    return %c0_i32, %c0_i32_0 : i32, i32
  }
  func.func @transform_2(%arg0: i32, %arg1: i32) -> (i32, i32, i32, i32) {
    %c0_i32 = arith.constant 0 : i32
    %c0_i32_0 = arith.constant 0 : i32
    %c0_i32_1 = arith.constant 0 : i32
    return %arg0, %arg1, %c0_i32, %c0_i32_0 : i32, i32, i32, i32
  }
  func.func @transform_3(%arg0: i32, %arg1: i32) -> (i32, i32, i32, i32) {
    %c0_i32 = arith.constant 0 : i32
    %c0_i32_0 = arith.constant 0 : i32
    %c0_i32_1 = arith.constant 0 : i32
    return %arg0, %arg1, %c0_i32, %c0_i32_0 : i32, i32, i32, i32
  }
}

</mosaic_0001>

<bundles_post_ra>
// kernel: up_forward.5
= control target key start
LH: loop header
LB: loop body
LE: loop exit
PB: predicated region body
PF: predicated region fallthrough
CT: control target
= control target key end

     0   :  { %s1224_s0 = inlined_call_operand.hbm [shape: f32[1,4], index: 0, kind: input, shape index: {}]   ;;  %s1225_s1 = inlined_call_operand.hbm [shape: f32[1,4], index: 1, kind: input, shape index: {}]   ;;  %s1226_s2 = inlined_call_operand.hbm [shape: bf16[2,16,16,4], index: 2, kind: input, shape index: {}]   ;;  %s1227_s3 = inlined_call_operand.hbm [shape: f32[2,16,16,4], index: 3, kind: output, shape index: {}]  }
   0x1   :  { %1236 = sst [smem:[#allocation16_spill]] %s1224_s0 }
   0x2   :  { %1237 = sst [smem:[#allocation17_spill]] %s1225_s1 }
   0x3   :  { %8 = vsyncpa [#allocation3], 0 }
   0x4   :  { %9 = vsyncpa [#allocation6], 0 }
   0x5   :  { %10 = vsyncpa [#allocation4], 0 }
   0x6   :  { %12 = vsyncpa [#allocation4 + $0x1], 0  ;;  %s861_s12 = smov 0   ;;  %s863_s13 = smov 0  }
   0x7   :  { %s865_s14 = smov 0   ;;  %s867_s15 = smov 0  }
   0x8   :  { %s869_s16 = smov 0   ;;  %s871_s17 = smov 0  }
   0x9   :  { %s873_s18 = smov 0   ;;  %s875_s19 = smov 0  }
   0xa LB: > { %1238 = sst [smem:[#allocation13_spill]] %s803_s12  ;;  %s902_s20 = sadd.s32 4294967295, %s831_s19   ;;  %s831_s19 = sphi %s875_s19, %s18_s19   ;;  %s827_s18 = sphi %s873_s18, %s1269_s18   ;;  %s823_s17 = sphi %s871_s17, %s1268_s17   ;;  %s819_s16 = sphi %s869_s16, %s1267_s16   ;;  %s815_s15 = sphi %s867_s15, %s1266_s15   ;;  %s811_s14 = sphi %s865_s14, %s1265_s14   ;;  %s807_s13 = sphi %s863_s13, %s1264_s13   ;;  %s803_s12 = sphi %s861_s12, %s1263_s12  }
   0xb   : > { %s471_s21 = sadd.s32 4294967294, %s831_s19   ;;  %p88_p0 = scmp.ne.s32.totalorder %s811_s14, %s807_s13 }
   0xc   : > { %p89_p1 = scmp.eq.s32.totalorder %s831_s19, 0  ;;  %p94_p2 = scmp.ne.s32.totalorder %s807_s13, %s803_s12 }
   0xd   : > { %p1228_p3 = scmp.eq.s32.totalorder %s902_s20, 0  ;;  %p120_p4 = scmp.eq.s32.totalorder %s902_s20, 3 }
   0xe   : > { %p913_p5 = por %p89_p1, %p88_p0  ;;  %p126_p6 = scmp.eq.s32.totalorder %s471_s21, 3 }
   0xf   : > { %p919_p7 = por %p1228_p3, %p94_p2  ;;  %p923_p8 = por %p120_p4, %p88_p0 }
  0x10   : > { %p927_p9 = por %p126_p6, %p94_p2  ;;  %p472_p10 = scmp.ge.s32.totalorder %s831_s19, 1 }
  0x11   : > { %s1240_s24 = scalar_select %p919_p7, 1, 0 }
  0x12   : > { %s1241_s25 = scalar_select %p923_p8, 1, 0 }
  0x13   : > { %s1242_s26 = scalar_select %p927_p9, 1, 0 }
  0x14   : > { %p133_p11 = scmp.lt.s32.totalorder %s831_s19, 5  ;;  %s833_s28 = smov [#allocation2]  }
  0x15   : > { %1243 = sst [smem:[#allocation14_spill]] %s1242_s26  ;;  %s146_s29 = sshll.u32 %s833_s28, 4  ;;  %s147_s29 = int_to_ptr.vmem [resolvable:$true] %s146_s29 }
  0x16   : > { %p933_p12 = pnand %p472_p10, %p133_p11  ;;  %p565_p13 = scmp.lt.s32.totalorder %s831_s19, 4 }
  0x17   : > { %s834_s4 = smov [#allocation5]   ;;  %s1247_s0 = sld [smem:[#allocation16_spill]] }
  0x18   : > { %s1244_s27 = scalar_select %p933_p12, 1, 0 }
  0x19   : > { %p548_p0 = pneg %p933_p12  ;;  %p942_p1 = pnand %p565_p13, %p913_p5 }
  0x1a   : > { %s157_s5 = sshll.u32 %s834_s4, 4  ;;  %s952_s5 = int_to_ptr.vmem [resolvable:$true] %s157_s5 }
  0x1b   : > { %s1245_s30 = scalar_select %p942_p1, 1, 0 }
  0x1c   : > { %p948_p2 = pnand %p548_p0, %p1228_p3 }
  0x1d   : > { %s639_s9 = scalar_lea.hbm %s1247_s0, 16 }
  0x1e   : > { %p640_p4 = scmp.ne.s32.totalorder %s1247_s0, %s639_s9  ;;  %p641_p5 = pneg %p948_p2 }
  0x1f   : > { %p646_p11 = scmp.lt.u32.totalorder %s639_s9, %s1247_s0 }
  0x20   : > { %p642_p6 = pnand %p641_p5, %p640_p4 }
  0x22   : > { %p643_p10 = pneg %p642_p6 }
  0x24   : > { %p648_p13 = pnand %p646_p11, %p643_p10 }
  0x26   : > { %651 = shalt.err (!%p648_p13)
}
  0x27   : > { %s652_s28 = scalar_lea.vmem %s147_s29, 16  ;;  %s659_s4 = scalar_lea.vmem %s147_s29, 32 }
  0x28   : > { %p653_p0 = scmp.ne.s32.totalorder %s147_s29, %s652_s28  ;;  %p660_p8 = scmp.lt.s32.totalorder %s147_s29, %s147_s29 }
  0x29   : > { %p661_p7 = scmp.lt.s32.totalorder %s659_s4, %s652_s28 }
  0x2a   : > { %p655_p3 = pnand %p653_p0, %p641_p5 }
  0x2b   : > { %p662_p12 = por %p661_p7, %p660_p8 }
  0x2c   : > { %p656_p9 = pneg %p655_p3 }
  0x2e   : > { %p663_p1 = pnand %p662_p12, %p656_p9 }
  0x30   : > { %666 = shalt.err (!%p663_p1)
}
  0x31   : > { %551 = dma.hbm_to_vmem [thread:$0]  (!%p948_p2), %s1247_s0, 16, %s147_s29, [#allocation3]  }
  0x32   : > { %s1248_s1 = sld [smem:[#allocation17_spill]] }
  0x38   : > { %s667_s11 = scalar_lea.hbm %s1248_s1, 16 }
  0x39   : > { %p668_p3 = scmp.ne.s32.totalorder %s1248_s1, %s667_s11  ;;  %p674_p9 = scmp.lt.u32.totalorder %s667_s11, %s1248_s1 }
  0x3b   : > { %p670_p7 = pnand %p668_p3, %p641_p5 }
  0x3d   : > { %p671_p8 = pneg %p670_p7 }
  0x3f   : > { %p676_p12 = pnand %p674_p9, %p671_p8 }
  0x41   : > { %679 = shalt.err (!%p676_p12)
}
  0x42   : > { %s680_s29 = scalar_lea.vmem %s952_s5, 16  ;;  %s687_s7 = scalar_lea.vmem %s952_s5, 32 }
  0x43   : > { %p681_p1 = scmp.ne.s32.totalorder %s952_s5, %s680_s29  ;;  %p688_p10 = scmp.lt.s32.totalorder %s952_s5, %s952_s5 }
  0x44   : > { %p689_p11 = scmp.lt.s32.totalorder %s687_s7, %s680_s29 }
  0x45   : > { %p683_p4 = pnand %p681_p1, %p641_p5 }
  0x46   : > { %p690_p13 = por %p689_p11, %p688_p10 }
  0x47   : > { %p684_p6 = pneg %p683_p4 }
  0x49   : > { %p691_p0 = pnand %p690_p13, %p684_p6 }
  0x4b   : > { %694 = shalt.err (!%p691_p0)
}
  0x4c   : > { %554 = dma.hbm_to_vmem [thread:$0]  (!%p948_p2), %s1248_s1, 16, %s952_s5, [#allocation6]  }
  0x4d   : > { %s27_s10 = sadd.s32 1, %s823_s17  ;;  %s30_s11 = sadd.s32 1, %s827_s18 }
  0x4e   : > { %p28_p5 = scmp.ge.s32.totalorder %s27_s10, 2  ;;  %s168_s21 = sand.u32 1, %s831_s19  }
  0x4f   : > { %s170_s23 = sand.u32 1, %s811_s14   ;;  %s495_s4 = sshll.u32 %s823_s17, 4 }
  0x50   : > { %s1271_s10 = smov (%p28_p5, %s27_s10), 0  ;;  %s1273_s11 = smov (!%p28_p5, %s30_s11), %s827_s18 }
  0x51   : > { %1249 = sst [smem:[#allocation15_spill]] %s1271_s10  ;;  %s77_s6 = ssub.s32 %s823_s17, %s1271_s10 }
  0x52   : > { %s476_s28 = sshll.u32 %s170_s23, 6  ;;  %p32_p3 = scmp.ge.s32.totalorder %s1273_s11, 2 }
  0x53   : > { %s479_s29 = sshll.u32 %s827_s18, 5  ;;  %s172_s7 = scalar_lea.vmem [#allocation7], %s476_s28 }
  0x54   : > { %s1275_s11 = smov (%p32_p3, %s1273_s11), 0  ;;  %s179_s5 = sadd.s32 %s495_s4, %s479_s29 }
  0x55   : > { %s182_s8 = sshll.u32 %s172_s7, 4  ;;  %s76_s9 = ssub.s32 %s827_s18, %s1275_s11  ;;  %s1022_s8 = int_to_ptr.vmem [resolvable:$true] %s182_s8 }
  0x56   : > { %s480_s22 = sshll.u32 %s179_s5, 6  ;;  %s78_s0 = sor.u32 %s77_s6, %s76_s9 }
  0x57   : > { %s1020_s12 = scalar_lea.hbm %s1226_s2, %s480_s22  ;;  %p79_p2 = scmp.eq.s32.totalorder %s78_s0, 0 }
  0x58   : > { %s1250_s23 = sadd.s32 1, %s811_s14  ;;  %s1029_s28 = scalar_lea.sflag [#allocation3], %s168_s21 }
  0x59   : > { %s1027_s10 = scalar_select %p79_p2, %s811_s14, %s1250_s23  }
  0x5a   : > { %s695_s4 = scalar_lea.hbm %s1020_s12, 1024  ;;  %p1251_p8 = scmp.ne.s32.totalorder %s1245_s30, 0 }
  0x5b   : > { %p696_p7 = scmp.ne.s32.totalorder %s1020_s12, %s695_s4  ;;  %s700_s26 = scalar_lea.hbm %s1226_s2, 4096 }
  0x5c   : > { %p697_p9 = pneg %p1251_p8  ;;  %p701_p4 = scmp.lt.u32.totalorder %s1020_s12, %s1226_s2 }
  0x5d   : > { %p702_p6 = scmp.lt.u32.totalorder %s700_s26, %s695_s4  ;;  %p704_p11 = scmp.lt.u32.totalorder %s695_s4, %s1020_s12 }
  0x5e   : > { %p698_p12 = pnand %p697_p9, %p696_p7 }
  0x5f   : > { %p703_p10 = por %p702_p6, %p701_p4 }
  0x60   : > { %p699_p1 = pneg %p698_p12 }
  0x61   : > { %p705_p13 = por %p704_p11, %p703_p10 }
  0x63   : > { %p706_p0 = pnand %p705_p13, %p699_p1 }
  0x65   : > { %709 = shalt.err (!%p706_p0)
}
  0x66   : > { %s710_s21 = scalar_lea.vmem %s1022_s8, 1024  ;;  %s835_s29 = smov [#allocation7]  }
  0x67   : > { %p711_p5 = scmp.ne.s32.totalorder %s1022_s8, %s710_s21  ;;  %s715_s5 = sshll.u32 %s835_s29, 4  ;;  %s716_s5 = int_to_ptr.vmem [resolvable:$false] %s715_s5 }
  0x68   : > { %s717_s7 = scalar_lea.vmem %s716_s5, 2048  ;;  %p718_p7 = scmp.lt.s32.totalorder %s1022_s8, %s716_s5 }
  0x69   : > { %p713_p3 = pnand %p711_p5, %p697_p9  ;;  %p719_p12 = scmp.lt.s32.totalorder %s717_s7, %s710_s21 }
  0x6b   : > { %p714_p2 = pneg %p713_p3  ;;  %p720_p4 = por %p719_p12, %p718_p7 }
  0x6d   : > { %p721_p6 = pnand %p720_p4, %p714_p2 }
  0x6f   : > { %724 = shalt.err (!%p721_p6)
}
  0x70   : > { %s836_s9 = smov 64   ;;  %s837_s23 = smov 4  }
  0x71   : > { %558 = dma.hbm_to_vmem [thread:$0]  (!%p1251_p8), %s1020_s12, 1024, %s1022_s8, %s1029_s28, %s836_s9, %s836_s9, %s837_s23  }
  0x72   : > { %p1252_p9 = scmp.ne.s32.totalorder %s1244_s27, 0 }
  0x73   : > { %p1253_p1 = scmp.eq.s32.totalorder (!%p1252_p9), %s902_s20, 0 }
  0x74   : > { %194 = sbr.rel (%p1252_p9) target bundleno = 167 (0xa7), region = 32 }
  0x7b   : > { %786 = dma.done.wait (%p1253_p1), [#allocation3], 16   ;;  %p1254_p10 = pmov %p1253_p1 }
  0x7c   : > { %p1255_p11 = pmov %p1253_p1 }
  0x7d   : > { %788 = vsyncadd (%p1254_p10), [#allocation3], 4294967280 }
  0x7e   : > { %790 = dma.done.wait (%p1255_p11), [#allocation6], 16   ;;  %p1256_p13 = pmov %p1253_p1 }
  0x7f   : > { %s204_s30 = sand.u32 1, %s902_s20   ;;  %s1069_s12 = sand.u32 1, %s807_s13  }
  0x80   : > { %792 = vsyncadd (%p1256_p13), [#allocation6], 4294967280  ;;  %s484_s27 = sshll.u32 %s1069_s12, 6  ;;  %s205_s8 = scalar_lea.sflag [#allocation3], %s204_s30 }
  0x81   : > { %s1072_s28 = scalar_lea.vmem [#allocation7], %s484_s27  ;;  %p1257_p8 = scmp.ne.s32.totalorder %s1240_s24, 0 }
  0x83   : > { %794 = dma.done.wait (%p1257_p8), %s205_s8, 1024  }
  0x84   : > { %796 = vsyncadd (%p1257_p8), %s205_s8, 4294966272  ;;  %v498_v0 = vld [vmem:[%s1072_s28] sm:$0xff]   ;;  %v1079_v1 = vld [vmem:[#allocation2] ss:$0 sm:$0xff]  ;;  %vm327_vm0 = vcmask 31744   ;;  %s485_s20 = sshll.u32 %s1069_s12, 7 }
  0x85   : > { %v499_v2 = vunpack.c.l.bf16 %v498_v0  ;;  %v500_v3 = vunpack.c.h.bf16 %v498_v0  ;;  %v529_v4 = vld [vmem:[%s1072_s28 + $0x8] sm:$0xff]   ;;  %v530_v5 = vld [vmem:[%s1072_s28 + $0x10] sm:$0xff]   ;;  %v531_v6 = vld [vmem:[%s1072_s28 + $0x18] sm:$0xff]   ;;  %s496_s24 = sshll.u32 %s815_s15, 4  ;;  %s491_s4 = sshll.u32 %s819_s16, 5 }
  0x86   : > { %v1084_v7 = vld [vmem:[#allocation5] ss:$0 sm:$0xff]  ;;  %v503_v8 = vunpack.c.l.bf16 %v529_v4  ;;  %v504_v9 = vunpack.c.h.bf16 %v529_v4  ;;  %v507_v10 = vunpack.c.l.bf16 %v530_v5  ;;  %v508_v11 = vunpack.c.h.bf16 %v530_v5  ;;  %v532_v28 = vld [vmem:[%s1072_s28 + $0x20] sm:$0xff]   ;;  %v533_v33 = vld [vmem:[%s1072_s28 + $0x28] sm:$0xff]   ;;  %s1111_s1 = scalar_lea.vmem [#allocation8], %s485_s20  ;;  %s1131_s15 = sadd.s32 %s496_s24, %s491_s4 }
  0x87   : > { %v272_v12 = vmul.f32 %v499_v2, %v1079_v1  ;;  %v273_v13 = vmul.f32 %v500_v3, %v1079_v1  ;;  %v511_v14 = vunpack.c.l.bf16 %v531_v6  ;;  %v512_v15 = vunpack.c.h.bf16 %v531_v6  ;;  %v534_v34 = vld [vmem:[%s1072_s28 + $0x30] sm:$0xff]   ;;  %v535_v39 = vld [vmem:[%s1072_s28 + $0x38] sm:$0xff]   ;;  %s361_s16 = sshll.u32 %s1111_s1, 4  ;;  %s492_s22 = sshll.u32 %s1131_s15, 7  ;;  %s1149_s16 = int_to_ptr.vmem [resolvable:$true] %s361_s16 }
  0x88   : > { %v274_v16 = vmul.f32 %v503_v8, %v1079_v1  ;;  %v275_v17 = vmul.f32 %v504_v9, %v1079_v1  ;;  %v276_v18 = vmul.f32 %v507_v10, %v1079_v1  ;;  %v277_v19 = vmul.f32 %v508_v11, %v1079_v1  ;;  %s1158_s6 = scalar_lea.hbm %s1227_s3, %s492_s22  ;;  %s345_s21 = scalar_lea.sflag [#allocation4], %s1069_s12 }
  0x89   : > { %v295_v20 = vadd.f32 %v1084_v7, %v272_v12  ;;  %v296_v21 = vadd.f32 %v1084_v7, %v273_v13  ;;  %v278_v22 = vmul.f32 %v511_v14, %v1079_v1  ;;  %v279_v23 = vmul.f32 %v512_v15, %v1079_v1  ;;  %s725_s29 = scalar_lea.vmem %s1149_s16, 2048  ;;  %p1258_p5 = scmp.ne.s32.totalorder %s1241_s25, 0 }
  0x8a   : > { %v297_v24 = vadd.f32 %v1084_v7, %v274_v16  ;;  %v298_v25 = vadd.f32 %v1084_v7, %v275_v17  ;;  %v299_v26 = vadd.f32 %v1084_v7, %v276_v18  ;;  %v300_v27 = vadd.f32 %v1084_v7, %v277_v19  ;;  %p726_p0 = scmp.ne.s32.totalorder %s1149_s16, %s725_s29  ;;  %s838_s5 = smov [#allocation8]  }
  0x8b   : > { %v311_v29 = vmax.f32 %v295_v20, 0.0  ;;  %v312_v30 = vmax.f32 %v296_v21, 0.0  ;;  %v301_v31 = vadd.f32 %v1084_v7, %v278_v22  ;;  %v302_v32 = vadd.f32 %v1084_v7, %v279_v23  ;;  %s729_s7 = sshll.u32 %s838_s5, 4  ;;  %s730_s7 = int_to_ptr.vmem [resolvable:$false] %s729_s7 }
  0x8c   : > { %v313_v35 = vmax.f32 %v297_v24, 0.0  ;;  %v314_v36 = vmax.f32 %v298_v25, 0.0  ;;  %v315_v37 = vmax.f32 %v299_v26, 0.0  ;;  %v316_v38 = vmax.f32 %v300_v27, 0.0  ;;  %p727_p3 = pnand %p726_p0, %p1258_p5  ;;  %s731_s9 = scalar_lea.vmem %s730_s7, 4096 }
  0x8d   : > { %328 = vst.msk [vmem:[%s1111_s1] sm:$0xff] %vm327_vm0, %v311_v29  ;;  %329 = vst.msk [vmem:[%s1111_s1 + $0x8] sm:$0xff] %vm327_vm0, %v312_v30  ;;  %v317_v40 = vmax.f32 %v301_v31, 0.0  ;;  %v318_v41 = vmax.f32 %v302_v32, 0.0  ;;  %v515_v42 = vunpack.c.l.bf16 %v532_v28  ;;  %v516_v43 = vunpack.c.h.bf16 %v532_v28  ;;  %p732_p7 = scmp.lt.s32.totalorder %s1149_s16, %s730_s7  ;;  %p733_p12 = scmp.lt.s32.totalorder %s731_s9, %s725_s29 }
  0x8e   : > { %330 = vst.msk [vmem:[%s1111_s1 + $0x10] sm:$0xff] %vm327_vm0, %v313_v35  ;;  %331 = vst.msk [vmem:[%s1111_s1 + $0x18] sm:$0xff] %vm327_vm0, %v314_v36  ;;  %v519_v44 = vunpack.c.l.bf16 %v533_v33  ;;  %v520_v45 = vunpack.c.h.bf16 %v533_v33  ;;  %v523_v46 = vunpack.c.l.bf16 %v534_v34  ;;  %v524_v47 = vunpack.c.h.bf16 %v534_v34  ;;  %p728_p2 = pneg %p727_p3 }
  0x8f   : > { %332 = vst.msk [vmem:[%s1111_s1 + $0x20] sm:$0xff] %vm327_vm0, %v315_v37  ;;  %333 = vst.msk [vmem:[%s1111_s1 + $0x28] sm:$0xff] %vm327_vm0, %v316_v38  ;;  %v280_v48 = vmul.f32 %v515_v42, %v1079_v1  ;;  %v281_v49 = vmul.f32 %v516_v43, %v1079_v1  ;;  %v527_v50 = vunpack.c.l.bf16 %v535_v39  ;;  %v528_v51 = vunpack.c.h.bf16 %v535_v39  ;;  %p734_p4 = por %p733_p12, %p732_p7 }
  0x90   : > { %334 = vst.msk [vmem:[%s1111_s1 + $0x30] sm:$0xff] %vm327_vm0, %v317_v40  ;;  %335 = vst.msk [vmem:[%s1111_s1 + $0x38] sm:$0xff] %vm327_vm0, %v318_v41  ;;  %v282_v52 = vmul.f32 %v519_v44, %v1079_v1  ;;  %v283_v53 = vmul.f32 %v520_v45, %v1079_v1  ;;  %v284_v54 = vmul.f32 %v523_v46, %v1079_v1 }
  0x91   : > { %v285_v55 = vmul.f32 %v524_v47, %v1079_v1  ;;  %v303_v56 = vadd.f32 %v1084_v7, %v280_v48  ;;  %v304_v57 = vadd.f32 %v1084_v7, %v281_v49  ;;  %v286_v58 = vmul.f32 %v527_v50, %v1079_v1  ;;  %p735_p6 = pnand %p734_p4, %p728_p2 }
  0x92   : > { %v287_v59 = vmul.f32 %v528_v51, %v1079_v1  ;;  %v305_v60 = vadd.f32 %v1084_v7, %v282_v52  ;;  %v306_v61 = vadd.f32 %v1084_v7, %v283_v53  ;;  %v307_v62 = vadd.f32 %v1084_v7, %v284_v54 }
  0x93   : > { %v308_v63 = vadd.f32 %v1084_v7, %v285_v55  ;;  %v319_v0 = vmax.f32 %v303_v56, 0.0  ;;  %v320_v2 = vmax.f32 %v304_v57, 0.0  ;;  %v309_v1 = vadd.f32 %v1084_v7, %v286_v58 }
  0x94   : > { %v310_v3 = vadd.f32 %v1084_v7, %v287_v59  ;;  %v321_v4 = vmax.f32 %v305_v60, 0.0  ;;  %v322_v5 = vmax.f32 %v306_v61, 0.0  ;;  %v323_v6 = vmax.f32 %v307_v62, 0.0 }
  0x95   : > { %v324_v8 = vmax.f32 %v308_v63, 0.0  ;;  %336 = vst.msk [vmem:[%s1111_s1 + $0x40] sm:$0xff] %vm327_vm0, %v319_v0  ;;  %337 = vst.msk [vmem:[%s1111_s1 + $0x48] sm:$0xff] %vm327_vm0, %v320_v2  ;;  %v325_v9 = vmax.f32 %v309_v1, 0.0 }
  0x96   : > { %v326_v10 = vmax.f32 %v310_v3, 0.0  ;;  %338 = vst.msk [vmem:[%s1111_s1 + $0x50] sm:$0xff] %vm327_vm0, %v321_v4  ;;  %339 = vst.msk [vmem:[%s1111_s1 + $0x58] sm:$0xff] %vm327_vm0, %v322_v5 }
  0x97   : > { %340 = vst.msk [vmem:[%s1111_s1 + $0x60] sm:$0xff] %vm327_vm0, %v323_v6  ;;  %341 = vst.msk [vmem:[%s1111_s1 + $0x68] sm:$0xff] %vm327_vm0, %v324_v8 }
  0x98   : > { %342 = vst.msk [vmem:[%s1111_s1 + $0x70] sm:$0xff] %vm327_vm0, %v325_v9  ;;  %343 = vst.msk [vmem:[%s1111_s1 + $0x78] sm:$0xff] %vm327_vm0, %v326_v10 }
  0x99   : > { %738 = shalt.err (!%p735_p6)
}
  0x9a   : > { %s739_s23 = scalar_lea.hbm %s1158_s6, 2048  ;;  %s743_s8 = scalar_lea.hbm %s1227_s3, 8192 }
  0x9b   : > { %p740_p9 = scmp.ne.s32.totalorder %s1158_s6, %s739_s23  ;;  %p744_p11 = scmp.lt.u32.totalorder %s1158_s6, %s1227_s3 }
  0x9c   : > { %p745_p13 = scmp.lt.u32.totalorder %s743_s8, %s739_s23  ;;  %p747_p0 = scmp.lt.u32.totalorder %s739_s23, %s1158_s6 }
  0x9d   : > { %p741_p1 = pnand %p740_p9, %p1258_p5 }
  0x9e   : > { %p746_p8 = por %p745_p13, %p744_p11 }
  0x9f   : > { %p742_p10 = pneg %p741_p1 }
  0xa0   : > { %p748_p3 = por %p747_p0, %p746_p8 }
  0xa2   : > { %p749_p2 = pnand %p748_p3, %p742_p10 }
  0xa4   : > { %752 = shalt.err (!%p749_p2)
}
  0xa5   : > { %s839_s24 = smov 128   ;;  %s840_s4 = smov 8  }
  0xa6   : > { %546 = dma.vmem_to_hbm [thread:$0]  (%p1258_p5), %s1149_s16, 2048, %s1158_s6, %s345_s21, %s839_s24, %s839_s24, %s840_s4  }
  0xa7 PF: > { %s1259_s1 = sld [smem:[#allocation13_spill]]  ;;  %s1260_s15 = sld [smem:[#allocation14_spill]] }
  0xa8   : > { %p568_p7 = scmp.ge.s32.totalorder %s831_s19, 2 }
  0xad   : > { %s376_s22 = sand.u32 1, %s1259_s1   ;;  %p1261_p12 = scmp.ne.s32.totalorder %s1260_s15, 0 }
  0xae   : > { %s377_s26 = scalar_lea.sflag [#allocation4], %s376_s22 }
  0xaf   : > { %p560_p4 = pnand %p568_p7, %p1261_p12 }
  0xb1   : > { %798 = dma.done.wait (!%p560_p4), %s377_s26, 2048  }
  0xb2   : > { %800 = vsyncadd (!%p560_p4), %s377_s26, 4294965248  ;;  %s18_s19 = sadd.s32 1, %s831_s19   ;;  %s1262_s25 = sld [smem:[#allocation15_spill]] }
  0xb3   : > { %p15_p6 = scmp.ge.s32.totalorder %s18_s19, 6   ;;  %s1263_s12 = smov %s807_s13 }
  0xb4   : > { %s1264_s13 = smov %s811_s14  ;;  %s1265_s14 = smov %s1027_s10 }
  0xb5   : > { %s1266_s15 = smov %s823_s17  ;;  %s1267_s16 = smov %s827_s18 }
  0xb6   : > { %s1269_s18 = smov %s1275_s11  ;;  %17 = sbr.rel (!%p15_p6) target bundleno = 10 (0xa), region = 84 }
  0xb8   : > { %s1268_s17 = smov %s1262_s25 }
  0xbd   :  { %382 = vsyncpa [#allocation3], 1 }
  0xbe   :  { %384 = vsyncpa [#allocation3 + $0x1], 1 }
  0xbf   :  { %385 = vsyncpa [#allocation6], 1 }
  0xc0   :  { %386 = vsyncpa [#allocation4], 1 }
  0xc1   :  { %388 = vsyncpa [#allocation4 + $0x1], 1 }

// kernel: up_forward.3
= control target key start
LH: loop header
LB: loop body
LE: loop exit
PB: predicated region body
PF: predicated region fallthrough
CT: control target
= control target key end

     0   :  { %s4713_s0 = inlined_call_operand.hbm [shape: bf16[3,3,8,4], index: 0, kind: input, shape index: {}]   ;;  %s4714_s1 = inlined_call_operand.hbm [shape: bf16[2,16,16,8], index: 1, kind: input, shape index: {}, may-alias: {1,2,3}]   ;;  %s4715_s2 = inlined_call_operand.hbm [shape: bf16[2,16,16,8], index: 2, kind: input, shape index: {}, may-alias: {1,2,3}]   ;;  %s4716_s3 = inlined_call_operand.hbm [shape: bf16[2,16,16,8], index: 3, kind: input, shape index: {}, may-alias: {1,2,3}]   ;;  %s4717_s4 = inlined_call_operand.hbm [shape: bf16[2,16,16,4], index: 4, kind: output, shape index: {0}]   ;;  %s4718_s5 = inlined_call_operand.hbm [shape: f32[2,2,1,4], index: 5, kind: output, shape index: {1}]   ;;  %s4719_s6 = inlined_call_operand.hbm [shape: f32[2,2,1,4], index: 6, kind: output, shape index: {2}]  }
   0x1   :  { %4746 = sst [smem:[#allocation32_spill]] %s4713_s0 }
   0x2   :  { %4747 = sst [smem:[#allocation33_spill]] %s4714_s1 }
   0x3   :  { %4748 = sst [smem:[#allocation34_spill]] %s4715_s2 }
   0x4   :  { %4749 = sst [smem:[#allocation35_spill]] %s4716_s3 }
   0x5   :  { %4750 = sst [smem:[#allocation36_spill]] %s4717_s4 }
   0x6   :  { %4751 = sst [smem:[#allocation37_spill]] %s4718_s5 }
   0x7   :  { %4752 = sst [smem:[#allocation38_spill]] %s4719_s6 }
   0x8   :  { %12 = vsyncpa [#allocation3], 0 }
   0x9   :  { %13 = vsyncpa [#allocation6], 0 }
   0xa   :  { %15 = vsyncpa [#allocation6 + $0x1], 0 }
   0xb   :  { %16 = vsyncpa [#allocation9], 0 }
   0xc   :  { %18 = vsyncpa [#allocation9 + $0x1], 0 }
   0xd   :  { %19 = vsyncpa [#allocation4], 0 }
   0xe   :  { %21 = vsyncpa [#allocation4 + $0x1], 0 }
   0xf   :  { %22 = vsyncpa [#allocation12], 0 }
  0x10   :  { %24 = vsyncpa [#allocation12 + $0x1], 0  ;;  %s3574_s21 = smov 0   ;;  %s3576_s22 = smov 0  }
  0x11   :  { %s3578_s23 = smov 0   ;;  %s3580_s24 = smov 0  }
  0x12   :  { %s3582_s25 = smov 0   ;;  %s3584_s26 = smov 0  }
  0x13   :  { %s3586_s27 = smov 0   ;;  %s3588_s28 = smov 0  }
  0x14   :  { %s3590_s29 = smov 0   ;;  %s3592_s30 = smov 0  }
  0x15   :  { %s3594_s7 = smov 0   ;;  %s3596_s8 = smov 0  }
  0x16   :  { %s3598_s9 = smov 0   ;;  %s3600_s10 = smov 0  }
  0x17 LB: > { %4753 = sst [smem:[#allocation20_spill]] %s3474_s21  ;;  %s39_s11 = sadd.s32 1, %s3518_s8  ;;  %s3526_s10 = sphi %s3600_s10, %s30_s10   ;;  %s3522_s9 = sphi %s3598_s9, %s4831_s9   ;;  %s3518_s8 = sphi %s3596_s8, %s4830_s8   ;;  %s3514_s7 = sphi %s3594_s7, %s4829_s7   ;;  %s3510_s30 = sphi %s3592_s30, %s4840_s30   ;;  %s3506_s29 = sphi %s3590_s29, %s4827_s29   ;;  %s3502_s28 = sphi %s3588_s28, %s4839_s28   ;;  %s3498_s27 = sphi %s3586_s27, %s4838_s27   ;;  %s3494_s26 = sphi %s3584_s26, %s4825_s26   ;;  %s3490_s25 = sphi %s3582_s25, %s4837_s25   ;;  %s3486_s24 = sphi %s3580_s24, %s4836_s24   ;;  %s3482_s23 = sphi %s3578_s23, %s4835_s23   ;;  %s3478_s22 = sphi %s3576_s22, %s4834_s22   ;;  %s3474_s21 = sphi %s3574_s21, %s4833_s21  }
  0x18   : > { %4754 = sst [smem:[#allocation21_spill]] %s3494_s26  ;;  %s42_s12 = sadd.s32 1, %s3522_s9 }
  0x19   : > { %4755 = sst [smem:[#allocation22_spill]] %s3506_s29  ;;  %p40_p0 = scmp.ge.s32.totalorder %s39_s11, 2 }
  0x1a   : > { %4756 = sst [smem:[#allocation23_spill]] %s3510_s30  ;;  %s4721_s13 = sshll.u32 %s3518_s8, 3 }
  0x1b   : > { %4757 = sst [smem:[#allocation24_spill]] %s3514_s7  ;;  %s2481_s14 = sadd.s32 4294967295, %s4721_s13 }
  0x1c   : > { %4758 = sst [smem:[#allocation25_spill]] %s3518_s8  ;;  %s80_s15 = sadd.s32 1, %s3506_s29 }
  0x1d   : > { %4759 = sst [smem:[#allocation26_spill]] %s3522_s9  ;;  %s4842_s11 = smov (%p40_p0, %s39_s11), 0 }
  0x1e   : > { %4760 = sst [smem:[#allocation27_spill]] %s4842_s11  ;;  %s4844_s12 = smov (!%p40_p0, %s42_s12), %s3522_s9 }
  0x1f   : > { %p69_p1 = scmp.gt.s32.totalorder %s2481_s14, 0  ;;  %s4720_s16 = sshll.u32 %s4842_s11, 3 }
  0x20   : > { %p44_p2 = scmp.ge.s32.totalorder %s4844_s12, 2  ;;  %s2483_s17 = sadd.s32 4294967295, %s4720_s16 }
  0x21   : > { %s4846_s14 = smov (!%p69_p1, %s2481_s14), 0  ;;  %p73_p3 = scmp.gt.s32.totalorder %s2483_s17, 0 }
  0x22   : > { %s4848_s12 = smov (%p44_p2, %s4844_s12), 0  ;;  %p87_p4 = scmp.ne.s32.totalorder %s3506_s29, %s3502_s28 }
  0x23   : > { %4761 = sst [smem:[#allocation28_spill]] %s4848_s12  ;;  %s3662_s18 = ssub.s32 %s3522_s9, %s4848_s12 }
  0x24   : > { %p4730_p5 = scmp.eq.s32.totalorder %s3526_s10, 0  ;;  %s4850_s17 = smov (!%p73_p3, %s2483_s17), 0 }
  0x25   : > { %p93_p7 = scmp.ne.s32.totalorder %s3502_s28, %s3498_s27  ;;  %s76_s20 = ssub.s32 %s4846_s14, %s4850_s17 }
  0x26   : > { %p3667_p6 = por %p4730_p5, %p87_p4  ;;  %s104_s16 = ssub.s32 %s3518_s8, %s4842_s11 }
  0x27   : > { %s77_s13 = sor.u32 %s76_s20, %s3662_s18  ;;  %s3677_s6 = sor.u32 %s104_s16, %s3662_s18 }
  0x28   : > { %p78_p8 = scmp.eq.s32.totalorder %s77_s13, 0  ;;  %p4729_p10 = scmp.lt.s32.totalorder %s3526_s10, 4 }
  0x29   : > { %s278_s5 = sand.u32 1, %s3526_s10   ;;  %s280_s4 = sand.u32 1, %s3506_s29  }
  0x2a   : > { %s3681_s12 = scalar_select %p78_p8, %s3506_s29, %s80_s15  }
  0x2b   : > { %s2489_s7 = sshll.u32 %s280_s4, 3  ;;  %s2492_s30 = sshll.u32 %s4846_s14, 1 }
  0x2c   : > { %4763 = sst [smem:[#allocation29_spill]] %s3681_s12  ;;  %s3687_s3 = sshll.u32 %s3522_s9, 5 }
  0x2d   : > { %s282_s17 = scalar_lea.vmem [#allocation5], %s2489_s7  ;;  %s292_s20 = sadd.s32 %s3687_s3, %s2492_s30 }
  0x2e   : > { %s295_s21 = sshll.u32 %s282_s17, 4  ;;  %s2494_s16 = sshll.u32 %s292_s20, 6  ;;  %s3690_s21 = int_to_ptr.vmem [resolvable:$true] %s295_s21 }
  0x2f   : > { %p3696_p11 = pnand %p4729_p10, %p3667_p6  ;;  %s4765_s1 = sld [smem:[#allocation33_spill]] }
  0x30   : > { %s3705_s30 = scalar_lea.sflag [#allocation6], %s278_s5 }
  0x31   : > { %p3192_p13 = pneg %p3696_p11 }
  0x35   : > { %s3703_s4 = scalar_lea.hbm %s4765_s1, %s2494_s16  ;;  %s3195_s19 = scalar_lea.hbm %s4765_s1, 4096 }
  0x36   : > { %s3190_s7 = scalar_lea.hbm %s3703_s4, 128  ;;  %p3196_p2 = scmp.lt.u32.totalorder %s3703_s4, %s4765_s1 }
  0x37   : > { %p3191_p12 = scmp.ne.s32.totalorder %s3703_s4, %s3190_s7  ;;  %p3197_p3 = scmp.lt.u32.totalorder %s3195_s19, %s3190_s7 }
  0x38   : > { %p3199_p6 = scmp.lt.u32.totalorder %s3190_s7, %s3703_s4 }
  0x39   : > { %p3193_p0 = pnand %p3192_p13, %p3191_p12  ;;  %p3198_p4 = por %p3197_p3, %p3196_p2 }
  0x3b   : > { %p3194_p1 = pneg %p3193_p0  ;;  %p3200_p8 = por %p3199_p6, %p3198_p4 }
  0x3d   : > { %p3201_p10 = pnand %p3200_p8, %p3194_p1 }
  0x3f   : > { %3204 = shalt.err (!%p3201_p10)
}
  0x40   : > { %s3205_s5 = scalar_lea.vmem %s3690_s21, 128  ;;  %s3528_s16 = smov [#allocation5]  }
  0x41   : > { %p3206_p12 = scmp.ne.s32.totalorder %s3690_s21, %s3205_s5  ;;  %s3210_s15 = sshll.u32 %s3528_s16, 4  ;;  %s3211_s15 = int_to_ptr.vmem [resolvable:$false] %s3210_s15 }
  0x42   : > { %s3212_s14 = scalar_lea.vmem %s3211_s15, 256  ;;  %p3213_p9 = scmp.lt.s32.totalorder %s3690_s21, %s3211_s15 }
  0x43   : > { %p3208_p0 = pnand %p3206_p12, %p3192_p13  ;;  %p3214_p2 = scmp.lt.s32.totalorder %s3212_s14, %s3205_s5 }
  0x45   : > { %p3209_p5 = pneg %p3208_p0  ;;  %p3215_p3 = por %p3214_p2, %p3213_p9 }
  0x47   : > { %p3216_p4 = pnand %p3215_p3, %p3209_p5 }
  0x49   : > { %3219 = shalt.err (!%p3216_p4)
}
  0x4a   : > { %s4731_s7 = smov 64   ;;  %s4733_s12 = smov 4  }
  0x4b   : > { %3052 = dma.hbm_to_vmem [thread:$0]  (!%p3696_p11), %s3703_s4, 128, %s3690_s21, %s3705_s30, %s4731_s7, %s4731_s7, %s4733_s12  }
  0x4c   : > { %s3737_s19 = sadd.s32 4294967295, %s3526_s10   ;;  %p2486_p5 = scmp.ge.s32.totalorder %s3526_s10, 1 }
  0x4d   : > { %p4735_p9 = scmp.eq.s32.totalorder %s3737_s19, 0  ;;  %p252_p13 = scmp.lt.s32.totalorder %s3526_s10, 5 }
  0x4e   : > { %s3531_s21 = smov [#allocation2]   ;;  %s108_s5 = sadd.s32 1, %s3494_s26 }
  0x4f   : > { %p3748_p1 = por %p4735_p9, %p93_p7  ;;  %p3752_p6 = pnand %p2486_p5, %p252_p13 }
  0x50   : > { %s264_s4 = sshll.u32 %s3531_s21, 4  ;;  %s4769_s0 = sld [smem:[#allocation32_spill]]  ;;  %s265_s4 = int_to_ptr.vmem [resolvable:$true] %s264_s4 }
  0x51   : > { %s4766_s17 = scalar_select %p3748_p1, 1, 0 }
  0x52   : > { %s4767_s13 = scalar_select %p3752_p6, 1, 0 }
  0x53   : > { %p3045_p11 = pneg %p3752_p6 }
  0x55   : > { %p3760_p8 = pnand %p3045_p11, %p4735_p9 }
  0x56   : > { %s3220_s14 = scalar_lea.hbm %s4769_s0, 576 }
  0x57   : > { %p3221_p7 = scmp.ne.s32.totalorder %s4769_s0, %s3220_s14  ;;  %p3222_p12 = pneg %p3760_p8 }
  0x58   : > { %p3227_p3 = scmp.lt.u32.totalorder %s3220_s14, %s4769_s0 }
  0x59   : > { %p3223_p0 = pnand %p3222_p12, %p3221_p7 }
  0x5b   : > { %p3224_p2 = pneg %p3223_p0 }
  0x5d   : > { %p3229_p4 = pnand %p3227_p3, %p3224_p2 }
  0x5f   : > { %3232 = shalt.err (!%p3229_p4)
}
  0x60   : > { %s3233_s27 = scalar_lea.vmem %s265_s4, 576  ;;  %p3241_p10 = scmp.lt.s32.totalorder %s265_s4, %s265_s4 }
  0x61   : > { %p3234_p5 = scmp.ne.s32.totalorder %s265_s4, %s3233_s27  ;;  %p3242_p9 = scmp.lt.s32.totalorder %s3233_s27, %s3233_s27 }
  0x63   : > { %p3236_p13 = pnand %p3234_p5, %p3222_p12  ;;  %p3243_p1 = por %p3242_p9, %p3241_p10 }
  0x65   : > { %p3237_p11 = pneg %p3236_p13 }
  0x67   : > { %p3244_p6 = pnand %p3243_p1, %p3237_p11 }
  0x69   : > { %3247 = shalt.err (!%p3244_p6)
}
  0x6a   : > { %s4770_s7 = smov 4   ;;  %s4771_s12 = smov 64  }
  0x6b   : > { %3048 = dma.hbm_to_vmem [thread:$0]  (!%p3760_p8), %s4769_s0, 576, %s265_s4, [#allocation3], %s4771_s12, %s4771_s12, %s4770_s7  }
  0x6c   : > { %p4772_p9 = scmp.eq.s32.totalorder %s3677_s6, 0  ;;  %p115_p10 = scmp.ne.s32.totalorder %s3494_s26, %s3490_s25 }
  0x6d   : > { %p121_p1 = scmp.ne.s32.totalorder %s3490_s25, %s3486_s24  ;;  %s4774_s20 = sadd.s32 4294967294, %s3526_s10  }
  0x6e   : > { %s3788_s1 = scalar_select %p4772_p9, %s3494_s26, %s108_s5  }
  0x6f   : > { %p189_p6 = scmp.eq.s32.totalorder %s4774_s20, 3  ;;  %s307_s27 = sand.u32 1, %s3494_s26  }
  0x70   : > { %4773 = sst [smem:[#allocation30_spill]] %s3788_s1  ;;  %p4775_p7 = scmp.eq.s32.totalorder %s3526_s10, 0 }
  0x71   : > { %p4776_p0 = scmp.eq.s32.totalorder %s3737_s19, 0  ;;  %p4778_p3 = scmp.eq.s32.totalorder %s3737_s19, 3 }
  0x72   : > { %p117_p12 = por %p115_p10, %p4775_p7  ;;  %p3811_p8 = por %p189_p6, %p121_p1 }
  0x73   : > { %p3801_p2 = por %p121_p1, %p4776_p0  ;;  %p3807_p4 = por %p4778_p3, %p115_p10 }
  0x74   : > { %s4780_s6 = scalar_select %p3811_p8, 1, 0 }
  0x75   : > { %s4779_s21 = scalar_select %p3807_p4, 1, 0 }
  0x76   : > { %4781 = sst [smem:[#allocation31_spill]] %s4780_s6  ;;  %s2495_s4 = sshll.u32 %s307_s27, 6 }
  0x77   : > { %s2626_s5 = sshll.u32 %s3518_s8, 4  ;;  %s309_s20 = scalar_lea.vmem [#allocation7], %s2495_s4 }
  0x78   : > { %s316_s16 = sadd.s32 %s2626_s5, %s3687_s3  ;;  %s319_s0 = sshll.u32 %s309_s20, 4  ;;  %s3822_s0 = int_to_ptr.vmem [resolvable:$true] %s319_s0 }
  0x79   : > { %s2499_s15 = sshll.u32 %s316_s16, 6  ;;  %s4782_s2 = sld [smem:[#allocation34_spill]] }
  0x7a   : > { %p4783_p5 = scmp.lt.s32.totalorder %s3526_s10, 4 }
  0x7c   : > { %p3826_p13 = pnand %p4783_p5, %p117_p12 }
  0x7e   : > { %p3250_p9 = pneg %p3826_p13 }
  0x7f   : > { %s3820_s1 = scalar_lea.hbm %s4782_s2, %s2499_s15  ;;  %s3253_s4 = scalar_lea.hbm %s4782_s2, 4096 }
  0x80   : > { %s3248_s27 = scalar_lea.hbm %s3820_s1, 1024  ;;  %p3254_p6 = scmp.lt.u32.totalorder %s3820_s1, %s4782_s2 }
  0x81   : > { %p3249_p11 = scmp.ne.s32.totalorder %s3820_s1, %s3248_s27  ;;  %p3255_p7 = scmp.lt.u32.totalorder %s3253_s4, %s3248_s27 }
  0x82   : > { %p3257_p0 = scmp.lt.u32.totalorder %s3248_s27, %s3820_s1 }
  0x83   : > { %p3251_p10 = pnand %p3250_p9, %p3249_p11  ;;  %p3256_p12 = por %p3255_p7, %p3254_p6 }
  0x85   : > { %p3252_p1 = pneg %p3251_p10  ;;  %p3258_p3 = por %p3257_p0, %p3256_p12 }
  0x87   : > { %p3259_p5 = pnand %p3258_p3, %p3252_p1 }
  0x89   : > { %3262 = shalt.err (!%p3259_p5)
}
  0x8a   : > { %s3263_s15 = scalar_lea.vmem %s3822_s0, 1024  ;;  %s3532_s20 = smov [#allocation7]  }
  0x8b   : > { %p3264_p11 = scmp.ne.s32.totalorder %s3822_s0, %s3263_s15  ;;  %s3268_s29 = sshll.u32 %s3532_s20, 4  ;;  %s3269_s29 = int_to_ptr.vmem [resolvable:$false] %s3268_s29 }
  0x8c   : > { %s3270_s9 = scalar_lea.vmem %s3269_s29, 2048  ;;  %p3271_p4 = scmp.lt.s32.totalorder %s3822_s0, %s3269_s29 }
  0x8d   : > { %p3266_p10 = pnand %p3264_p11, %p3250_p9  ;;  %p3272_p6 = scmp.lt.s32.totalorder %s3270_s9, %s3263_s15 }
  0x8f   : > { %p3267_p8 = pneg %p3266_p10  ;;  %p3273_p7 = por %p3272_p6, %p3271_p4 }
  0x91   : > { %p3274_p12 = pnand %p3273_p7, %p3267_p8 }
  0x93   : > { %3277 = shalt.err (!%p3274_p12)
}
  0x94   : > { %s4785_s27 = sld [smem:[#allocation20_spill]]  ;;  %s4786_s4 = sshll.u32 %s3518_s8, 3 }
  0x95   : > { %3055 = dma.hbm_to_vmem [thread:$0]  (!%p3826_p13), %s3820_s1, 1024, %s3822_s0, %s3705_s30, %s4771_s12, %s4771_s12, %s4770_s7  }
  0x96   : > { %s2623_s26 = sadd.s32 8, %s4786_s4  ;;  %s4787_s5 = sshll.u32 %s4842_s11, 3 }
  0x97   : > { %s2625_s16 = sadd.s32 8, %s4787_s5  ;;  %p133_p4 = scmp.lt.s32.totalorder %s2623_s26, 15 }
  0x98   : > { %p137_p8 = scmp.lt.s32.totalorder %s2625_s16, 15  ;;  %p151_p9 = scmp.ne.s32.totalorder %s3482_s23, %s3478_s22 }
  0x99   : > { %s4852_s26 = smov (!%p133_p4, %s2623_s26), 15  ;;  %s144_s15 = sadd.s32 1, %s3482_s23 }
  0x9a   : > { %s4854_s16 = smov (!%p137_p8, %s2625_s16), 15  ;;  %p157_p1 = scmp.ne.s32.totalorder %s3478_s22, %s4785_s27 }
  0x9b   : > { %s140_s20 = ssub.s32 %s4852_s26, %s4854_s16  ;;  %s329_s29 = sand.u32 1, %s3482_s23  }
  0x9c   : > { %s141_s9 = sor.u32 %s140_s20, %s3662_s18  ;;  %p4788_p0 = scmp.eq.s32.totalorder %s3737_s19, 0 }
  0x9d   : > { %p142_p13 = scmp.eq.s32.totalorder %s141_s9, 0  ;;  %p4790_p5 = scmp.eq.s32.totalorder %s3526_s10, 0 }
  0x9e   : > { %p3872_p3 = por %p157_p1, %p4788_p0  ;;  %s2500_s30 = sshll.u32 %s329_s29, 3 }
  0x9f   : > { %p153_p11 = por %p151_p9, %p4790_p5  ;;  %s2502_s1 = sshll.u32 %s4852_s26, 1 }
  0xa0   : > { %s4789_s0 = scalar_select %p3872_p3, 1, 0 }
  0xa1   : > { %s3879_s4 = scalar_select %p142_p13, %s3482_s23, %s144_s15  }
  0xa2   : > { %s343_s5 = sadd.s32 %s2502_s1, %s3687_s3  ;;  %s333_s11 = scalar_lea.vmem [#allocation8], %s2500_s30 }
  0xa3   : > { %s2504_s2 = sshll.u32 %s343_s5, 6  ;;  %s346_s27 = sshll.u32 %s333_s11, 4  ;;  %s3887_s27 = int_to_ptr.vmem [resolvable:$true] %s346_s27 }
  0xa4   : > { %s4791_s6 = sld [smem:[#allocation35_spill]]  ;;  %p4792_p10 = scmp.lt.s32.totalorder %s3526_s10, 4 }
  0xa5   : > { %s3895_s3 = scalar_lea.sflag [#allocation9], %s329_s29 }
  0xa6   : > { %p3891_p6 = pnand %p4792_p10, %p153_p11 }
  0xa8   : > { %p3280_p12 = pneg %p3891_p6 }
  0xaa   : > { %s3885_s18 = scalar_lea.hbm %s4791_s6, %s2504_s2  ;;  %s3283_s15 = scalar_lea.hbm %s4791_s6, 4096 }
  0xab   : > { %s3278_s11 = scalar_lea.hbm %s3885_s18, 128  ;;  %p3284_p9 = scmp.lt.u32.totalorder %s3885_s18, %s4791_s6 }
  0xac   : > { %p3279_p7 = scmp.ne.s32.totalorder %s3885_s18, %s3278_s11  ;;  %p3285_p1 = scmp.lt.u32.totalorder %s3283_s15, %s3278_s11 }
  0xad   : > { %p3287_p13 = scmp.lt.u32.totalorder %s3278_s11, %s3885_s18 }
  0xae   : > { %p3281_p4 = pnand %p3280_p12, %p3279_p7  ;;  %p3286_p0 = por %p3285_p1, %p3284_p9 }
  0xb0   : > { %p3282_p8 = pneg %p3281_p4  ;;  %p3288_p5 = por %p3287_p13, %p3286_p0 }
  0xb2   : > { %p3289_p11 = pnand %p3288_p5, %p3282_p8 }
  0xb4   : > { %3292 = shalt.err (!%p3289_p11)
}
  0xb5   : > { %s3293_s29 = scalar_lea.vmem %s3887_s27, 128  ;;  %s3533_s30 = smov [#allocation8]  }
  0xb6   : > { %p3294_p10 = scmp.ne.s32.totalorder %s3887_s27, %s3293_s29  ;;  %s3298_s1 = sshll.u32 %s3533_s30, 4  ;;  %s3299_s1 = int_to_ptr.vmem [resolvable:$false] %s3298_s1 }
  0xb7   : > { %s3300_s5 = scalar_lea.vmem %s3299_s1, 256  ;;  %p3301_p3 = scmp.lt.s32.totalorder %s3887_s27, %s3299_s1 }
  0xb8   : > { %p3296_p7 = pnand %p3294_p10, %p3280_p12  ;;  %p3302_p9 = scmp.lt.s32.totalorder %s3300_s5, %s3293_s29 }
  0xba   : > { %p3297_p4 = pneg %p3296_p7  ;;  %p3303_p1 = por %p3302_p9, %p3301_p3 }
  0xbc   : > { %p3304_p0 = pnand %p3303_p1, %p3297_p4 }
  0xbe   : > { %3307 = shalt.err (!%p3304_p0)
}
  0xbf   : > { %3058 = dma.hbm_to_vmem [thread:$0]  (!%p3891_p6), %s3885_s18, 128, %s3887_s27, %s3895_s3, %s4771_s12, %s4771_s12, %s4770_s7  }
  0xc0   : > { %p4794_p12 = scmp.ne.s32.totalorder %s4767_s13, 0 }
  0xc1   : > { %p4795_p8 = scmp.eq.s32.totalorder (!%p4794_p12), %s3737_s19, 0 }
  0xc2   : > { %358 = sbr.rel (%p4794_p12) target bundleno = 679 (0x2a7), region = 36 }
  0xc9   : > { %3449 = dma.done.wait (%p4795_p8), [#allocation3], 576   ;;  %p4796_p13 = pmov %p4795_p8 }
  0xca   : > { %s364_s16 = sand.u32 1, %s3737_s19   ;;  %s366_s26 = sand.u32 1, %s3502_s28  }
  0xcb   : > { %3451 = vsyncadd (%p4796_p13), [#allocation3], 4294966720  ;;  %s3934_s11 = sshll.u32 %s366_s26, 3  ;;  %s365_s7 = scalar_lea.sflag [#allocation6], %s364_s16 }
  0xcc   : > { %s368_s12 = scalar_lea.vmem [#allocation5], %s3934_s11  ;;  %p4797_p3 = scmp.ne.s32.totalorder %s4766_s17, 0 }
  0xce   : > { %3453 = dma.done.wait (%p4797_p3), %s365_s7, 128  }
  0xcf   : > { %3455 = vsyncadd (%p4797_p3), %s365_s7, 4294967168  ;;  %s3944_s13 = sand.u32 1, %s3490_s25  }
  0xd0   : > { %s2508_s27 = sshll.u32 %s3944_s13, 6 }
  0xd1   : > { %s3949_s18 = scalar_lea.vmem [#allocation7], %s2508_s27 }
  0xd2   : > { %3457 = dma.done.wait (%p3801_p2), %s365_s7, 1024  }
  0xd3   : > { %3459 = vsyncadd (%p3801_p2), %s365_s7, 4294966272  ;;  %s382_s3 = sand.u32 1, %s3478_s22   ;;  %p4798_p6 = scmp.ne.s32.totalorder %s4789_s0, 0 }
  0xd4   : > { %s3956_s17 = sshll.u32 %s382_s3, 3  ;;  %s383_s2 = scalar_lea.sflag [#allocation9], %s382_s3 }
  0xd5   : > { %s386_s8 = scalar_lea.vmem [#allocation8], %s3956_s17 }
  0xd6   : > { %3461 = dma.done.wait (%p4798_p6), %s383_s2, 128  }
  0xd7   : > { %3463 = vsyncadd (%p4798_p6), %s383_s2, 4294967168  ;;  %s4799_s15 = sld [smem:[#allocation23_spill]]  ;;  %vm834_vm2 = vcmask 1043456   ;;  %vm687_vm4 = vsmask.f32 256  ;;  %vm686_vm13 = vcmask 1040384  }
  0xd8   : > { %v808_v6 = vld [vmem:[#allocation2 + $0x4] sm:$0xf]  ;;  %v3981_v7 = vld [vmem:[#allocation2 + $0x10] sm:$0xf]  ;;  %v4000_v14 = vld [vmem:[#allocation2] sm:$0xf] }
  0xd9   : > { %v444_v8 = vld [vmem:[%s368_s12] sm:$0xf]  ;;  %3019 = vmatprep.subr.msk.bf16.mxu1 %vm834_vm2, %v808_v6  ;;  %3023 = vmatprep.subr.msk.bf16.mxu0 %vm834_vm2, %v3981_v7  ;;  %v836_v9 = vsel %vm834_vm2, %v808_v6, 0  ;;  %v3991_v10 = vsel %vm834_vm2, %v3981_v7, 0  ;;  %v445_v11 = vld [vmem:[%s368_s12 + $0x4] sm:$0xf] }
  0xda   : > { %2728 = vmatpush3.bf16.msra.mxu1 %v836_v9  ;;  %2800 = vmatpush3.bf16.msra.mxu0 %v3991_v10  ;;  %v446_v15 = vld [vmem:[%s3949_s18] sm:$0xf]  ;;  %v447_v19 = vld [vmem:[%s3949_s18 + $0x4] sm:$0xf]  ;;  %v448_v24 = vld [vmem:[%s3949_s18 + $0x8] sm:$0xf] }
  0xdb   : > { %3020 = vmatprep.subr.msk.bf16.mxu1 %vm834_vm2, %v4000_v14  ;;  %v4015_v21 = vld [vmem:[#allocation2 + $0x14] sm:$0xf]  ;;  %v449_v25 = vld [vmem:[%s3949_s18 + $0xc] sm:$0xf]  ;;  %v450_v31 = vld [vmem:[%s3949_s18 + $0x10] sm:$0xf] }
  0xdc   : > { %3025 = vmatprep.subr.msk.bf16.mxu0 %vm834_vm2, %v4015_v21  ;;  %v451_v33 = vld [vmem:[%s3949_s18 + $0x14] sm:$0xf]  ;;  %v452_v46 = vld [vmem:[%s3949_s18 + $0x18] sm:$0xf]  ;;  %v453_v51 = vld [vmem:[%s3949_s18 + $0x1c] sm:$0xf] }
  0xdd   : > { %s2511_s20 = sshll.u32 %s4799_s15, 3  ;;  %v952_v16 = vsel %vm834_vm2, %v4000_v14, 0  ;;  %s4445_s14 = scalar_lea.vmem [#allocation10], %s2508_s27 }
  0xde   : > { %s2512_s9 = sadd.s32 4294967295, %s2511_s20  ;;  %s4814_s0 = sld [smem:[#allocation24_spill]] }
  0xdf   : > { %v3966_v0 = vstv %s2512_s9  ;;  %s2645_s29 = sshll.u32 %s4799_s15, 4  ;;  %s2240_s26 = sshll.u32 %s4445_s14, 4  ;;  %s4551_s26 = int_to_ptr.vmem [resolvable:$true] %s2240_s26 }
  0xe0   : > { %vm476_vm0 = vcmp.ge.s32.totalorder %v3966_v0, 0  ;;  %vm486_vm1 = vcmp.lt.s32.totalorder %v3966_v0, 16  ;;  %v467_v1 = vadd.s32 1, %v3966_v0  ;;  %v468_v2 = vadd.s32 2, %v3966_v0  ;;  %s4815_s12 = sld [smem:[#allocation36_spill]]  ;;  %s3308_s3 = scalar_lea.vmem %s4551_s26, 1024 }
  0xe1   : > { %v469_v3 = vadd.s32 3, %v3966_v0  ;;  %vm3973_vm3 = vmand %vm476_vm0, %vm486_vm1  ;;  %v470_v17 = vadd.s32 4, %v3966_v0  ;;  %v4030_v26 = vadd.s32 5, %v3966_v0  ;;  %vm710_vm1 = vsmask.f32 7424  ;;  %p3309_p2 = scmp.ne.s32.totalorder %s4551_s26, %s3308_s3  ;;  %p4816_p5 = scmp.ne.s32.totalorder %s4779_s21, 0 }
  0xe2   : > { %vm477_vm5 = vcmp.ge.s32.totalorder %v467_v1, 0  ;;  %vm487_vm6 = vcmp.lt.s32.totalorder %v467_v1, 16  ;;  %vm478_vm8 = vcmp.ge.s32.totalorder %v468_v2, 0  ;;  %vm488_vm9 = vcmp.lt.s32.totalorder %v468_v2, 16  ;;  %s3534_s17 = smov [#allocation10]  }
  0xe3   : > { %vm3977_vm7 = vmand %vm477_vm5, %vm487_vm6  ;;  %vm479_vm10 = vcmp.ge.s32.totalorder %v469_v3, 0  ;;  %vm489_vm11 = vcmp.lt.s32.totalorder %v469_v3, 16  ;;  %v526_v12 = vsel %vm3973_vm3, %v444_v8, 0  ;;  %v527_v13 = vsel %vm3973_vm3, %v445_v11, 0  ;;  %p3310_p11 = pnand %p3309_p2, %p4816_p5  ;;  %s3312_s2 = sshll.u32 %s3534_s17, 4  ;;  %s3313_s2 = int_to_ptr.vmem [resolvable:$false] %s3312_s2 }
  0xe4   : > { %vm4005_vm12 = vmand %vm478_vm8, %vm488_vm9  ;;  %v2513_v18 = vcombine.low %v526_v12, %v527_v13  ;;  %v528_v20 = vsel %vm3977_vm7, %v446_v15, 0  ;;  %v529_v23 = vsel %vm3977_vm7, %v447_v19, 0  ;;  %vm480_vm15 = vcmp.ge.s32.totalorder %v470_v17, 0  ;;  %s2614_s30 = sshll.u32 %s4814_s0, 5  ;;  %p3315_p7 = scmp.lt.s32.totalorder %s4551_s26, %s3313_s2 }
  0xe5   : > { %vm4019_vm14 = vmand %vm479_vm10, %vm489_vm11  ;;  %v2514_v29 = vcombine.low %v528_v20, %v529_v23  ;;  %v530_v30 = vsel %vm4005_vm12, %v448_v24, 0  ;;  %v531_v32 = vsel %vm4005_vm12, %v449_v25, 0  ;;  %vm490_vm0 = vcmp.lt.s32.totalorder %v470_v17, 16  ;;  %v454_v25 = vld [vmem:[%s3949_s18 + $0x20] sm:$0xf]  ;;  %s4524_s1 = sadd.s32 %s2645_s29, %s2614_s30  ;;  %p3311_p10 = pneg %p3310_p11 }
  0xe6   : > { %v597_v27 = vshrl.u32 %v2513_v18, 16  ;;  %v600_v28 = vshll.u32 %v2513_v18, 16  ;;  %v532_v34 = vsel %vm4019_vm14, %v450_v31, 0  ;;  %v2515_v38 = vcombine.low %v530_v30, %v531_v32  ;;  %vm4042_vm3 = vmand %vm686_vm13, %vm687_vm4  ;;  %s2615_s5 = sshll.u32 %s4524_s1, 6 }
  0xe7   : > { %v604_v36 = vshrl.u32 %v2514_v29, 16  ;;  %v607_v37 = vshll.u32 %v2514_v29, 16  ;;  %vm809_vm5 = vcmask 64512   ;;  %v533_v40 = vsel %vm4019_vm14, %v451_v33, 0  ;;  %vm4059_vm4 = vmand %vm480_vm15, %vm490_vm0  ;;  %s4549_s27 = scalar_lea.hbm %s4815_s12, %s2615_s5 }
  0xe8   : > { %v599_v35 = vrot.slane %v597_v27, 7  ;;  %vm481_vm6 = vcmp.ge.s32.totalorder %v4030_v26, 0  ;;  %v4050_v41 = vadd.s32 6, %v3966_v0  ;;  %v611_v45 = vshrl.u32 %v2515_v38, 16  ;;  %v455_v27 = vld [vmem:[%s3949_s18 + $0x24] sm:$0xf] }
  0xe9   : > { %v606_v44 = vrot.slane %v604_v36, 7  ;;  %v614_v49 = vshll.u32 %v2515_v38, 16  ;;  %v2516_v50 = vcombine.low %v532_v34, %v533_v40  ;;  %vm491_vm7 = vcmp.lt.s32.totalorder %v4030_v26, 16  ;;  %v4130_v40 = vld [vmem:[#allocation2 + $0x8] sm:$0xf] }
  0xea   : > { %v602_v42 = vor.u32 %v600_v28, %v599_v35  ;;  %v4054_v43 = vsel %vm4042_vm3, %v599_v35, 0  ;;  %v613_v55 = vrot.slane %v611_v45, 7  ;;  %v534_v59 = vsel %vm4059_vm4, %v452_v46, 0  ;;  %vm4107_vm8 = vmand %vm481_vm6, %vm491_vm7  ;;  %v4137_v45 = vld [vmem:[#allocation2 + $0x18] sm:$0xf] }
  0xeb   : > { %v719_v48 = vshll.u32 %v4054_v43, 16  ;;  %v609_v53 = vor.u32 %v607_v37, %v606_v44  ;;  %v4072_v54 = vsel %vm4042_vm3, %v606_v44, 0  ;;  %v535_v63 = vsel %vm4059_vm4, %v453_v51, 0 }
  0xec   : > { %v4068_v52 = vsel %vm4042_vm3, 0, %v602_v42  ;;  %v731_v58 = vshll.u32 %v4072_v54, 16  ;;  %v616_v61 = vor.u32 %v614_v49, %v613_v55  ;;  %v4085_v62 = vsel %vm4042_vm3, %v613_v55, 0  ;;  %v456_v49 = vld [vmem:[%s3949_s18 + $0x28] sm:$0xf] }
  0xed   : > { %v712_v56 = vshrl.u32 %v4068_v52, 16  ;;  %v714_v57 = vshll.u32 %v4068_v52, 16  ;;  %v4081_v60 = vsel %vm4042_vm3, 0, %v609_v53  ;;  %v721_v2 = vrot.slane %v719_v48, 1  ;;  %v457_v55 = vld [vmem:[%s3949_s18 + $0x2c] sm:$0xf] }
  0xee   : > { %v724_v3 = vshrl.u32 %v4081_v60, 16  ;;  %v726_v4 = vshll.u32 %v4081_v60, 16  ;;  %v733_v5 = vrot.slane %v731_v58, 1  ;;  %v4093_v6 = vsel %vm4042_vm3, 0, %v616_v61 }
  0xef   : > { %v716_v1 = vrot.slane %v714_v57, 1  ;;  %v743_v8 = vshll.u32 %v4085_v62, 16  ;;  %v618_v9 = vshrl.u32 %v2516_v50, 16  ;;  %v736_v13 = vshrl.u32 %v4093_v6, 16 }
  0xf0   : > { %v728_v12 = vrot.slane %v726_v4, 1  ;;  %v738_v15 = vshll.u32 %v4093_v6, 16  ;;  %v621_v18 = vshll.u32 %v2516_v50, 16  ;;  %v2517_v19 = vcombine.low %v534_v59, %v535_v63 }
  0xf1   : > { %v717_v11 = vor.u32 %v716_v1, %v712_v56  ;;  %v620_v17 = vrot.slane %v618_v9, 7  ;;  %v745_v24 = vrot.slane %v743_v8, 1  ;;  %v1498_v34 = vsel %vm834_vm2, %v4015_v21, 0 }
  0xf2   : > { %v729_v22 = vor.u32 %v728_v12, %v724_v3  ;;  %v740_v23 = vrot.slane %v738_v15, 1  ;;  %v625_v30 = vshrl.u32 %v2517_v19, 16  ;;  %v628_v31 = vshll.u32 %v2517_v19, 16  ;;  %v458_v19 = vld [vmem:[%s3949_s18 + $0x30] sm:$0xf] }
  0xf3   : > { %v722_v20 = vsel %vm710_vm1, %v717_v11, %v721_v2  ;;  %v623_v14 = vor.u32 %v621_v18, %v620_v17  ;;  %v4114_v29 = vsel %vm4042_vm3, %v620_v17, 0  ;;  %v536_v37 = vsel %vm4107_vm8, %v454_v25, 0 }
  0xf4   : > { %2729 = vmatprep.mubr.msk.bf16.mxu1 %vm809_vm5, %v722_v20  ;;  %v734_v32 = vsel %vm710_vm1, %v729_v22, %v733_v5  ;;  %v741_v33 = vor.u32 %v740_v23, %v736_v13  ;;  %v755_v26 = vshll.u32 %v4114_v29, 16  ;;  %v627_v36 = vrot.slane %v625_v30, 7  ;;  %v459_v20 = vld [vmem:[%s3949_s18 + $0x34] sm:$0xf] }
  0xf5   : > { %2801 = vmatprep.mubr.msk.bf16.mxu0 %vm809_vm5, %v734_v32  ;;  %2730 = vmatmul.mubr.msk.bf16.vlgmr.msra.gmra.mrb[0].mxu1 %vm809_vm5, %v734_v32  ;;  %v4124_v35 = vsel %vm4042_vm3, 0, %v623_v14  ;;  %v537_v38 = vsel %vm4107_vm8, %v455_v27, 0  ;;  %vm482_vm9 = vcmp.ge.s32.totalorder %v4050_v41, 0  ;;  %vm492_vm10 = vcmp.lt.s32.totalorder %v4050_v41, 16 }
  0xf6   : > { %2746 = vmatpush3.bf16.msra.mxu1 %v952_v16  ;;  %v4133_v21 = vsel %vm710_vm1, %v741_v33, %v745_v24  ;;  %v748_v42 = vshrl.u32 %v4124_v35, 16  ;;  %v750_v44 = vshll.u32 %v4124_v35, 16  ;;  %v630_v46 = vor.u32 %v628_v31, %v627_v36  ;;  %vm502_vm11 = vmand %vm482_vm9, %vm492_vm10 }
  0xf7   : > { %2802 = vmatmul.mubr.msk.bf16.vlgmr.msra.gmra.mrb[0].mxu0 %vm809_vm5, %v4133_v21  ;;  %2733 = vmatprep.mubr.msk.bf16.mxu1 %vm809_vm5, %v4133_v21  ;;  %v4146_v47 = vsel %vm4042_vm3, %v627_v36, 0  ;;  %v2518_v48 = vcombine.low %v536_v37, %v537_v38  ;;  %v757_v51 = vrot.slane %v755_v26, 1  ;;  %v1072_v56 = vrot.slane %v4072_v54, 1 }
  0xf8   : > { %2818 = vmatpush3.bf16.msra.mxu0 %v1498_v34  ;;  %v752_v50 = vrot.slane %v750_v44, 1  ;;  %v767_v53 = vshll.u32 %v4146_v47, 16  ;;  %3021 = vmatprep.subr.msk.bf16.mxu1 %vm834_vm2, %v4130_v40  ;;  %v4157_v57 = vsel %vm4042_vm3, 0, %v630_v46  ;;  %v1071_v2 = vrot.slane %v4081_v60, 1 }
  0xf9   : > { %3026 = vmatprep.subr.msk.bf16.mxu0 %vm834_vm2, %v4137_v45  ;;  %v632_v58 = vshrl.u32 %v2518_v48, 16  ;;  %v635_v59 = vshll.u32 %v2518_v48, 16  ;;  %v760_v63 = vshrl.u32 %v4157_v57, 16  ;;  %v762_v1 = vshll.u32 %v4157_v57, 16 }
  0xfa   : > { %v753_v61 = vor.u32 %v752_v50, %v748_v42  ;;  %vm1067_vm12 = vcmask 1046528   ;;  %v538_v3 = vsel %vm502_vm11, %v456_v49, 0  ;;  %v539_v4 = vsel %vm502_vm11, %v457_v55, 0 }
  0xfb   : > { %v634_v54 = vrot.slane %v632_v58, 7  ;;  %v764_v8 = vrot.slane %v762_v1, 1  ;;  %v769_v9 = vrot.slane %v767_v53, 1  ;;  %v2519_v41 = vcombine.low %v538_v3, %v539_v4  ;;  %v460_v58 = vld [vmem:[%s3949_s18 + $0x38] sm:$0xf] }
  0xfc   : > { %v4167_v5 = vsel %vm710_vm1, %v753_v61, %v757_v51  ;;  %v473_v13 = vadd.s32 7, %v3966_v0  ;;  %v4179_v16 = vsel %vm1067_vm12, %v1071_v2, %v1072_v56  ;;  %v1075_v24 = vrot.slane %v4085_v62, 1  ;;  %v4233_v3 = vld [vmem:[#allocation2 + $0x1c] sm:$0xf] }
  0xfd   : > { %2805 = vmatprep.mubr.msk.bf16.mxu0 %vm809_vm5, %v4167_v5  ;;  %2734 = vmatmul.mubr.msk.bf16.gmra.mrb[4].mxu1 %vm809_vm5, %v4167_v5  ;;  %v637_v11 = vor.u32 %v635_v59, %v634_v54  ;;  %v4175_v12 = vsel %vm4042_vm3, %v634_v54, 0  ;;  %v765_v15 = vor.u32 %v764_v8, %v760_v63  ;;  %v639_v18 = vshrl.u32 %v2519_v41, 16  ;;  %v461_v63 = vld [vmem:[%s3949_s18 + $0x3c] sm:$0xf]  ;;  %s2216_s18 = scalar_lea.sflag [#allocation4], %s3944_s13 }
  0xfe   : > { %v779_v17 = vshll.u32 %v4175_v12, 16  ;;  %v642_v23 = vshll.u32 %v2519_v41, 16  ;;  %vm483_vm13 = vcmp.ge.s32.totalorder %v473_v13, 0  ;;  %vm493_vm14 = vcmp.lt.s32.totalorder %v473_v13, 16 }
  0xff   : > { %v4186_v22 = vsel %vm4042_vm3, 0, %v637_v11  ;;  %v4190_v25 = vsel %vm710_vm1, %v765_v15, %v769_v9  ;;  %vm503_vm15 = vmand %vm483_vm13, %vm493_vm14  ;;  %v1074_v14 = vrot.slane %v4093_v6, 1  ;;  %v641_v30 = vrot.slane %v639_v18, 7 }
 0x100   : > { %v772_v27 = vshrl.u32 %v4186_v22, 16  ;;  %v774_v28 = vshll.u32 %v4186_v22, 16  ;;  %2806 = vmatmul.mubr.msk.bf16.gmra.mrb[4].mxu0 %vm809_vm5, %v4190_v25  ;;  %2737 = vmatprep.mubr.msk.bf16.mxu1 %vm809_vm5, %v4190_v25  ;;  %v540_v31 = vsel %vm503_vm15, %v458_v19, 0  ;;  %v541_v32 = vsel %vm503_vm15, %v459_v20, 0 }
 0x101   : > { %v1069_v62 = vrot.slane %v4054_v43, 1  ;;  %2819 = vmatprep.mubr.msk.bf16.mxu0 %vm809_vm5, %v4179_v16  ;;  %v781_v34 = vrot.slane %v779_v17, 1  ;;  %v2520_v26 = vcombine.low %v540_v31, %v541_v32  ;;  %v644_v36 = vor.u32 %v642_v23, %v641_v30 }
 0x102   : > { %v776_v33 = vrot.slane %v774_v28, 1  ;;  %v4204_v37 = vsel %vm4042_vm3, %v641_v30, 0  ;;  %v1077_v38 = vrot.slane %v4124_v35, 1  ;;  %v1078_v42 = vrot.slane %v4114_v29, 1  ;;  %v463_v30 = vld [vmem:[%s386_s8 + $0x4] sm:$0xf] }
 0x103   : > { %v1619_v43 = vsel %vm834_vm2, %v4137_v45, 0  ;;  %v791_v46 = vshll.u32 %v4204_v37, 16  ;;  %v646_v48 = vshrl.u32 %v2520_v26, 16  ;;  %v4212_v49 = vsel %vm1067_vm12, %v1074_v14, %v1075_v24  ;;  %v462_v14 = vld [vmem:[%s386_s8] sm:$0xf]  ;;  %s3314_s8 = scalar_lea.vmem %s3313_s2, 2048 }
 0x104   : > { %v777_v44 = vor.u32 %v776_v33, %v772_v27  ;;  %v4216_v50 = vsel %vm4042_vm3, 0, %v644_v36  ;;  %v649_v51 = vshll.u32 %v2520_v26, 16  ;;  %v474_v53 = vadd.s32 8, %v3966_v0  ;;  %p3316_p4 = scmp.lt.s32.totalorder %s3314_s8, %s3308_s3 }
 0x105   : > { %v784_v55 = vshrl.u32 %v4216_v50, 16  ;;  %v786_v45 = vshll.u32 %v4216_v50, 16  ;;  %v1080_v56 = vrot.slane %v4157_v57, 1  ;;  %v4229_v59 = vsel %vm1067_vm12, %v1077_v38, %v1078_v42 }
 0x106   : > { %v4220_v29 = vsel %vm710_vm1, %v777_v44, %v781_v34  ;;  %v648_v61 = vrot.slane %v646_v48, 7  ;;  %vm484_vm0 = vcmp.ge.s32.totalorder %v474_v53, 0  ;;  %vm494_vm6 = vcmp.lt.s32.totalorder %v474_v53, 16  ;;  %p3317_p9 = por %p3316_p4, %p3315_p7 }
 0x107   : > { %2738 = vmatmul.mubr.msk.bf16.gmra.mrb[8].mxu1 %vm809_vm5, %v4220_v29  ;;  %v788_v1 = vrot.slane %v786_v45, 1  ;;  %v793_v2 = vrot.slane %v791_v46, 1  ;;  %v1081_v54 = vrot.slane %v4146_v47, 1  ;;  %vm504_vm4 = vmand %vm484_vm0, %vm494_vm6  ;;  %v1068_v4 = vrot.slane %v4068_v52, 1 }
 0x108   : > { %2820 = vmatmul.mubr.msk.bf16.vlgmr.msra.gmra.mrb[0].mxu0 %vm809_vm5, %v4212_v49  ;;  %v651_v8 = vor.u32 %v649_v51, %v648_v61  ;;  %v706_v9 = vsel %vm4042_vm3, %v648_v61, 0  ;;  %v1083_v41 = vrot.slane %v4186_v22, 1  ;;  %v542_v11 = vsel %vm504_vm4, %v460_v58, 0  ;;  %p3318_p1 = pnand %p3317_p9, %p3311_p10 }
 0x109   : > { %2836 = vmatpush3.bf16.msra.mxu0 %v1619_v43  ;;  %v789_v13 = vor.u32 %v788_v1, %v784_v55  ;;  %2823 = vmatprep.mubr.msk.bf16.mxu0 %vm809_vm5, %v4229_v59  ;;  %v803_v47 = vshll.u32 %v706_v9, 16  ;;  %v1084_v15 = vrot.slane %v4175_v12, 1  ;;  %v543_v17 = vsel %vm504_vm4, %v461_v63, 0 }
 0x10a   : > { %v4246_v18 = vsel %vm4042_vm3, 0, %v651_v8  ;;  %v2521_v19 = vcombine.low %v542_v11, %v543_v17  ;;  %3027 = vmatprep.subr.msk.bf16.mxu0 %vm834_vm2, %v4233_v3  ;;  %v4251_v20 = vsel %vm1067_vm12, %v1068_v4, %v1069_v62  ;;  %v475_v23 = vadd.s32 9, %v3966_v0  ;;  %v1235_v11 = vld [vmem:[#allocation2 + $0xc] sm:$0xf] }
 0x10b   : > { %v4255_v24 = vsel %vm710_vm1, %v789_v13, %v793_v2  ;;  %v796_v27 = vshrl.u32 %v4246_v18, 16  ;;  %v798_v12 = vshll.u32 %v4246_v18, 16  ;;  %v805_v32 = vrot.slane %v803_v47, 1 }
 0x10c   : > { %2741 = vmatprep.mubr.msk.bf16.mxu1 %vm809_vm5, %v4255_v24  ;;  %v653_v28 = vshrl.u32 %v2521_v19, 16  ;;  %vm485_vm7 = vcmp.ge.s32.totalorder %v475_v23, 0  ;;  %v4266_v0 = vsel %vm1067_vm12, %v1080_v56, %v1081_v54  ;;  %vm495_vm8 = vcmp.lt.s32.totalorder %v475_v23, 16 }
 0x10d   : > { %v800_v31 = vrot.slane %v798_v12, 1  ;;  %v4269_v62 = vsel %vm1067_vm12, %v1083_v41, %v1084_v15  ;;  %v656_v34 = vshll.u32 %v2521_v19, 16  ;;  %vm505_vm9 = vmand %vm485_vm7, %vm495_vm8  ;;  %v1086_v43 = vrot.slane %v4216_v50, 1 }
 0x10e   : > { %v655_v33 = vrot.slane %v653_v28, 7  ;;  %v544_v36 = vsel %vm505_vm9, %v462_v14, 0  ;;  %v545_v38 = vsel %vm505_vm9, %v463_v30, 0  ;;  %v1087_v46 = vrot.slane %v4204_v37, 1  ;;  %v1872_v28 = vld [vmem:[#allocation2 + $0x20] sm:$0xf] }
 0x10f   : > { %v801_v26 = vor.u32 %v800_v31, %v796_v27  ;;  %v2522_v42 = vcombine.low %v544_v36, %v545_v38  ;;  %v1090_v48 = vrot.slane %v706_v9, 1  ;;  %v1089_v51 = vrot.slane %v4246_v18, 1 }
 0x110   : > { %2824 = vmatmul.mubr.msk.bf16.gmra.mrb[4].mxu0 %vm809_vm5, %v4266_v0  ;;  %v658_v53 = vor.u32 %v656_v34, %v655_v33  ;;  %v4286_v58 = vsel %vm1067_vm12, %v1086_v43, %v1087_v46  ;;  %v4290_v61 = vsel %vm4042_vm3, %v655_v33, 0  ;;  %v1119_v4 = vsel %vm834_vm2, %v4130_v40, 0 }
 0x111   : > { %v4274_v44 = vsel %vm710_vm1, %v801_v26, %v805_v32  ;;  %2827 = vmatprep.mubr.msk.bf16.mxu0 %vm809_vm5, %v4269_v62  ;;  %v660_v55 = vshrl.u32 %v2522_v42, 16  ;;  %v663_v45 = vshll.u32 %v2522_v42, 16  ;;  %v4293_v37 = vsel %vm1067_vm12, %v1089_v51, %v1090_v48 }
 0x112   : > { %2742 = vmatmul.mubr.msk.bf16.gmra.mrb[12].mxu1 %vm809_vm5, %v4274_v44  ;;  %v4297_v63 = vsel %vm4042_vm3, 0, %v658_v53  ;;  %v1490_v8 = vrot.slane %v4290_v61, 1  ;;  %v1751_v12 = vsel %vm834_vm2, %v4233_v3, 0  ;;  %v1240_v3 = vsel %vm834_vm2, %v1235_v11, 0 }
 0x113   : > { %2747 = vmatprep.mubr.msk.bf16.mxu1 %vm809_vm5, %v4068_v52  ;;  %v662_v56 = vrot.slane %v660_v55, 7  ;;  %v1489_v41 = vrot.slane %v4297_v63, 1  ;;  %v1362_v14 = vshll.u32 %v4290_v61, 16 }
 0x115   : > { %v665_v1 = vor.u32 %v663_v45, %v662_v56  ;;  %v708_v2 = vsel %vm4042_vm3, %v662_v56, 0  ;;  %v4320_v19 = vsel %vm1067_vm12, %v1489_v41, %v1490_v8 }
 0x116   : > { %v1741_v52 = vshll.u32 %v708_v2, 16  ;;  %v1869_v54 = vrot.slane %v708_v2, 1 }
 0x117   : > { %v698_v9 = vsel %vm4042_vm3, 0, %v665_v1  ;;  %vm2104_vm3 = vcmask 27648  }
 0x118   : > { %2828 = vmatmul.mubr.msk.bf16.gmra.mrb[8].mxu0 %vm809_vm5, %v4286_v58  ;;  %v1734_v13 = vshrl.u32 %v698_v9, 16  ;;  %v1736_v47 = vshll.u32 %v698_v9, 16  ;;  %v1868_v15 = vrot.slane %v698_v9, 1  ;;  %v1743_v17 = vrot.slane %v1741_v52, 1 }
 0x119   : > { %2831 = vmatprep.mubr.msk.bf16.mxu0 %vm809_vm5, %v4293_v37 }
 0x11a   : > { %2748 = vmatmul.mubr.msk.bf16.vlgmr.msra.gmra.mrb[0].mxu1 %vm809_vm5, %v4081_v60  ;;  %v1738_v40 = vrot.slane %v1736_v47, 1  ;;  %v4316_v39 = vsel %vm1067_vm12, %v1868_v15, %v1869_v54 }
 0x11b   : > { %2764 = vmatpush3.bf16.msra.mxu1 %v1119_v4  ;;  %2751 = vmatprep.mubr.msk.bf16.mxu1 %vm809_vm5, %v4093_v6 }
 0x11c   : > { %3022 = vmatprep.subr.msk.bf16.mxu1 %vm834_vm2, %v1235_v11  ;;  %v1739_v23 = vor.u32 %v1738_v40, %v1734_v13 }
 0x11e   : > { %v1744_v27 = vsel %vm710_vm1, %v1739_v23, %v1743_v17 }
 0x120   : > { %2832 = vmatmul.mubr.msk.bf16.gmra.mrb[12].mxu0 %vm809_vm5, %v4320_v19 }
 0x121   : > { %2837 = vmatprep.mubr.msk.bf16.mxu0 %vm809_vm5, %v4093_v6 }
 0x122   : > { %2752 = vmatmul.mubr.msk.bf16.gmra.mrb[4].mxu1 %vm809_vm5, %v4124_v35 }
 0x123   : > { %2755 = vmatprep.mubr.msk.bf16.mxu1 %vm809_vm5, %v4157_v57 }
 0x128   : > { %2838 = vmatmul.mubr.msk.bf16.vlgmr.msra.gmra.mrb[0].mxu0 %vm809_vm5, %v4124_v35 }
 0x129   : > { %2854 = vmatpush3.bf16.msra.mxu0 %v1751_v12  ;;  %2841 = vmatprep.mubr.msk.bf16.mxu0 %vm809_vm5, %v4157_v57 }
 0x12a   : > { %2756 = vmatmul.mubr.msk.bf16.gmra.mrb[8].mxu1 %vm809_vm5, %v4186_v22  ;;  %3028 = vmatprep.subr.msk.bf16.mxu0 %vm834_vm2, %v1872_v28 }
 0x12b   : > { %2759 = vmatprep.mubr.msk.bf16.mxu1 %vm809_vm5, %v4216_v50 }
 0x130   : > { %2842 = vmatmul.mubr.msk.bf16.gmra.mrb[4].mxu0 %vm809_vm5, %v4186_v22 }
 0x131   : > { %2845 = vmatprep.mubr.msk.bf16.mxu0 %vm809_vm5, %v4216_v50 }
 0x132   : > { %2760 = vmatmul.mubr.msk.bf16.gmra.mrb[12].mxu1 %vm809_vm5, %v4246_v18 }
 0x133   : > { %2765 = vmatprep.mubr.msk.bf16.mxu1 %vm809_vm5, %v4251_v20 }
 0x138   : > { %2846 = vmatmul.mubr.msk.bf16.gmra.mrb[8].mxu0 %vm809_vm5, %v4246_v18 }
 0x139   : > { %2849 = vmatprep.mubr.msk.bf16.mxu0 %vm809_vm5, %v4297_v63 }
 0x13a   : > { %2766 = vmatmul.mubr.msk.bf16.vlgmr.msra.gmra.mrb[0].mxu1 %vm809_vm5, %v4179_v16  ;;  %v1877_v16 = vsel %vm834_vm2, %v1872_v28, 0 }
 0x13b   : > { %2782 = vmatpush3.bf16.msra.mxu1 %v1240_v3  ;;  %2769 = vmatprep.mubr.msk.bf16.mxu1 %vm809_vm5, %v4212_v49 }
 0x13c   : > { %3024 = vmatprep.subr.msk.bf16.mxu1 %vm834_vm2, %v3981_v7  ;;  %v1357_v7 = vshll.u32 %v4297_v63, 16 }
 0x13e   : > { %v1359_v20 = vrot.slane %v1357_v7, 1 }
 0x140   : > { %2850 = vmatmul.mubr.msk.bf16.gmra.mrb[12].mxu0 %vm809_vm5, %v698_v9 }
 0x141   : > { %2855 = vmatprep.mubr.msk.bf16.mxu0 %vm809_vm5, %v4133_v21  ;;  %v1355_v21 = vshrl.u32 %v4297_v63, 16 }
 0x142   : > { %2770 = vmatmul.mubr.msk.bf16.gmra.mrb[4].mxu1 %vm809_vm5, %v4229_v59 }
 0x143   : > { %2773 = vmatprep.mubr.msk.bf16.mxu1 %vm809_vm5, %v4266_v0 }
 0x148   : > { %2856 = vmatmul.mubr.msk.bf16.vlgmr.msra.gmra.mrb[0].mxu0 %vm809_vm5, %v4167_v5  ;;  %v1360_v5 = vor.u32 %v1359_v20, %v1355_v21 }
 0x149   : > { %2872 = vmatpush3.bf16.msra.mxu0 %v1877_v16  ;;  %2859 = vmatprep.mubr.msk.bf16.mxu0 %vm809_vm5, %v4190_v25  ;;  %v1364_v25 = vrot.slane %v1362_v14, 1 }
 0x14a   : > { %2774 = vmatmul.mubr.msk.bf16.gmra.mrb[8].mxu1 %vm809_vm5, %v4269_v62 }
 0x14b   : > { %2777 = vmatprep.mubr.msk.bf16.mxu1 %vm809_vm5, %v4286_v58  ;;  %v1365_v30 = vsel %vm710_vm1, %v1360_v5, %v1364_v25 }
 0x150   : > { %2860 = vmatmul.mubr.msk.bf16.gmra.mrb[4].mxu0 %vm809_vm5, %v4220_v29 }
 0x151   : > { %2863 = vmatprep.mubr.msk.bf16.mxu0 %vm809_vm5, %v4255_v24 }
 0x152   : > { %2778 = vmatmul.mubr.msk.bf16.gmra.mrb[12].mxu1 %vm809_vm5, %v4293_v37 }
 0x153   : > { %2783 = vmatprep.mubr.msk.bf16.mxu1 %vm809_vm5, %v4081_v60 }
 0x158   : > { %2864 = vmatmul.mubr.msk.bf16.gmra.mrb[8].mxu0 %vm809_vm5, %v4274_v44 }
 0x159   : > { %2867 = vmatprep.mubr.msk.bf16.mxu0 %vm809_vm5, %v1365_v30 }
 0x15a   : > { %2784 = vmatmul.mubr.msk.bf16.vlgmr.msra.gmra.mrb[0].mxu1 %vm809_vm5, %v4093_v6 }
 0x15b   : > { %2890 = vmatpush3.bf16.msra.mxu1 %v3991_v10  ;;  %2787 = vmatprep.mubr.msk.bf16.mxu1 %vm809_vm5, %v4124_v35 }
 0x160   : > { %2868 = vmatmul.mubr.msk.bf16.gmra.mrb[12].mxu0 %vm809_vm5, %v1744_v27 }
 0x161   : > { %2873 = vmatprep.mubr.msk.bf16.mxu0 %vm809_vm5, %v4212_v49 }
 0x162   : > { %2788 = vmatmul.mubr.msk.bf16.gmra.mrb[4].mxu1 %vm809_vm5, %v4157_v57  ;;  %v4433_v57 = vstv %s2511_s20 }
 0x163   : > { %2791 = vmatprep.mubr.msk.bf16.mxu1 %vm809_vm5, %v4186_v22  ;;  %vm2000_vm1 = vcmp.lt.s32.totalorder %v4433_v57, 16  ;;  %v1995_v26 = vadd.s32 3, %v4433_v57  ;;  %v1994_v42 = vadd.s32 2, %v4433_v57  ;;  %v4454_v45 = vadd.s32 5, %v4433_v57 }
 0x164   : > { %v4457_v56 = vadd.s32 4, %v4433_v57 }
 0x165   : > { %vm2003_vm10 = vcmp.lt.s32.totalorder %v1995_v26, 16  ;;  %vm2002_vm11 = vcmp.lt.s32.totalorder %v1994_v42, 16  ;;  %vm2005_vm12 = vcmp.lt.s32.totalorder %v4454_v45, 16 }
 0x166   : > { %vm2004_vm13 = vcmp.lt.s32.totalorder %v4457_v56, 16 }
 0x168   : > { %2874 = vmatmul.mubr.msk.bf16.vlgmr.msra.gmra.mrb[0].mxu0 %vm809_vm5, %v4229_v59 }
 0x169   : > { %2877 = vmatprep.mubr.msk.bf16.mxu0 %vm809_vm5, %v4266_v0 }
 0x16a   : > { %2792 = vmatmul.mubr.msk.bf16.gmra.mrb[8].mxu1 %vm809_vm5, %v4216_v50 }
 0x16b   : > { %2795 = vmatprep.mubr.msk.bf16.mxu1 %vm809_vm5, %v4246_v18 }
 0x170   : > { %2878 = vmatmul.mubr.msk.bf16.gmra.mrb[4].mxu0 %vm809_vm5, %v4269_v62 }
 0x171   : > { %2881 = vmatprep.mubr.msk.bf16.mxu0 %vm809_vm5, %v4286_v58 }
 0x172   : > { %2796 = vmatmul.mubr.msk.bf16.gmra.mrb[12].mxu1 %vm809_vm5, %v4297_v63 }
 0x173   : > { %2809 = vmatprep.mubr.msk.bf16.mxu1 %vm809_vm5, %v4220_v29  ;;  %v1993_v29 = vadd.s32 1, %v4433_v57 }
 0x175   : > { %vm2001_vm2 = vcmp.lt.s32.totalorder %v1993_v29, 16 }
 0x178   : > { %2882 = vmatmul.mubr.msk.bf16.gmra.mrb[8].mxu0 %vm809_vm5, %v4293_v37 }
 0x179   : > { %2885 = vmatprep.mubr.msk.bf16.mxu0 %vm809_vm5, %v4320_v19 }
 0x17a   : > { %2810 = vmatmul.mubr.msk.bf16.vlgmr.msra.gmra.mrb[8].mxu1 %vm809_vm5, %v4255_v24 }
 0x17b   : > { %2813 = vmatprep.mubr.msk.bf16.mxu1 %vm809_vm5, %v4274_v44 }
 0x180   : > { %2886 = vmatmul.mubr.msk.bf16.gmra.mrb[12].mxu0 %vm809_vm5, %v4316_v39 }
 0x182   : > { %2814 = vmatmul.mubr.msk.bf16.gmra.mrb[12].mxu1 %vm809_vm5, %v1365_v30  ;;  %vm2121_vm5 = vcmask 31744  }
 0x22d   : > { %v2785_v10 = vpop.f32.mrb[0].mxu1 }
 0x22e   : > { %v1276_v60 = vpop.f32.mrb[1].mxu1 }
 0x22f   : > { %v2786_v6 = vpop.f32.mrb[2].mxu1 }
 0x230   : > { %v1279_v35 = vpop.f32.mrb[3].mxu1 }
 0x235   : > { %v2789_v22 = vpop.f32.mrb[4].mxu1 }
 0x236   : > { %v1292_v49 = vpop.f32.mrb[5].mxu1 }
 0x237   : > { %v2790_v50 = vpop.f32.mrb[6].mxu1 }
 0x238   : > { %v4436_v59 = vpop.f32.mrb[7].mxu1 }
 0x23b   : > { %v2875_v18 = vpop.f32.mrb[0].mxu0 }
 0x23c   : > { %v2891_v24 = vadd.f32 %v2875_v18, %v2785_v10  ;;  %v1913_v31 = vpop.f32.mrb[1].mxu0 }
 0x23d   : > { %v2892_v32 = vadd.f32 %v1913_v31, %v1276_v60  ;;  %v2876_v0 = vpop.f32.mrb[2].mxu0  ;;  %v4482_v60 = vadd.s32 7, %v4433_v57 }
 0x23e   : > { %v2026_v62 = vsel %vm2001_vm2, %v2891_v24, 0.0  ;;  %v2893_v33 = vadd.f32 %v2876_v0, %v2786_v6  ;;  %v1916_v34 = vpop.f32.mrb[3].mxu0 }
 0x23f   : > { %v2631_v36 = vpack.c.bf16 %v2026_v62, %v2026_v62  ;;  %v2024_v38 = vsel %vm2000_vm1, %v2892_v32, 0.0  ;;  %v2163_v48 = vmul.f32 %v2026_v62, %v2026_v62  ;;  %v2894_v51 = vadd.f32 %v1916_v34, %v1279_v35 }
 0x240   : > { %v2629_v44 = vpack.c.bf16 %v2024_v38, %v2024_v38  ;;  %v2027_v43 = vsel %vm2001_vm2, %v2893_v33, 0.0  ;;  %v2161_v53 = vmul.f32 %v2024_v38, %v2024_v38  ;;  %v2125_v58 = vsel %vm2121_vm5, %v2026_v62, 0.0 }
 0x241   : > { %2107 = vst.msk [vmem:[%s4445_s14 + $0x8] sm:$0xf] %vm2104_vm3, %v2631_v36  ;;  %v2632_v46 = vpack.c.bf16 %v2027_v43, %v2027_v43  ;;  %v2122_v61 = vsel %vm2121_vm5, %v2024_v38, 0.0  ;;  %v2025_v37 = vsel %vm2000_vm1, %v2894_v51, 0.0  ;;  %v2180_v9 = vsel %vm2121_vm5, %v2163_v48, 0.0 }
 0x242   : > { %2105 = vst.msk [vmem:[%s4445_s14] sm:$0xf] %vm2104_vm3, %v2629_v44  ;;  %v2630_v2 = vpack.c.bf16 %v2025_v37, %v2025_v37  ;;  %v2123_v52 = vsel %vm2121_vm5, %v2025_v37, 0.0  ;;  %v2162_v54 = vmul.f32 %v2025_v37, %v2025_v37  ;;  %v2177_v15 = vsel %vm2121_vm5, %v2161_v53, 0.0 }
 0x243   : > { %2108 = vst.msk [vmem:[%s4445_s14 + $0xc] sm:$0xf] %vm2104_vm3, %v2632_v46  ;;  %v2879_v55 = vpop.f32.mrb[4].mxu0  ;;  %v2124_v41 = vadd.f32 %v2123_v52, %v2122_v61  ;;  %v2164_v40 = vmul.f32 %v2027_v43, %v2027_v43  ;;  %v2127_v28 = vsel %vm2121_vm5, %v2027_v43, 0.0  ;;  %vm2007_vm14 = vcmp.lt.s32.totalorder %v4482_v60, 16 }
 0x244   : > { %v2895_v63 = vadd.f32 %v2879_v55, %v2789_v22  ;;  %v1929_v1 = vpop.f32.mrb[5].mxu0  ;;  %2106 = vst.msk [vmem:[%s4445_s14 + $0x4] sm:$0xf] %vm2104_vm3, %v2630_v2  ;;  %v2178_v17 = vsel %vm2121_vm5, %v2162_v54, 0.0 }
 0x245   : > { %v2896_v4 = vadd.f32 %v1929_v1, %v1292_v49  ;;  %v2880_v8 = vpop.f32.mrb[6].mxu0  ;;  %v2126_v19 = vadd.f32 %v2125_v58, %v2124_v41  ;;  %v2179_v23 = vadd.f32 %v2178_v17, %v2177_v15  ;;  %v2182_v5 = vsel %vm2121_vm5, %v2164_v40, 0.0 }
 0x246   : > { %v2030_v11 = vsel %vm2003_vm10, %v2895_v63, 0.0  ;;  %v2897_v13 = vadd.f32 %v2880_v8, %v2790_v50  ;;  %v1932_v47 = vpop.f32.mrb[7].mxu0 }
 0x247   : > { %v2635_v39 = vpack.c.bf16 %v2030_v11, %v2030_v11  ;;  %v2028_v27 = vsel %vm2002_vm11, %v2896_v4, 0.0  ;;  %v2181_v21 = vadd.f32 %v2180_v9, %v2179_v23  ;;  %v2128_v20 = vadd.f32 %v2127_v28, %v2126_v19 }
 0x248   : > { %v2031_v12 = vsel %vm2003_vm10, %v2897_v13, 0.0  ;;  %v2633_v3 = vpack.c.bf16 %v2028_v27, %v2028_v27  ;;  %v2129_v16 = vsel %vm2121_vm5, %v2028_v27, 0.0  ;;  %v2165_v7 = vmul.f32 %v2028_v27, %v2028_v27 }
 0x249   : > { %2111 = vst.msk [vmem:[%s4445_s14 + $0x18] sm:$0xf] %vm2104_vm3, %v2635_v39  ;;  %v2636_v14 = vpack.c.bf16 %v2031_v12, %v2031_v12  ;;  %v2898_v30 = vadd.f32 %v1932_v47, %v4436_v59  ;;  %v2130_v6 = vadd.f32 %v2129_v16, %v2128_v20  ;;  %v2183_v35 = vadd.f32 %v2182_v5, %v2181_v21 }
 0x24a   : > { %2109 = vst.msk [vmem:[%s4445_s14 + $0x10] sm:$0xf] %vm2104_vm3, %v2633_v3  ;;  %v2184_v25 = vsel %vm2121_vm5, %v2165_v7, 0.0  ;;  %v2167_v49 = vmul.f32 %v2030_v11, %v2030_v11  ;;  %v4490_v59 = vadd.s32 6, %v4433_v57  ;;  %v2133_v42 = vsel %vm2121_vm5, %v2030_v11, 0.0 }
 0x24b   : > { %v2883_v10 = vpop.f32.mrb[8].mxu0  ;;  %2112 = vst.msk [vmem:[%s4445_s14 + $0x1c] sm:$0xf] %vm2104_vm3, %v2636_v14  ;;  %v2029_v50 = vsel %vm2002_vm11, %v2898_v30, 0.0  ;;  %v2185_v24 = vadd.f32 %v2184_v25, %v2183_v35  ;;  %v2168_v44 = vmul.f32 %v2031_v12, %v2031_v12  ;;  %v2135_v61 = vsel %vm2121_vm5, %v2031_v12, 0.0 }
 0x24c   : > { %v1945_v22 = vpop.f32.mrb[9].mxu0  ;;  %v2634_v31 = vpack.c.bf16 %v2029_v50, %v2029_v50  ;;  %v2131_v32 = vsel %vm2121_vm5, %v2029_v50, 0.0  ;;  %v2166_v0 = vmul.f32 %v2029_v50, %v2029_v50  ;;  %v2188_v58 = vsel %vm2121_vm5, %v2167_v49, 0.0 }
 0x24d   : > { %v2811_v29 = vpop.f32.mrb[8].mxu1  ;;  %v2884_v18 = vpop.f32.mrb[10].mxu0  ;;  %v2132_v34 = vadd.f32 %v2131_v32, %v2130_v6  ;;  %v2190_v8 = vsel %vm2121_vm5, %v2168_v44, 0.0  ;;  %vm2006_vm15 = vcmp.lt.s32.totalorder %v4490_v59, 16 }
 0x24e   : > { %v1440_v62 = vpop.f32.mrb[9].mxu1  ;;  %v1948_v33 = vpop.f32.mrb[11].mxu0  ;;  %v2899_v26 = vadd.f32 %v2883_v10, %v2811_v29  ;;  %2110 = vst.msk [vmem:[%s4445_s14 + $0x14] sm:$0xf] %vm2104_vm3, %v2634_v31  ;;  %v2186_v57 = vsel %vm2121_vm5, %v2166_v0, 0.0 }
 0x24f   : > { %v2900_v36 = vadd.f32 %v1945_v22, %v1440_v62  ;;  %v2812_v38 = vpop.f32.mrb[10].mxu1  ;;  %v2134_v48 = vadd.f32 %v2133_v42, %v2132_v34  ;;  %v2187_v51 = vadd.f32 %v2186_v57, %v2185_v24 }
 0x250   : > { %v2901_v43 = vadd.f32 %v2884_v18, %v2812_v38  ;;  %v1443_v46 = vpop.f32.mrb[11].mxu1  ;;  %v2034_v53 = vsel %vm2005_vm12, %v2899_v26, 0.0 }
 0x251   : > { %v2032_v55 = vsel %vm2004_vm13, %v2900_v36, 0.0  ;;  %v2639_v37 = vpack.c.bf16 %v2034_v53, %v2034_v53  ;;  %v2189_v1 = vadd.f32 %v2188_v58, %v2187_v51  ;;  %v2136_v2 = vadd.f32 %v2135_v61, %v2134_v48 }
 0x252   : > { %v2637_v63 = vpack.c.bf16 %v2032_v55, %v2032_v55  ;;  %v2137_v52 = vsel %vm2121_vm5, %v2032_v55, 0.0  ;;  %v2169_v54 = vmul.f32 %v2032_v55, %v2032_v55  ;;  %v2171_v9 = vmul.f32 %v2034_v53, %v2034_v53 }
 0x253   : > { %v2887_v4 = vpop.f32.mrb[12].mxu0  ;;  %2115 = vst.msk [vmem:[%s4445_s14 + $0x28] sm:$0xf] %vm2104_vm3, %v2639_v37  ;;  %v2035_v41 = vsel %vm2005_vm12, %v2901_v43, 0.0  ;;  %v2902_v11 = vadd.f32 %v1948_v33, %v1443_v46  ;;  %v2138_v47 = vadd.f32 %v2137_v52, %v2136_v2  ;;  %v2191_v15 = vadd.f32 %v2190_v8, %v2189_v1 }
 0x254   : > { %2113 = vst.msk [vmem:[%s4445_s14 + $0x20] sm:$0xf] %vm2104_vm3, %v2637_v63  ;;  %v1961_v13 = vpop.f32.mrb[13].mxu0  ;;  %v2192_v40 = vsel %vm2121_vm5, %v2169_v54, 0.0  ;;  %v2640_v17 = vpack.c.bf16 %v2035_v41, %v2035_v41  ;;  %v2141_v20 = vsel %vm2121_vm5, %v2034_v53, 0.0  ;;  %v2196_v30 = vsel %vm2121_vm5, %v2171_v9, 0.0 }
 0x255   : > { %v2815_v39 = vpop.f32.mrb[12].mxu1  ;;  %v2888_v19 = vpop.f32.mrb[14].mxu0  ;;  %v2033_v23 = vsel %vm2004_vm13, %v2902_v11, 0.0  ;;  %v2193_v28 = vadd.f32 %v2192_v40, %v2191_v15  ;;  %v2172_v10 = vmul.f32 %v2035_v41, %v2035_v41  ;;  %v2143_v18 = vsel %vm2121_vm5, %v2035_v41, 0.0 }
 0x256   : > { %v2903_v27 = vadd.f32 %v2887_v4, %v2815_v39  ;;  %v1456_v12 = vpop.f32.mrb[13].mxu1  ;;  %v1964_v45 = vpop.f32.mrb[15].mxu0  ;;  %2116 = vst.msk [vmem:[%s4445_s14 + $0x2c] sm:$0xf] %vm2104_vm3, %v2640_v17  ;;  %v2638_v3 = vpack.c.bf16 %v2033_v23, %v2033_v23  ;;  %v2139_v16 = vsel %vm2121_vm5, %v2033_v23, 0.0  ;;  %v2170_v7 = vmul.f32 %v2033_v23, %v2033_v23 }
 0x257   : > { %v2816_v21 = vpop.f32.mrb[14].mxu1  ;;  %v2140_v14 = vadd.f32 %v2139_v16, %v2138_v47  ;;  %v2904_v5 = vadd.f32 %v1961_v13, %v1456_v12  ;;  %v2198_v26 = vsel %vm2121_vm5, %v2172_v10, 0.0 }
 0x258   : > { %v2038_v56 = vsel %vm2007_vm14, %v2903_v27, 0.0  ;;  %v1459_v25 = vpop.f32.mrb[15].mxu1  ;;  %2114 = vst.msk [vmem:[%s4445_s14 + $0x24] sm:$0xf] %vm2104_vm3, %v2638_v3  ;;  %v2194_v6 = vsel %vm2121_vm5, %v2170_v7, 0.0  ;;  %v2905_v29 = vadd.f32 %v2888_v19, %v2816_v21 }
 0x259   : > { %v2643_v35 = vpack.c.bf16 %v2038_v56, %v2038_v56  ;;  %v2142_v22 = vadd.f32 %v2141_v20, %v2140_v14  ;;  %v2195_v49 = vadd.f32 %v2194_v6, %v2193_v28  ;;  %v2036_v50 = vsel %vm2006_vm15, %v2904_v5, 0.0 }
 0x25a   : > { %v2641_v24 = vpack.c.bf16 %v2036_v50, %v2036_v50  ;;  %v2145_v31 = vsel %vm2121_vm5, %v2036_v50, 0.0  ;;  %v2173_v32 = vmul.f32 %v2036_v50, %v2036_v50  ;;  %v2039_v33 = vsel %vm2007_vm14, %v2905_v29, 0.0 }
 0x25b   : > { %2119 = vst.msk [vmem:[%s4445_s14 + $0x38] sm:$0xf] %vm2104_vm3, %v2643_v35  ;;  %v2197_v0 = vadd.f32 %v2196_v30, %v2195_v49  ;;  %v2144_v62 = vadd.f32 %v2143_v18, %v2142_v22  ;;  %v2906_v34 = vadd.f32 %v1964_v45, %v1459_v25  ;;  %v2644_v38 = vpack.c.bf16 %v2039_v33, %v2039_v33 }
 0x25c   : > { %2117 = vst.msk [vmem:[%s4445_s14 + $0x30] sm:$0xf] %vm2104_vm3, %v2641_v24  ;;  %v2200_v36 = vsel %vm2121_vm5, %v2173_v32, 0.0  ;;  %v2175_v60 = vmul.f32 %v2038_v56, %v2038_v56  ;;  %v2149_v53 = vsel %vm2121_vm5, %v2038_v56, 0.0  ;;  %v2176_v55 = vmul.f32 %v2039_v33, %v2039_v33 }
 0x25d   : > { %v2146_v42 = vadd.f32 %v2145_v31, %v2144_v62  ;;  %v2199_v44 = vadd.f32 %v2198_v26, %v2197_v0  ;;  %v2037_v57 = vsel %vm2006_vm15, %v2906_v34, 0.0  ;;  %2120 = vst.msk [vmem:[%s4445_s14 + $0x3c] sm:$0xf] %vm2104_vm3, %v2644_v38 }
 0x25e   : > { %v2642_v43 = vpack.c.bf16 %v2037_v57, %v2037_v57  ;;  %v2147_v46 = vsel %vm2121_vm5, %v2037_v57, 0.0  ;;  %v2174_v48 = vmul.f32 %v2037_v57, %v2037_v57 }
 0x25f   : > { %v2201_v59 = vadd.f32 %v2200_v36, %v2199_v44  ;;  %v2148_v51 = vadd.f32 %v2147_v46, %v2146_v42 }
 0x260   : > { %2118 = vst.msk [vmem:[%s4445_s14 + $0x34] sm:$0xf] %vm2104_vm3, %v2642_v43  ;;  %v2202_v58 = vsel %vm2121_vm5, %v2174_v48, 0.0 }
 0x261   : > { %v2150_v61 = vadd.f32 %v2149_v53, %v2148_v51  ;;  %v2203_v37 = vadd.f32 %v2202_v58, %v2201_v59 }
 0x262   : > { %3321 = shalt.err (!%p3318_p1)
}
 0x263   : > { %s3322_s20 = scalar_lea.hbm %s4549_s27, 1024  ;;  %s3326_s29 = scalar_lea.hbm %s4815_s12, 4096 }
 0x264   : > { %p3323_p0 = scmp.ne.s32.totalorder %s4549_s27, %s3322_s20  ;;  %p3327_p13 = scmp.lt.u32.totalorder %s4549_s27, %s4815_s12 }
 0x265   : > { %p3328_p3 = scmp.lt.u32.totalorder %s3326_s29, %s3322_s20  ;;  %p3330_p2 = scmp.lt.u32.totalorder %s3322_s20, %s4549_s27 }
 0x266   : > { %p3324_p12 = pnand %p3323_p0, %p4816_p5 }
 0x267   : > { %p3329_p6 = por %p3328_p3, %p3327_p13 }
 0x268   : > { %p3325_p8 = pneg %p3324_p12 }
 0x269   : > { %p3331_p11 = por %p3330_p2, %p3329_p6 }
 0x26b   : > { %p3332_p10 = pnand %p3331_p11, %p3325_p8 }
 0x26d   : > { %3335 = shalt.err (!%p3332_p10)
}
 0x26e   : > { %s3535_s5 = smov 64   ;;  %s3536_s11 = smov 4   ;;  %v2204_v63 = vsel %vm2121_vm5, %v2175_v60, 0.0  ;;  %v2151_v1 = vsel %vm2121_vm5, %v2039_v33, 0.0  ;;  %v2206_v54 = vsel %vm2121_vm5, %v2176_v55, 0.0  ;;  %vm2159_vm0 = vcmask 24576  }
 0x26f   : > { %3039 = dma.vmem_to_hbm [thread:$0]  (%p4816_p5), %s4551_s26, 1024, %s4549_s27, %s2216_s18, %s3535_s5, %s3535_s5, %s3536_s11   ;;  %v2152_v2 = vadd.f32 %v2151_v1, %v2150_v61  ;;  %v2205_v52 = vadd.f32 %v2204_v63, %v2203_v37 }
 0x270   : > { %s2616_s7 = sshll.u32 %s4814_s0, 1  ;;  %s426_s27 = scalar_lea.vmem [#allocation11], %s3944_s13 }
 0x271   : > { %v2153_v4 = vrot.slane %v2152_v2, 4  ;;  %v2207_v8 = vadd.f32 %v2206_v54, %v2205_v52  ;;  %s2254_s3 = sadd.s32 %s4799_s15, %s2616_s7  ;;  %s2258_s18 = sshll.u32 %s426_s27, 4  ;;  %s4598_s18 = int_to_ptr.vmem [resolvable:$true] %s2258_s18 }
 0x272   : > { %s2617_s26 = sshll.u32 %s2254_s3, 4  ;;  %s432_s17 = scalar_lea.vmem [#allocation13], %s3944_s13 }
 0x273   : > { %v2154_v9 = vadd.f32 %v2153_v4, %v2152_v2  ;;  %v2208_v41 = vrot.slane %v2207_v8, 4  ;;  %s2273_s2 = sshll.u32 %s432_s17, 4  ;;  %s4817_s20 = sld [smem:[#allocation37_spill]]  ;;  %s4606_s2 = int_to_ptr.vmem [resolvable:$true] %s2273_s2 }
 0x274   : > { %s4818_s29 = sld [smem:[#allocation38_spill]]  ;;  %s4610_s5 = scalar_lea.sflag [#allocation12], %s364_s16 }
 0x275   : > { %v2155_v11 = vrot.slane %v2154_v9, 2  ;;  %v2209_v13 = vadd.f32 %v2208_v41, %v2207_v8  ;;  %s3336_s11 = scalar_lea.vmem %s4598_s18, 16  ;;  %s3537_s7 = smov [#allocation11]  }
 0x276   : > { %p3337_p7 = scmp.ne.s32.totalorder %s4598_s18, %s3336_s11  ;;  %s3340_s3 = sshll.u32 %s3537_s7, 4  ;;  %s3341_s3 = int_to_ptr.vmem [resolvable:$false] %s3340_s3 }
 0x277   : > { %v2156_v47 = vadd.f32 %v2155_v11, %v2154_v9  ;;  %v2210_v15 = vrot.slane %v2209_v13, 2  ;;  %p3343_p1 = scmp.lt.s32.totalorder %s4598_s18, %s3341_s3 }
 0x278   : > { %p3338_p4 = pnand %p3337_p7, %p4816_p5 }
 0x279   : > { %v2211_v40 = vadd.f32 %v2210_v15, %v2209_v13  ;;  %v2157_v17 = vrot.slane %v2156_v47, 1  ;;  %s4596_s9 = scalar_lea.hbm %s4817_s20, %s2617_s26 }
 0x27a   : > { %s4819_s1 = smov %s4818_s29  ;;  %s4604_s30 = scalar_lea.hbm %s4818_s29, %s2617_s26 }
 0x27b   : > { %v2212_v39 = vrot.slane %v2211_v40, 1  ;;  %v2158_v19 = vadd.f32 %v2157_v17, %v2156_v47  ;;  %p3339_p9 = pneg %p3338_p4 }
 0x27d   : > { %2160 = vst.msk [vmem:[%s426_s27] sm:$0x1] %vm2159_vm0, %v2158_v19  ;;  %v2213_v23 = vadd.f32 %v2212_v39, %v2211_v40  ;;  %s3342_s27 = scalar_lea.vmem %s3341_s3, 32 }
 0x27e   : > { %p3344_p0 = scmp.lt.s32.totalorder %s3342_s27, %s3336_s11 }
 0x280   : > { %p3345_p12 = por %p3344_p0, %p3343_p1 }
 0x282   : > { %p3346_p8 = pnand %p3345_p12, %p3339_p9 }
 0x284   : > { %3349 = shalt.err (!%p3346_p8)
}
 0x285   : > { %s3350_s19 = scalar_lea.hbm %s4596_s9, 16  ;;  %s3354_s0 = scalar_lea.hbm %s4817_s20, 64 }
 0x286   : > { %p3351_p13 = scmp.ne.s32.totalorder %s4596_s9, %s3350_s19  ;;  %p3355_p2 = scmp.lt.u32.totalorder %s4596_s9, %s4817_s20 }
 0x287   : > { %p3356_p11 = scmp.lt.u32.totalorder %s3354_s0, %s3350_s19  ;;  %p3358_p7 = scmp.lt.u32.totalorder %s3350_s19, %s4596_s9 }
 0x288   : > { %p3352_p3 = pnand %p3351_p13, %p4816_p5 }
 0x289   : > { %p3357_p10 = por %p3356_p11, %p3355_p2 }
 0x28a   : > { %p3353_p6 = pneg %p3352_p3 }
 0x28b   : > { %p3359_p4 = por %p3358_p7, %p3357_p10 }
 0x28d   : > { %p3360_p9 = pnand %p3359_p4, %p3353_p6 }
 0x28f   : > { %3363 = shalt.err (!%p3360_p9)
}
 0x290   : > { %3040 = dma.vmem_to_hbm [thread:$0]  (%p4816_p5), %s4598_s18, 16, %s4596_s9, %s4610_s5   ;;  %2214 = vst.msk [vmem:[%s432_s17] sm:$0x1] %vm2159_vm0, %v2213_v23 }
 0x291   : > { %s3364_s14 = scalar_lea.vmem %s4606_s2, 16  ;;  %s3538_s29 = smov [#allocation13]  }
 0x292   : > { %p3365_p1 = scmp.ne.s32.totalorder %s4606_s2, %s3364_s14  ;;  %s3368_s11 = sshll.u32 %s3538_s29, 4  ;;  %s3369_s11 = int_to_ptr.vmem [resolvable:$false] %s3368_s11 }
 0x293   : > { %s3370_s7 = scalar_lea.vmem %s3369_s11, 32  ;;  %p3371_p8 = scmp.lt.s32.totalorder %s4606_s2, %s3369_s11 }
 0x294   : > { %p3366_p0 = pnand %p3365_p1, %p4816_p5  ;;  %p3372_p13 = scmp.lt.s32.totalorder %s3370_s7, %s3364_s14 }
 0x296   : > { %p3367_p12 = pneg %p3366_p0  ;;  %p3373_p3 = por %p3372_p13, %p3371_p8 }
 0x298   : > { %p3374_p6 = pnand %p3373_p3, %p3367_p12 }
 0x29a   : > { %3377 = shalt.err (!%p3374_p6)
}
 0x29b   : > { %s3378_s13 = scalar_lea.hbm %s4604_s30, 16  ;;  %s3382_s9 = scalar_lea.hbm %s4819_s1, 64 }
 0x29c   : > { %p3379_p2 = scmp.ne.s32.totalorder %s4604_s30, %s3378_s13  ;;  %p3383_p7 = scmp.lt.u32.totalorder %s4604_s30, %s4819_s1 }
 0x29d   : > { %p3384_p4 = scmp.lt.u32.totalorder %s3382_s9, %s3378_s13  ;;  %p3386_p1 = scmp.lt.u32.totalorder %s3378_s13, %s4604_s30 }
 0x29e   : > { %p3380_p11 = pnand %p3379_p2, %p4816_p5 }
 0x29f   : > { %p3385_p9 = por %p3384_p4, %p3383_p7 }
 0x2a0   : > { %p3381_p10 = pneg %p3380_p11 }
 0x2a1   : > { %p3387_p0 = por %p3386_p1, %p3385_p9 }
 0x2a3   : > { %p3388_p12 = pnand %p3387_p0, %p3381_p10 }
 0x2a5   : > { %3391 = shalt.err (!%p3388_p12)
}
 0x2a6   : > { %3041 = dma.vmem_to_hbm [thread:$0]  (%p4816_p5), %s4606_s2, 16, %s4604_s30, %s4610_s5  }
 0x2a7 PF: > { %s4820_s19 = sld [smem:[#allocation31_spill]]  ;;  %p3072_p8 = scmp.ge.s32.totalorder %s3526_s10, 2 }
 0x2a8   : > { %s2285_s16 = sand.u32 1, %s3486_s24  }
 0x2a9   : > { %s2286_s26 = scalar_lea.sflag [#allocation4], %s2285_s16 }
 0x2ad   : > { %p4821_p13 = scmp.ne.s32.totalorder %s4820_s19, 0 }
 0x2af   : > { %p3060_p3 = pnand %p3072_p8, %p4821_p13 }
 0x2b1   : > { %3465 = dma.done.wait (!%p3060_p3), %s2286_s26, 1024  }
 0x2b2   : > { %3467 = vsyncadd (!%p3060_p3), %s2286_s26, 4294966272  ;;  %s4822_s0 = sadd.s32 4294967294, %s3526_s10  }
 0x2b3   : > { %s2294_s8 = sand.u32 1, %s4822_s0  }
 0x2b4   : > { %s2295_s15 = scalar_lea.sflag [#allocation12], %s2294_s8 }
 0x2b5   : > { %3469 = dma.done.wait (!%p3060_p3), %s2295_s15, 32  }
 0x2b6   : > { %3471 = vsyncadd (!%p3060_p3), %s2295_s15, 4294967264  ;;  %s30_s10 = sadd.s32 1, %s3526_s10   ;;  %s4824_s2 = sld [smem:[#allocation21_spill]] }
 0x2b7   : > { %p4666_p5 = scmp.ge.s32.totalorder %s30_s10, 6   ;;  %s4825_s26 = sld [smem:[#allocation30_spill]] }
 0x2b8   : > { %s4826_s30 = sld [smem:[#allocation22_spill]]  ;;  %s4827_s29 = sld [smem:[#allocation29_spill]] }
 0x2b9   : > { %s4828_s5 = sld [smem:[#allocation25_spill]]  ;;  %s4829_s7 = sld [smem:[#allocation26_spill]] }
 0x2ba   : > { %s4830_s8 = sld [smem:[#allocation27_spill]]  ;;  %s4831_s9 = sld [smem:[#allocation28_spill]] }
 0x2bb   : > { %s4833_s21 = smov %s3478_s22  ;;  %s4834_s22 = smov %s3482_s23 }
 0x2bc   : > { %s4835_s23 = smov %s3879_s4  ;;  %s4836_s24 = smov %s3490_s25 }
 0x2bd   : > { %s4837_s25 = smov %s4824_s2  ;;  %s4838_s27 = smov %s3502_s28 }
 0x2be   : > { %s4839_s28 = smov %s4826_s30  ;;  %29 = sbr.rel (!%p4666_p5) target bundleno = 23 (0x17), region = 150 }
 0x2bf   : > { %s4840_s30 = smov %s4828_s5 }
 0x2c5   :  { %2307 = vsyncpa [#allocation3], 1 }
 0x2c6   :  { %2309 = vsyncpa [#allocation3 + $0x1], 1 }
 0x2c7   :  { %2310 = vsyncpa [#allocation6], 1 }
 0x2c8   :  { %2312 = vsyncpa [#allocation6 + $0x1], 1 }
 0x2c9   :  { %2313 = vsyncpa [#allocation9], 1 }
 0x2ca   :  { %2315 = vsyncpa [#allocation9 + $0x1], 1 }
 0x2cb   :  { %2316 = vsyncpa [#allocation4], 1 }
 0x2cc   :  { %2318 = vsyncpa [#allocation4 + $0x1], 1 }
 0x2cd   :  { %2319 = vsyncpa [#allocation12], 1 }
 0x2ce   :  { %2321 = vsyncpa [#allocation12 + $0x1], 1 }

// kernel: up_forward.4
= control target key start
LH: loop header
LB: loop body
LE: loop exit
PB: predicated region body
PF: predicated region fallthrough
CT: control target
= control target key end

     0   :  { %s5069_s0 = inlined_call_operand.hbm [shape: f32[1,4], index: 0, kind: input, shape index: {}]   ;;  %s5070_s1 = inlined_call_operand.hbm [shape: f32[1,4], index: 1, kind: input, shape index: {}]   ;;  %s5071_s2 = inlined_call_operand.hbm [shape: bf16[3,3,4,4], index: 2, kind: input, shape index: {}]   ;;  %s5072_s3 = inlined_call_operand.hbm [shape: bf16[2,16,16,4], index: 3, kind: input, shape index: {}, may-alias: {3,4,5}]   ;;  %s5073_s4 = inlined_call_operand.hbm [shape: bf16[2,16,16,4], index: 4, kind: input, shape index: {}, may-alias: {3,4,5}]   ;;  %s5074_s5 = inlined_call_operand.hbm [shape: bf16[2,16,16,4], index: 5, kind: input, shape index: {}, may-alias: {3,4,5}]   ;;  %s5075_s6 = inlined_call_operand.hbm [shape: bf16[2,16,16,4], index: 6, kind: output, shape index: {0}]   ;;  %s5076_s7 = inlined_call_operand.hbm [shape: f32[2,2,1,4], index: 7, kind: output, shape index: {1}]   ;;  %s5077_s8 = inlined_call_operand.hbm [shape: f32[2,2,1,4], index: 8, kind: output, shape index: {2}]  }
   0x1   :  { %5107 = sst [smem:[#allocation35_spill]] %s5069_s0 }
   0x2   :  { %5108 = sst [smem:[#allocation36_spill]] %s5070_s1 }
   0x3   :  { %5109 = sst [smem:[#allocation37_spill]] %s5071_s2 }
   0x4   :  { %5110 = sst [smem:[#allocation38_spill]] %s5072_s3 }
   0x5   :  { %5111 = sst [smem:[#allocation39_spill]] %s5074_s5 }
   0x6   :  { %5112 = sst [smem:[#allocation40_spill]] %s5075_s6 }
   0x7   :  { %5113 = sst [smem:[#allocation41_spill]] %s5076_s7 }
   0x8   :  { %5114 = sst [smem:[#allocation42_spill]] %s5077_s8 }
   0x9   :  { %14 = vsyncpa [#allocation3], 0 }
   0xa   :  { %15 = vsyncpa [#allocation6], 0 }
   0xb   :  { %16 = vsyncpa [#allocation9], 0 }
   0xc   :  { %18 = vsyncpa [#allocation9 + $0x1], 0 }
   0xd   :  { %19 = vsyncpa [#allocation12], 0 }
   0xe   :  { %21 = vsyncpa [#allocation12 + $0x1], 0 }
   0xf   :  { %22 = vsyncpa [#allocation4], 0 }
  0x10   :  { %24 = vsyncpa [#allocation4 + $0x1], 0 }
  0x11   :  { %25 = vsyncpa [#allocation15], 0 }
  0x12   :  { %27 = vsyncpa [#allocation15 + $0x1], 0  ;;  %s3864_s27 = smov 0   ;;  %s3866_s28 = smov 0  }
  0x13   :  { %s3868_s29 = smov 0   ;;  %s3870_s30 = smov 0  }
  0x14   :  { %s3872_s9 = smov 0   ;;  %s3874_s10 = smov 0  }
  0x15   :  { %s3876_s11 = smov 0   ;;  %s3878_s12 = smov 0  }
  0x16   :  { %s3880_s13 = smov 0   ;;  %s3882_s14 = smov 0  }
  0x17   :  { %s3884_s15 = smov 0   ;;  %s3886_s16 = smov 0  }
  0x18   :  { %s3888_s17 = smov 0   ;;  %s3890_s18 = smov 0  }
  0x19 LB: > { %5115 = sst [smem:[#allocation24_spill]] %s3750_s27  ;;  %s3804_s19 = smov [#allocation5]   ;;  %s3802_s18 = sphi %s3890_s18, %s33_s18   ;;  %s3798_s17 = sphi %s3888_s17, %s5198_s17   ;;  %s3794_s16 = sphi %s3886_s16, %s5208_s16   ;;  %s3790_s15 = sphi %s3884_s15, %s5207_s15   ;;  %s3786_s14 = sphi %s3882_s14, %s5206_s14   ;;  %s3782_s13 = sphi %s3880_s13, %s5205_s13   ;;  %s3778_s12 = sphi %s3878_s12, %s5204_s12   ;;  %s3774_s11 = sphi %s3876_s11, %s5195_s11   ;;  %s3770_s10 = sphi %s3874_s10, %s5203_s10   ;;  %s3766_s9 = sphi %s3872_s9, %s5202_s9   ;;  %s3762_s30 = sphi %s3870_s30, %s5201_s30   ;;  %s3758_s29 = sphi %s3868_s29, %s5200_s29   ;;  %s3754_s28 = sphi %s3866_s28, %s5194_s28   ;;  %s3750_s27 = sphi %s3864_s27, %s5193_s27  }
  0x1a   : > { %5116 = sst [smem:[#allocation25_spill]] %s3754_s28  ;;  %s321_s20 = sshll.u32 %s3804_s19, 4  ;;  %s322_s20 = int_to_ptr.vmem [resolvable:$true] %s321_s20 }
  0x1b   : > { %5117 = sst [smem:[#allocation26_spill]] %s3758_s29  ;;  %s3935_s21 = sadd.s32 4294967295, %s3802_s18  }
  0x1c   : > { %5118 = sst [smem:[#allocation27_spill]] %s3778_s12  ;;  %p2637_p0 = scmp.ge.s32.totalorder %s3802_s18, 1 }
  0x1d   : > { %5119 = sst [smem:[#allocation28_spill]] %s3786_s14  ;;  %p5082_p1 = scmp.eq.s32.totalorder %s3935_s21, 0 }
  0x1e   : > { %5120 = sst [smem:[#allocation29_spill]] %s3790_s15  ;;  %p297_p3 = scmp.lt.s32.totalorder %s3802_s18, 5 }
  0x1f   : > { %5121 = sst [smem:[#allocation30_spill]] %s3798_s17  ;;  %s5125_s1 = sld [smem:[#allocation36_spill]] }
  0x20   : > { %p3941_p4 = pnand %p2637_p0, %p297_p3 }
  0x22   : > { %s5122_s22 = scalar_select %p3941_p4, 1, 0 }
  0x23   : > { %p3247_p5 = pneg %p3941_p4 }
  0x24   : > { %5123 = sst [smem:[#allocation31_spill]] %s5122_s22 }
  0x25   : > { %p3949_p6 = pnand %p3247_p5, %p5082_p1  ;;  %s3406_s26 = scalar_lea.hbm %s5125_s1, 16 }
  0x26   : > { %p3407_p7 = scmp.ne.s32.totalorder %s5125_s1, %s3406_s26  ;;  %p3413_p11 = scmp.lt.u32.totalorder %s3406_s26, %s5125_s1 }
  0x27   : > { %s5124_s23 = scalar_select %p3949_p6, 1, 0 }
  0x28   : > { %p3961_p8 = pneg %p3949_p6 }
  0x2a   : > { %p3409_p9 = pnand %p3961_p8, %p3407_p7 }
  0x2c   : > { %p3410_p10 = pneg %p3409_p9 }
  0x2e   : > { %p3415_p12 = pnand %p3413_p11, %p3410_p10 }
  0x30   : > { %3418 = shalt.err (!%p3415_p12)
}
  0x31   : > { %s3419_s24 = scalar_lea.vmem %s322_s20, 16  ;;  %s3426_s8 = scalar_lea.vmem %s322_s20, 32 }
  0x32   : > { %p3420_p13 = scmp.ne.s32.totalorder %s322_s20, %s3419_s24  ;;  %p3427_p5 = scmp.lt.s32.totalorder %s322_s20, %s322_s20 }
  0x33   : > { %p3428_p2 = scmp.lt.s32.totalorder %s3426_s8, %s3419_s24 }
  0x34   : > { %p3422_p0 = pnand %p3420_p13, %p3961_p8 }
  0x35   : > { %p3429_p1 = por %p3428_p2, %p3427_p5 }
  0x36   : > { %p3423_p3 = pneg %p3422_p0 }
  0x38   : > { %p3430_p4 = pnand %p3429_p1, %p3423_p3 }
  0x3a   : > { %3433 = shalt.err (!%p3430_p4)
}
  0x3b   : > { %3253 = dma.hbm_to_vmem [thread:$0]  (!%p3949_p6), %s5125_s1, 16, %s322_s20, [#allocation6]  }
  0x3c   : > { %s42_s6 = sadd.s32 1, %s3794_s16  ;;  %s45_s15 = sadd.s32 1, %s3798_s17 }
  0x3d   : > { %p43_p1 = scmp.ge.s32.totalorder %s42_s6, 2  ;;  %s5085_s26 = sshll.u32 %s3794_s16, 3 }
  0x3e   : > { %s2632_s24 = sadd.s32 4294967295, %s5085_s26  ;;  %s125_s8 = sadd.s32 1, %s3782_s13 }
  0x3f   : > { %s5210_s6 = smov (%p43_p1, %s42_s6), 0  ;;  %s5212_s15 = smov (!%p43_p1, %s45_s15), %s3798_s17 }
  0x40   : > { %p114_p2 = scmp.gt.s32.totalorder %s2632_s24, 0  ;;  %s5084_s20 = sshll.u32 %s5210_s6, 3 }
  0x41   : > { %p47_p4 = scmp.ge.s32.totalorder %s5212_s15, 2  ;;  %s2634_s25 = sadd.s32 4294967295, %s5084_s20 }
  0x42   : > { %s5214_s24 = smov (!%p114_p2, %s2632_s24), 0  ;;  %p118_p7 = scmp.gt.s32.totalorder %s2634_s25, 0 }
  0x43   : > { %s5216_s15 = smov (%p47_p4, %s5212_s15), 0  ;;  %p132_p9 = scmp.ne.s32.totalorder %s3782_s13, %s3778_s12 }
  0x44   : > { %5127 = sst [smem:[#allocation32_spill]] %s5216_s15  ;;  %s3995_s19 = ssub.s32 %s3798_s17, %s5216_s15 }
  0x45   : > { %p5096_p10 = scmp.eq.s32.totalorder %s3802_s18, 0  ;;  %s5218_s25 = smov (!%p118_p7, %s2634_s25), 0 }
  0x46   : > { %p138_p12 = scmp.ne.s32.totalorder %s3778_s12, %s3774_s11  ;;  %s121_s26 = ssub.s32 %s5214_s24, %s5218_s25 }
  0x47   : > { %p4000_p11 = por %p5096_p10, %p132_p9  ;;  %s149_s1 = ssub.s32 %s3794_s16, %s5210_s6 }
  0x48   : > { %s122_s14 = sor.u32 %s121_s26, %s3995_s19  ;;  %p5129_p13 = scmp.eq.s32.totalorder %s3935_s21, 0 }
  0x49   : > { %p123_p3 = scmp.eq.s32.totalorder %s122_s14, 0  ;;  %s4016_s15 = sor.u32 %s149_s1, %s3995_s19 }
  0x4a   : > { %p4011_p0 = por %p5129_p13, %p138_p12  ;;  %p5095_p1 = scmp.lt.s32.totalorder %s3802_s18, 4 }
  0x4b   : > { %s4021_s5 = scalar_select %p123_p3, %s3782_s13, %s125_s8  }
  0x4c   : > { %s5130_s22 = scalar_select %p4011_p0, 1, 0 }
  0x4d   : > { %5132 = sst [smem:[#allocation34_spill]] %s4021_s5  ;;  %s345_s27 = sand.u32 1, %s3802_s18  }
  0x4e   : > { %5131 = sst [smem:[#allocation33_spill]] %s5130_s22  ;;  %s347_s11 = sand.u32 1, %s3782_s13  }
  0x4f   : > { %s2642_s25 = sshll.u32 %s347_s11, 3  ;;  %s2645_s12 = sshll.u32 %s5214_s24, 1 }
  0x50   : > { %s4026_s26 = sshll.u32 %s3798_s17, 5  ;;  %s349_s29 = scalar_lea.vmem [#allocation8], %s2642_s25 }
  0x51   : > { %s362_s28 = sshll.u32 %s349_s29, 4  ;;  %s359_s22 = sadd.s32 %s4026_s26, %s2645_s12  ;;  %s4029_s28 = int_to_ptr.vmem [resolvable:$true] %s362_s28 }
  0x52   : > { %s2647_s14 = sshll.u32 %s359_s22, 6  ;;  %p4035_p2 = pnand %p5095_p1, %p4000_p11 }
  0x53   : > { %s5134_s3 = sld [smem:[#allocation38_spill]]  ;;  %s4044_s29 = scalar_lea.sflag [#allocation9], %s345_s27 }
  0x54   : > { %p3436_p7 = pneg %p4035_p2 }
  0x59   : > { %s4042_s24 = scalar_lea.hbm %s5134_s3, %s2647_s14  ;;  %s3439_s20 = scalar_lea.hbm %s5134_s3, 4096 }
  0x5a   : > { %s3434_s12 = scalar_lea.hbm %s4042_s24, 128  ;;  %p3440_p12 = scmp.lt.u32.totalorder %s4042_s24, %s5134_s3 }
  0x5b   : > { %p3435_p4 = scmp.ne.s32.totalorder %s4042_s24, %s3434_s12  ;;  %p3441_p13 = scmp.lt.u32.totalorder %s3439_s20, %s3434_s12 }
  0x5c   : > { %p3443_p1 = scmp.lt.u32.totalorder %s3434_s12, %s4042_s24 }
  0x5d   : > { %p3437_p9 = pnand %p3436_p7, %p3435_p4  ;;  %p3442_p3 = por %p3441_p13, %p3440_p12 }
  0x5f   : > { %p3438_p11 = pneg %p3437_p9  ;;  %p3444_p10 = por %p3443_p1, %p3442_p3 }
  0x61   : > { %p3445_p5 = pnand %p3444_p10, %p3438_p11 }
  0x63   : > { %3448 = shalt.err (!%p3445_p5)
}
  0x64   : > { %s3449_s27 = scalar_lea.vmem %s4029_s28, 128  ;;  %s3805_s14 = smov [#allocation8]  }
  0x65   : > { %p3450_p4 = scmp.ne.s32.totalorder %s4029_s28, %s3449_s27  ;;  %s3454_s8 = sshll.u32 %s3805_s14, 4  ;;  %s3455_s8 = int_to_ptr.vmem [resolvable:$false] %s3454_s8 }
  0x66   : > { %s3456_s22 = scalar_lea.vmem %s3455_s8, 256  ;;  %p3457_p6 = scmp.lt.s32.totalorder %s4029_s28, %s3455_s8 }
  0x67   : > { %p3452_p9 = pnand %p3450_p4, %p3436_p7  ;;  %p3458_p12 = scmp.lt.s32.totalorder %s3456_s22, %s3449_s27 }
  0x69   : > { %p3453_p0 = pneg %p3452_p9  ;;  %p3459_p13 = por %p3458_p12, %p3457_p6 }
  0x6b   : > { %p3460_p1 = pnand %p3459_p13, %p3453_p0 }
  0x6d   : > { %3463 = shalt.err (!%p3460_p1)
}
  0x6e   : > { %s5103_s12 = smov 64   ;;  %s5104_s5 = smov 4  }
  0x6f   : > { %3260 = dma.hbm_to_vmem [thread:$0]  (!%p4035_p2), %s4042_s24, 128, %s4029_s28, %s4044_s29, %s5103_s12, %s5103_s12, %s5104_s5  }
  0x70   : > { %s3808_s20 = smov [#allocation2]   ;;  %s3809_s25 = smov [#allocation7]  }
  0x71   : > { %s310_s11 = sshll.u32 %s3808_s20, 4  ;;  %s331_s14 = sshll.u32 %s3809_s25, 4  ;;  %s311_s11 = int_to_ptr.vmem [resolvable:$true] %s310_s11  ;;  %s4075_s14 = int_to_ptr.vmem [resolvable:$true] %s331_s14 }
  0x72   : > { %s5135_s0 = sld [smem:[#allocation35_spill]] }
  0x78   : > { %s3464_s22 = scalar_lea.hbm %s5135_s0, 16 }
  0x79   : > { %p3465_p6 = scmp.ne.s32.totalorder %s5135_s0, %s3464_s22  ;;  %p3471_p5 = scmp.lt.u32.totalorder %s3464_s22, %s5135_s0 }
  0x7b   : > { %p3467_p10 = pnand %p3465_p6, %p3961_p8 }
  0x7d   : > { %p3468_p0 = pneg %p3467_p10 }
  0x7f   : > { %p3473_p2 = pnand %p3471_p5, %p3468_p0 }
  0x81   : > { %3476 = shalt.err (!%p3473_p2)
}
  0x82   : > { %s3477_s24 = scalar_lea.vmem %s311_s11, 16  ;;  %s3484_s20 = scalar_lea.vmem %s311_s11, 32 }
  0x83   : > { %p3478_p7 = scmp.ne.s32.totalorder %s311_s11, %s3477_s24  ;;  %p3485_p4 = scmp.lt.s32.totalorder %s311_s11, %s311_s11 }
  0x84   : > { %p3486_p9 = scmp.lt.s32.totalorder %s3484_s20, %s3477_s24 }
  0x85   : > { %p3480_p11 = pnand %p3478_p7, %p3961_p8 }
  0x86   : > { %p3487_p12 = por %p3486_p9, %p3485_p4 }
  0x87   : > { %p3481_p3 = pneg %p3480_p11 }
  0x89   : > { %p3488_p13 = pnand %p3487_p12, %p3481_p3 }
  0x8b   : > { %3491 = shalt.err (!%p3488_p13)
}
  0x8c   : > { %p5136_p1 = scmp.ne.s32.totalorder %s5124_s23, 0  ;;  %s5137_s2 = sld [smem:[#allocation37_spill]] }
  0x8e   : > { %3250 = dma.hbm_to_vmem [thread:$0]  (!%p5136_p1), %s5135_s0, 16, %s311_s11, [#allocation3]  }
  0x92   : > { %s3492_s8 = scalar_lea.hbm %s5137_s2, 288 }
  0x93   : > { %p3493_p6 = scmp.ne.s32.totalorder %s5137_s2, %s3492_s8  ;;  %p3499_p5 = scmp.lt.u32.totalorder %s3492_s8, %s5137_s2 }
  0x95   : > { %p3495_p10 = pnand %p3493_p6, %p3961_p8 }
  0x97   : > { %p3496_p0 = pneg %p3495_p10 }
  0x99   : > { %p3501_p2 = pnand %p3499_p5, %p3496_p0 }
  0x9b   : > { %3504 = shalt.err (!%p3501_p2)
}
  0x9c   : > { %s3505_s11 = scalar_lea.vmem %s4075_s14, 288  ;;  %p3513_p4 = scmp.lt.s32.totalorder %s4075_s14, %s4075_s14 }
  0x9d   : > { %p3506_p7 = scmp.ne.s32.totalorder %s4075_s14, %s3505_s11  ;;  %p3514_p9 = scmp.lt.s32.totalorder %s3505_s11, %s3505_s11 }
  0x9f   : > { %p3508_p11 = pnand %p3506_p7, %p3961_p8  ;;  %p3515_p12 = por %p3514_p9, %p3513_p4 }
  0xa1   : > { %p3509_p3 = pneg %p3508_p11 }
  0xa3   : > { %p3516_p13 = pnand %p3515_p12, %p3509_p3 }
  0xa5   : > { %3519 = shalt.err (!%p3516_p13)
}
  0xa6   : > { %s3810_s20 = smov 32   ;;  %s3811_s7 = smov 2  }
  0xa7   : > { %3256 = dma.hbm_to_vmem [thread:$0]  (!%p5136_p1), %s5137_s2, 288, %s4075_s14, [#allocation6], %s3810_s20, %s3810_s20, %s3811_s7  }
  0xa8   : > { %s5101_s25 = sadd.s32 4294967294, %s3802_s18   ;;  %s153_s27 = sadd.s32 1, %s3770_s10 }
  0xa9   : > { %p5138_p8 = scmp.eq.s32.totalorder %s4016_s15, 0  ;;  %p160_p6 = scmp.ne.s32.totalorder %s3770_s10, %s3766_s9 }
  0xaa   : > { %p166_p10 = scmp.ne.s32.totalorder %s3766_s9, %s3762_s30  ;;  %p234_p0 = scmp.eq.s32.totalorder %s5101_s25, 3 }
  0xab   : > { %s4123_s8 = scalar_select %p5138_p8, %s3770_s10, %s153_s27  }
  0xac   : > { %s374_s22 = sand.u32 1, %s3770_s10   ;;  %p5139_p5 = scmp.eq.s32.totalorder %s3802_s18, 0 }
  0xad   : > { %p5140_p7 = scmp.eq.s32.totalorder %s3935_s21, 0  ;;  %p5142_p3 = scmp.eq.s32.totalorder %s3935_s21, 3 }
  0xae   : > { %p162_p2 = por %p160_p6, %p5139_p5  ;;  %p4146_p4 = por %p234_p0, %p166_p10 }
  0xaf   : > { %p4136_p11 = por %p166_p10, %p5140_p7  ;;  %p4142_p1 = por %p5142_p3, %p160_p6 }
  0xb0   : > { %s5144_s15 = scalar_select %p4146_p4, 1, 0 }
  0xb1   : > { %s5143_s14 = scalar_select %p4142_p1, 1, 0 }
  0xb2   : > { %s2648_s1 = sshll.u32 %s374_s22, 6  ;;  %s2773_s28 = sshll.u32 %s3794_s16, 4 }
  0xb3   : > { %s383_s24 = sadd.s32 %s2773_s28, %s4026_s26  ;;  %s376_s20 = scalar_lea.vmem [#allocation10], %s2648_s1 }
  0xb4   : > { %s2652_s11 = sshll.u32 %s383_s24, 6  ;;  %s386_s7 = sshll.u32 %s376_s20, 4  ;;  %s4157_s7 = int_to_ptr.vmem [resolvable:$true] %s386_s7 }
  0xb5   : > { %s4155_s27 = scalar_lea.hbm %s5073_s4, %s2652_s11  ;;  %p5145_p9 = scmp.lt.s32.totalorder %s3802_s18, 4 }
  0xb6   : > { %s3520_s22 = scalar_lea.hbm %s4155_s27, 1024  ;;  %s3525_s24 = scalar_lea.hbm %s5073_s4, 4096 }
  0xb7   : > { %p4161_p12 = pnand %p5145_p9, %p162_p2  ;;  %p3521_p13 = scmp.ne.s32.totalorder %s4155_s27, %s3520_s22 }
  0xb8   : > { %p3526_p0 = scmp.lt.u32.totalorder %s4155_s27, %s5073_s4  ;;  %p3527_p5 = scmp.lt.u32.totalorder %s3525_s24, %s3520_s22 }
  0xb9   : > { %p3522_p8 = pneg %p4161_p12  ;;  %p3529_p7 = scmp.lt.u32.totalorder %s3520_s22, %s4155_s27 }
  0xba   : > { %p3528_p2 = por %p3527_p5, %p3526_p0 }
  0xbb   : > { %p3523_p6 = pnand %p3522_p8, %p3521_p13 }
  0xbc   : > { %p3530_p3 = por %p3529_p7, %p3528_p2 }
  0xbd   : > { %p3524_p10 = pneg %p3523_p6 }
  0xbf   : > { %p3531_p9 = pnand %p3530_p3, %p3524_p10 }
  0xc1   : > { %3534 = shalt.err (!%p3531_p9)
}
  0xc2   : > { %s3535_s3 = scalar_lea.vmem %s4157_s7, 1024  ;;  %s3812_s17 = smov [#allocation10]  }
  0xc3   : > { %p3536_p13 = scmp.ne.s32.totalorder %s4157_s7, %s3535_s3  ;;  %s3540_s1 = sshll.u32 %s3812_s17, 4  ;;  %s3541_s1 = int_to_ptr.vmem [resolvable:$false] %s3540_s1 }
  0xc4   : > { %s3542_s28 = scalar_lea.vmem %s3541_s1, 2048  ;;  %p3543_p1 = scmp.lt.s32.totalorder %s4157_s7, %s3541_s1 }
  0xc5   : > { %p3538_p6 = pnand %p3536_p13, %p3522_p8  ;;  %p3544_p0 = scmp.lt.s32.totalorder %s3542_s28, %s3535_s3 }
  0xc7   : > { %p3539_p4 = pneg %p3538_p6  ;;  %p3545_p5 = por %p3544_p0, %p3543_p1 }
  0xc9   : > { %p3546_p2 = pnand %p3545_p5, %p3539_p4 }
  0xcb   : > { %3549 = shalt.err (!%p3546_p2)
}
  0xcc   : > { %s5147_s22 = sld [smem:[#allocation25_spill]]  ;;  %s5148_s24 = sld [smem:[#allocation26_spill]] }
  0xcd   : > { %s5149_s11 = sld [smem:[#allocation24_spill]]  ;;  %s5150_s20 = sshll.u32 %s3794_s16, 3 }
  0xce   : > { %3263 = dma.hbm_to_vmem [thread:$0]  (!%p4161_p12), %s4155_s27, 1024, %s4157_s7, %s4044_s29, %s5103_s12, %s5103_s12, %s5104_s5  }
  0xcf   : > { %s2770_s25 = sadd.s32 8, %s5150_s20  ;;  %s5151_s3 = sshll.u32 %s5210_s6, 3 }
  0xd0   : > { %s2772_s17 = sadd.s32 8, %s5151_s3  ;;  %p178_p1 = scmp.lt.s32.totalorder %s2770_s25, 15 }
  0xd1   : > { %p182_p4 = scmp.lt.s32.totalorder %s2772_s17, 15  ;;  %p5152_p7 = scmp.eq.s32.totalorder %s3935_s21, 0 }
  0xd2   : > { %p196_p8 = scmp.ne.s32.totalorder %s5148_s24, %s5147_s22  ;;  %s5220_s25 = smov (!%p178_p1, %s2770_s25), 15 }
  0xd3   : > { %s5222_s17 = smov (!%p182_p4, %s2772_s17), 15  ;;  %s189_s1 = sadd.s32 1, %s5148_s24 }
  0xd4   : > { %p202_p10 = scmp.ne.s32.totalorder %s5147_s22, %s5149_s11  ;;  %s185_s28 = ssub.s32 %s5220_s25, %s5222_s17 }
  0xd5   : > { %s396_s0 = sand.u32 1, %s5148_s24   ;;  %s186_s2 = sor.u32 %s185_s28, %s3995_s19 }
  0xd6   : > { %p4207_p3 = por %p202_p10, %p5152_p7  ;;  %p187_p12 = scmp.eq.s32.totalorder %s186_s2, 0 }
  0xd7   : > { %p5154_p9 = scmp.eq.s32.totalorder %s3802_s18, 0  ;;  %s2653_s7 = sshll.u32 %s396_s0, 3 }
  0xd8   : > { %s5153_s29 = scalar_select %p4207_p3, 1, 0 }
  0xd9   : > { %p198_p13 = por %p196_p8, %p5154_p9  ;;  %s2655_s27 = sshll.u32 %s5220_s25, 1 }
  0xda   : > { %s5224_s24 = smov (!%p187_p12, %s5148_s24), %s189_s1  ;;  %s410_s20 = sadd.s32 %s2655_s27, %s4026_s26 }
  0xdb   : > { %s2657_s3 = sshll.u32 %s410_s20, 6  ;;  %s400_s12 = scalar_lea.vmem [#allocation11], %s2653_s7 }
  0xdc   : > { %s413_s22 = sshll.u32 %s400_s12, 4  ;;  %s5155_s5 = sld [smem:[#allocation39_spill]]  ;;  %s4222_s22 = int_to_ptr.vmem [resolvable:$true] %s413_s22 }
  0xdd   : > { %p5156_p6 = scmp.lt.s32.totalorder %s3802_s18, 4  ;;  %s4230_s26 = scalar_lea.sflag [#allocation12], %s396_s0 }
  0xdf   : > { %p4226_p0 = pnand %p5156_p6, %p198_p13 }
  0xe1   : > { %p3552_p2 = pneg %p4226_p0 }
  0xe2   : > { %s4220_s19 = scalar_lea.hbm %s5155_s5, %s2657_s3  ;;  %s3555_s28 = scalar_lea.hbm %s5155_s5, 4096 }
  0xe3   : > { %s3550_s12 = scalar_lea.hbm %s4220_s19, 128  ;;  %p3556_p8 = scmp.lt.u32.totalorder %s4220_s19, %s5155_s5 }
  0xe4   : > { %p3551_p5 = scmp.ne.s32.totalorder %s4220_s19, %s3550_s12  ;;  %p3557_p10 = scmp.lt.u32.totalorder %s3555_s28, %s3550_s12 }
  0xe5   : > { %p3559_p12 = scmp.lt.u32.totalorder %s3550_s12, %s4220_s19 }
  0xe6   : > { %p3553_p1 = pnand %p3552_p2, %p3551_p5  ;;  %p3558_p7 = por %p3557_p10, %p3556_p8 }
  0xe8   : > { %p3554_p4 = pneg %p3553_p1  ;;  %p3560_p9 = por %p3559_p12, %p3558_p7 }
  0xea   : > { %p3561_p13 = pnand %p3560_p9, %p3554_p4 }
  0xec   : > { %3564 = shalt.err (!%p3561_p13)
}
  0xed   : > { %s3565_s0 = scalar_lea.vmem %s4222_s22, 128  ;;  %s3813_s20 = smov [#allocation11]  }
  0xee   : > { %p3566_p6 = scmp.ne.s32.totalorder %s4222_s22, %s3565_s0  ;;  %s3570_s3 = sshll.u32 %s3813_s20, 4  ;;  %s3571_s3 = int_to_ptr.vmem [resolvable:$false] %s3570_s3 }
  0xef   : > { %s3572_s11 = scalar_lea.vmem %s3571_s3, 256  ;;  %p3573_p3 = scmp.lt.s32.totalorder %s4222_s22, %s3571_s3 }
  0xf0   : > { %p3568_p5 = pnand %p3566_p6, %p3552_p2  ;;  %p3574_p8 = scmp.lt.s32.totalorder %s3572_s11, %s3565_s0 }
  0xf2   : > { %p3569_p1 = pneg %p3568_p5  ;;  %p3575_p10 = por %p3574_p8, %p3573_p3 }
  0xf4   : > { %p3576_p7 = pnand %p3575_p10, %p3569_p1 }
  0xf6   : > { %3579 = shalt.err (!%p3576_p7)
}
  0xf7   : > { %s5158_s17 = smov 4   ;;  %s5159_s12 = smov 64  }
  0xf8   : > { %3266 = dma.hbm_to_vmem [thread:$0]  (!%p4226_p0), %s4220_s19, 128, %s4222_s22, %s4230_s26, %s5159_s12, %s5159_s12, %s5158_s17  }
  0xf9   : > { %s5160_s25 = sld [smem:[#allocation31_spill]] }
  0xff   : > { %p5161_p2 = scmp.ne.s32.totalorder %s5160_s25, 0 }
 0x100   : > { %p5162_p4 = scmp.eq.s32.totalorder (!%p5161_p2), %s3935_s21, 0 }
 0x101   : > { %425 = sbr.rel (%p5161_p2) target bundleno = 769 (0x301), region = 44 }
 0x108   : > { %3721 = dma.done.wait (%p5162_p4), [#allocation3], 16   ;;  %p5163_p12 = pmov %p5162_p4 }
 0x109   : > { %p5164_p3 = pmov %p5162_p4 }
 0x10a   : > { %3723 = vsyncadd (%p5163_p12), [#allocation3], 4294967280 }
 0x10b   : > { %3725 = dma.done.wait (%p5164_p3), [#allocation6], 304   ;;  %p5165_p9 = pmov %p5164_p3 }
 0x10c   : > { %s5166_s2 = sld [smem:[#allocation27_spill]]  ;;  %s439_s22 = sand.u32 1, %s3935_s21  }
 0x10d   : > { %3727 = vsyncadd (%p5165_p9), [#allocation6], 4294966992  ;;  %s5167_s1 = sld [smem:[#allocation33_spill]]  ;;  %s440_s28 = scalar_lea.sflag [#allocation9], %s439_s22 }
 0x112   : > { %s441_s19 = sand.u32 1, %s5166_s2  }
 0x113   : > { %s4273_s26 = sshll.u32 %s441_s19, 3  ;;  %p5168_p0 = scmp.ne.s32.totalorder %s5167_s1, 0 }
 0x114   : > { %s443_s7 = scalar_lea.vmem [#allocation8], %s4273_s26 }
 0x115   : > { %3729 = dma.done.wait (%p5168_p0), %s440_s28, 128  }
 0x116   : > { %3731 = vsyncadd (%p5168_p0), %s440_s28, 4294967168  ;;  %s4283_s27 = sand.u32 1, %s3766_s9  }
 0x117   : > { %s2663_s0 = sshll.u32 %s4283_s27, 6 }
 0x118   : > { %s4288_s20 = scalar_lea.vmem [#allocation10], %s2663_s0 }
 0x119   : > { %3733 = dma.done.wait (%p4136_p11), %s440_s28, 1024  }
 0x11a   : > { %3735 = vsyncadd (%p4136_p11), %s440_s28, 4294966272  ;;  %s5169_s3 = sld [smem:[#allocation25_spill]]  ;;  %p5170_p13 = scmp.ne.s32.totalorder %s5153_s29, 0 }
 0x120   : > { %s457_s11 = sand.u32 1, %s5169_s3  }
 0x121   : > { %s4295_s17 = sshll.u32 %s457_s11, 3  ;;  %s458_s12 = scalar_lea.sflag [#allocation12], %s457_s11 }
 0x122   : > { %s461_s25 = scalar_lea.vmem [#allocation11], %s4295_s17 }
 0x123   : > { %3737 = dma.done.wait (%p5170_p13), %s458_s12, 128  }
 0x124   : > { %3739 = vsyncadd (%p5170_p13), %s458_s12, 4294967168  ;;  %s5171_s2 = sld [smem:[#allocation28_spill]]  ;;  %vm967_vm0 = vcmask 1041408   ;;  %v941_v5 = vld [vmem:[#allocation7 + $0x2] sm:$0x3]  ;;  %v2794_v7 = vld [vmem:[%s443_s7] sm:$0xff]  }
 0x125   : > { %v4317_v6 = vld [vmem:[#allocation7 + $0x8] sm:$0x3]  ;;  %3213 = vmatprep.subr.msk.bf16.mxu1 %vm967_vm0, %v941_v5  ;;  %v969_v8 = vsel %vm967_vm0, %v941_v5, 0  ;;  %v2795_v10 = vunpack.c.l.bf16 %v2794_v7  ;;  %v2796_v11 = vunpack.c.h.bf16 %v2794_v7  ;;  %v4327_v12 = vld [vmem:[#allocation2] ss:$0 sm:$0xff]  ;;  %v2833_v21 = vld [vmem:[%s4288_s20 + $0x8] sm:$0xff]  }
 0x126   : > { %3217 = vmatprep.subr.msk.bf16.mxu0 %vm967_vm0, %v4317_v6  ;;  %v4325_v9 = vsel %vm967_vm0, %v4317_v6, 0  ;;  %v4329_v13 = vld [vmem:[#allocation5] ss:$0 sm:$0xff]  ;;  %2922 = vmatpush3.bf16.msra.mxu1 %v969_v8  ;;  %v4332_v14 = vld [vmem:[#allocation7] sm:$0x3]  ;;  %v2798_v15 = vld [vmem:[%s4288_s20] sm:$0xff]   ;;  %v2803_v23 = vunpack.c.l.bf16 %v2833_v21  ;;  %v2804_v24 = vunpack.c.h.bf16 %v2833_v21 }
 0x127   : > { %2994 = vmatpush3.bf16.msra.mxu0 %v4325_v9  ;;  %v4335_v16 = vld [vmem:[#allocation7 + $0xa] sm:$0x3]  ;;  %v570_v17 = vmul.f32 %v2795_v10, %v4327_v12  ;;  %v571_v18 = vmul.f32 %v2796_v11, %v4327_v12  ;;  %3214 = vmatprep.subr.msk.bf16.mxu1 %vm967_vm0, %v4332_v14  ;;  %v2799_v19 = vunpack.c.l.bf16 %v2798_v15  ;;  %v2800_v20 = vunpack.c.h.bf16 %v2798_v15  ;;  %v2834_v22 = vld [vmem:[%s4288_s20 + $0x10] sm:$0xff]   ;;  %v2835_v57 = vld [vmem:[%s4288_s20 + $0x18] sm:$0xff]   ;;  %s4814_s23 = scalar_lea.vmem [#allocation13], %s2663_s0  ;;  %s5182_s29 = sld [smem:[#allocation29_spill]] }
 0x128   : > { %3219 = vmatprep.subr.msk.bf16.mxu0 %vm967_vm0, %v4335_v16  ;;  %vm819_vm7 = vcmask 1040384   ;;  %vm820_vm8 = vsmask.f32 256  ;;  %v574_v29 = vmul.f32 %v2803_v23, %v4327_v12  ;;  %v575_v30 = vmul.f32 %v2804_v24, %v4327_v12  ;;  %s5183_s17 = sld [smem:[#allocation40_spill]]  ;;  %p5185_p6 = scmp.ne.s32.totalorder %s5143_s14, 0 }
 0x129   : > { %v597_v25 = vadd.f32 %v4329_v13, %v570_v17  ;;  %v598_v26 = vadd.f32 %v4329_v13, %v571_v18  ;;  %v572_v27 = vmul.f32 %v2799_v19, %v4327_v12  ;;  %v573_v28 = vmul.f32 %v2800_v20, %v4327_v12 }
 0x12a   : > { %s2668_s1 = sshll.u32 %s5171_s2, 3  ;;  %v2807_v31 = vunpack.c.l.bf16 %v2834_v22  ;;  %v2808_v32 = vunpack.c.h.bf16 %v2834_v22  ;;  %v601_v37 = vadd.f32 %v4329_v13, %v574_v29  ;;  %v602_v38 = vadd.f32 %v4329_v13, %v575_v30  ;;  %s2792_s26 = sshll.u32 %s5171_s2, 4 }
 0x12b   : > { %s2669_s19 = sadd.s32 4294967295, %s2668_s1  ;;  %v617_v33 = vmax.f32 %v597_v25, 0.0  ;;  %v618_v34 = vmax.f32 %v598_v26, 0.0  ;;  %v599_v35 = vadd.f32 %v4329_v13, %v572_v27  ;;  %v600_v36 = vadd.f32 %v4329_v13, %v573_v28 }
 0x12c   : > { %v4305_v0 = vstv %s2669_s19  ;;  %v576_v39 = vmul.f32 %v2807_v31, %v4327_v12  ;;  %v577_v40 = vmul.f32 %v2808_v32, %v4327_v12  ;;  %v621_v46 = vmax.f32 %v601_v37, 0.0 }
 0x12d   : > { %v640_v1 = vadd.s32 1, %v4305_v0  ;;  %v641_v2 = vadd.s32 2, %v4305_v0  ;;  %vm649_vm1 = vcmp.ge.s32.totalorder %v4305_v0, 0  ;;  %vm659_vm2 = vcmp.lt.s32.totalorder %v4305_v0, 16  ;;  %s2761_s28 = sshll.u32 %s5182_s29, 5 }
 0x12e   : > { %v4312_v3 = vadd.s32 3, %v4305_v0  ;;  %v4315_v4 = vadd.s32 4, %v4305_v0  ;;  %vm669_vm11 = vmand %vm649_vm1, %vm659_vm2  ;;  %v619_v43 = vmax.f32 %v599_v35, 0.0  ;;  %v620_v44 = vmax.f32 %v600_v36, 0.0  ;;  %s2369_s7 = sadd.s32 %s2792_s26, %s2761_s28  ;;  %s3814_s26 = smov [#allocation13]  }
 0x12f   : > { %vm650_vm3 = vcmp.ge.s32.totalorder %v640_v1, 0  ;;  %vm660_vm4 = vcmp.lt.s32.totalorder %v640_v1, 16  ;;  %vm651_vm5 = vcmp.ge.s32.totalorder %v641_v2, 0  ;;  %vm661_vm6 = vcmp.lt.s32.totalorder %v641_v2, 16  ;;  %vm4383_vm2 = vmand %vm819_vm7, %vm820_vm8  ;;  %s2762_s0 = sshll.u32 %s2369_s7, 6  ;;  %s3584_s28 = sshll.u32 %s3814_s26, 4  ;;  %s3585_s28 = int_to_ptr.vmem [resolvable:$false] %s3584_s28 }
 0x130   : > { %vm652_vm9 = vcmp.ge.s32.totalorder %v4312_v3, 0  ;;  %vm662_vm10 = vcmp.lt.s32.totalorder %v4312_v3, 16  ;;  %vm670_vm12 = vmand %vm650_vm3, %vm660_vm4  ;;  %v699_v41 = vsel %vm669_vm11, %v617_v33, 0.0  ;;  %v700_v42 = vsel %vm669_vm11, %v618_v34, 0.0  ;;  %s4905_s12 = scalar_lea.hbm %s5183_s17, %s2762_s0  ;;  %s3586_s7 = scalar_lea.vmem %s3585_s28, 2048 }
 0x131   : > { %vm671_vm13 = vmand %vm651_vm5, %vm661_vm6  ;;  %v719_v45 = vpack.c.bf16 %v700_v42, %v699_v41  ;;  %v622_v47 = vmax.f32 %v602_v38, 0.0  ;;  %v603_v48 = vadd.f32 %v4329_v13, %v576_v39  ;;  %v701_v49 = vsel %vm670_vm12, %v619_v43, 0.0 }
 0x132   : > { %v702_v50 = vsel %vm670_vm12, %v620_v44, 0.0  ;;  %v604_v51 = vadd.f32 %v4329_v13, %v577_v40  ;;  %v4370_v52 = vadd.s32 5, %v4305_v0  ;;  %v703_v56 = vsel %vm671_vm13, %v621_v46, 0.0  ;;  %vm672_vm14 = vmand %vm652_vm9, %vm662_vm10 }
 0x133   : > { %v730_v53 = vshrl.u32 %v719_v45, 16  ;;  %v733_v54 = vshll.u32 %v719_v45, 16  ;;  %v720_v55 = vpack.c.bf16 %v702_v50, %v701_v49  ;;  %v704_v58 = vsel %vm671_vm13, %v622_v47, 0.0 }
 0x134   : > { %v623_v59 = vmax.f32 %v603_v48, 0.0  ;;  %v624_v60 = vmax.f32 %v604_v51, 0.0  ;;  %v4378_v61 = vadd.s32 6, %v4305_v0  ;;  %vm843_vm15 = vsmask.f32 7424 }
 0x135   : > { %v732_v62 = vrot.slane %v730_v53, 7  ;;  %v737_v63 = vshrl.u32 %v720_v55, 16  ;;  %v740_v1 = vshll.u32 %v720_v55, 16  ;;  %v721_v2 = vpack.c.bf16 %v704_v58, %v703_v56  ;;  %v2836_v56 = vld [vmem:[%s4288_s20 + $0x20] sm:$0xff]  }
 0x136   : > { %vm653_vm1 = vcmp.ge.s32.totalorder %v4315_v4, 0  ;;  %vm942_vm3 = vcmask 31744   ;;  %v705_v3 = vsel %vm672_vm14, %v623_v59, 0.0  ;;  %v706_v7 = vsel %vm672_vm14, %v624_v60, 0.0 }
 0x137   : > { %v2811_v8 = vunpack.c.l.bf16 %v2835_v57  ;;  %v2812_v10 = vunpack.c.h.bf16 %v2835_v57  ;;  %v735_v11 = vor.u32 %v733_v54, %v732_v62  ;;  %v4389_v15 = vsel %vm4383_vm2, %v732_v62, 0 }
 0x138   : > { %v739_v17 = vrot.slane %v737_v63, 7  ;;  %v744_v18 = vshrl.u32 %v721_v2, 16  ;;  %v852_v19 = vshll.u32 %v4389_v15, 16  ;;  %v747_v20 = vshll.u32 %v721_v2, 16 }
 0x139   : > { %v722_v21 = vpack.c.bf16 %v706_v7, %v705_v3  ;;  %vm663_vm4 = vcmp.lt.s32.totalorder %v4315_v4, 16  ;;  %v4395_v22 = vsel %vm4383_vm2, 0, %v735_v11  ;;  %v578_v29 = vmul.f32 %v2811_v8, %v4327_v12  ;;  %v2837_v8 = vld [vmem:[%s4288_s20 + $0x28] sm:$0xff]  }
 0x13a   : > { %v742_v23 = vor.u32 %v740_v1, %v739_v17  ;;  %v4399_v24 = vsel %vm4383_vm2, %v739_v17, 0  ;;  %v746_v25 = vrot.slane %v744_v18, 7  ;;  %v845_v26 = vshrl.u32 %v4395_v22, 16  ;;  %vm4431_vm6 = vmand %vm653_vm1, %vm663_vm4 }
 0x13b   : > { %v847_v27 = vshll.u32 %v4395_v22, 16  ;;  %v864_v28 = vshll.u32 %v4399_v24, 16  ;;  %v579_v33 = vmul.f32 %v2812_v10, %v4327_v12  ;;  %v854_v35 = vrot.slane %v852_v19, 1  ;;  %v4456_v10 = vld [vmem:[#allocation7 + $0x4] sm:$0x3] }
 0x13c   : > { %v4407_v30 = vsel %vm4383_vm2, 0, %v742_v23  ;;  %v749_v31 = vor.u32 %v747_v20, %v746_v25  ;;  %v4411_v32 = vsel %vm4383_vm2, %v746_v25, 0  ;;  %v751_v41 = vshrl.u32 %v722_v21, 16 }
 0x13d   : > { %v849_v34 = vrot.slane %v847_v27, 1  ;;  %v857_v36 = vshrl.u32 %v4407_v30, 16  ;;  %v859_v37 = vshll.u32 %v4407_v30, 16  ;;  %v866_v38 = vrot.slane %v864_v28, 1 }
 0x13e   : > { %v4418_v39 = vsel %vm4383_vm2, 0, %v749_v31  ;;  %v876_v40 = vshll.u32 %v4411_v32, 16  ;;  %vm654_vm5 = vcmp.ge.s32.totalorder %v4370_v52, 0  ;;  %v753_v47 = vrot.slane %v751_v41, 7 }
 0x13f   : > { %v850_v42 = vor.u32 %v849_v34, %v845_v26  ;;  %v861_v43 = vrot.slane %v859_v37, 1  ;;  %v869_v44 = vshrl.u32 %v4418_v39, 16  ;;  %v871_v45 = vshll.u32 %v4418_v39, 16 }
 0x140   : > { %v878_v46 = vrot.slane %v876_v40, 1  ;;  %v754_v48 = vshll.u32 %v722_v21, 16  ;;  %v605_v49 = vadd.f32 %v4329_v13, %v578_v29  ;;  %v606_v54 = vadd.f32 %v4329_v13, %v579_v33 }
 0x141   : > { %v855_v50 = vsel %vm843_vm15, %v850_v42, %v854_v35  ;;  %v862_v51 = vor.u32 %v861_v43, %v857_v36  ;;  %v873_v53 = vrot.slane %v871_v45, 1  ;;  %v1085_v57 = vsel %vm967_vm0, %v4332_v14, 0 }
 0x142   : > { %2923 = vmatprep.mubr.msk.bf16.mxu1 %vm942_vm3, %v855_v50  ;;  %v756_v58 = vor.u32 %v754_v48, %v753_v47  ;;  %v4441_v59 = vsel %vm4383_vm2, %v753_v47, 0  ;;  %v625_v60 = vmax.f32 %v605_v49, 0.0  ;;  %v626_v1 = vmax.f32 %v606_v54, 0.0 }
 0x143   : > { %v867_v62 = vsel %vm843_vm15, %v862_v51, %v866_v38  ;;  %v874_v4 = vor.u32 %v873_v53, %v869_v44  ;;  %v888_v63 = vshll.u32 %v4441_v59, 16  ;;  %v1631_v2 = vsel %vm967_vm0, %v4335_v16, 0  ;;  %v4463_v16 = vld [vmem:[#allocation7 + $0xc] sm:$0x3] }
 0x144   : > { %2995 = vmatprep.mubr.msk.bf16.mxu0 %vm942_vm3, %v867_v62  ;;  %2924 = vmatmul.mubr.msk.bf16.vlgmr.msra.gmra.mrb[0].mxu1 %vm942_vm3, %v867_v62  ;;  %v4451_v14 = vsel %vm4383_vm2, 0, %v756_v58  ;;  %v707_v3 = vsel %vm4431_vm6, %v625_v60, 0.0  ;;  %v2815_v7 = vunpack.c.l.bf16 %v2836_v56  ;;  %vm664_vm7 = vcmp.lt.s32.totalorder %v4370_v52, 16  ;;  %v2838_v52 = vld [vmem:[%s4288_s20 + $0x30] sm:$0xff]  }
 0x145   : > { %2940 = vmatpush3.bf16.msra.mxu1 %v1085_v57  ;;  %v4459_v11 = vsel %vm843_vm15, %v874_v4, %v878_v46  ;;  %v881_v17 = vshrl.u32 %v4451_v14, 16  ;;  %v883_v18 = vshll.u32 %v4451_v14, 16  ;;  %v1205_v19 = vrot.slane %v4399_v24, 1  ;;  %vm4485_vm8 = vmand %vm654_vm5, %vm664_vm7 }
 0x146   : > { %2996 = vmatmul.mubr.msk.bf16.vlgmr.msra.gmra.mrb[0].mxu0 %vm942_vm3, %v4459_v11  ;;  %2927 = vmatprep.mubr.msk.bf16.mxu1 %vm942_vm3, %v4459_v11  ;;  %v708_v20 = vsel %vm4431_vm6, %v626_v1, 0.0  ;;  %v2816_v21 = vunpack.c.h.bf16 %v2836_v56  ;;  %v580_v23 = vmul.f32 %v2815_v7, %v4327_v12  ;;  %v890_v26 = vrot.slane %v888_v63, 1 }
 0x147   : > { %3012 = vmatpush3.bf16.msra.mxu0 %v1631_v2  ;;  %v885_v25 = vrot.slane %v883_v18, 1  ;;  %v723_v27 = vpack.c.bf16 %v708_v20, %v707_v3  ;;  %v2819_v28 = vunpack.c.l.bf16 %v2837_v8  ;;  %3215 = vmatprep.subr.msk.bf16.mxu1 %vm967_vm0, %v4456_v10  ;;  %v1204_v24 = vrot.slane %v4407_v30, 1 }
 0x148   : > { %3220 = vmatprep.subr.msk.bf16.mxu0 %vm967_vm0, %v4463_v16  ;;  %v581_v29 = vmul.f32 %v2816_v21, %v4327_v12  ;;  %v607_v31 = vadd.f32 %v4329_v13, %v580_v23  ;;  %v2820_v33 = vunpack.c.h.bf16 %v2837_v8  ;;  %vm655_vm9 = vcmp.ge.s32.totalorder %v4378_v61, 0 }
 0x149   : > { %v886_v34 = vor.u32 %v885_v25, %v881_v17  ;;  %v758_v35 = vshrl.u32 %v723_v27, 16  ;;  %v761_v36 = vshll.u32 %v723_v27, 16  ;;  %v582_v38 = vmul.f32 %v2819_v28, %v4327_v12 }
 0x14a   : > { %v608_v40 = vadd.f32 %v4329_v13, %v581_v29  ;;  %v627_v41 = vmax.f32 %v607_v31, 0.0  ;;  %v583_v42 = vmul.f32 %v2820_v33, %v4327_v12  ;;  %vm665_vm10 = vcmp.lt.s32.totalorder %v4378_v61, 16 }
 0x14b   : > { %v4494_v43 = vsel %vm843_vm15, %v886_v34, %v890_v26  ;;  %v760_v44 = vrot.slane %v758_v35, 7  ;;  %v609_v45 = vadd.f32 %v4329_v13, %v582_v38  ;;  %vm1200_vm11 = vcmask 1046528   ;;  %vm4506_vm12 = vmand %vm655_vm9, %vm665_vm10 }
 0x14c   : > { %2999 = vmatprep.mubr.msk.bf16.mxu0 %vm942_vm3, %v4494_v43  ;;  %2928 = vmatmul.mubr.msk.bf16.gmra.mrb[4].mxu1 %vm942_vm3, %v4494_v43  ;;  %v628_v46 = vmax.f32 %v608_v40, 0.0  ;;  %v709_v47 = vsel %vm4485_vm8, %v627_v41, 0.0  ;;  %v610_v48 = vadd.f32 %v4329_v13, %v583_v42  ;;  %v1208_v61 = vrot.slane %v4411_v32, 1 }
 0x14d   : > { %v763_v50 = vor.u32 %v761_v36, %v760_v44  ;;  %v4513_v51 = vsel %vm4383_vm2, %v760_v44, 0  ;;  %v629_v53 = vmax.f32 %v609_v45, 0.0  ;;  %v2823_v57 = vunpack.c.l.bf16 %v2838_v52 }
 0x14e   : > { %v900_v54 = vshll.u32 %v4513_v51, 16  ;;  %v710_v55 = vsel %vm4485_vm8, %v628_v46, 0.0  ;;  %v630_v56 = vmax.f32 %v610_v48, 0.0  ;;  %v4523_v60 = vsel %vm1200_vm11, %v1204_v24, %v1205_v19 }
 0x14f   : > { %v4520_v58 = vsel %vm4383_vm2, 0, %v763_v50  ;;  %v724_v32 = vpack.c.bf16 %v710_v55, %v709_v47  ;;  %v711_v62 = vsel %vm4506_vm12, %v629_v53, 0.0  ;;  %v1207_v1 = vrot.slane %v4418_v39, 1 }
 0x150   : > { %v893_v4 = vshrl.u32 %v4520_v58, 16  ;;  %v895_v63 = vshll.u32 %v4520_v58, 16  ;;  %v712_v2 = vsel %vm4506_vm12, %v630_v56, 0.0  ;;  %v2824_v17 = vunpack.c.h.bf16 %v2838_v52 }
 0x151   : > { %v765_v3 = vshrl.u32 %v724_v32, 16  ;;  %v768_v7 = vshll.u32 %v724_v32, 16  ;;  %v725_v8 = vpack.c.bf16 %v712_v2, %v711_v62  ;;  %v902_v19 = vrot.slane %v900_v54, 1 }
 0x152   : > { %v897_v18 = vrot.slane %v895_v63, 1  ;;  %v584_v20 = vmul.f32 %v2823_v57, %v4327_v12  ;;  %v646_v21 = vadd.s32 7, %v4305_v0  ;;  %v585_v27 = vmul.f32 %v2824_v17, %v4327_v12  ;;  %v2839_v57 = vld [vmem:[%s4288_s20 + $0x38] sm:$0xff]   ;;  %s2372_s20 = sshll.u32 %s4814_s23, 4  ;;  %s4907_s20 = int_to_ptr.vmem [resolvable:$true] %s2372_s20 }
 0x153   : > { %v767_v23 = vrot.slane %v765_v3, 7  ;;  %v772_v25 = vshrl.u32 %v725_v8, 16  ;;  %v775_v26 = vshll.u32 %v725_v8, 16  ;;  %v1210_v37 = vrot.slane %v4451_v14, 1  ;;  %s3580_s19 = scalar_lea.vmem %s4907_s20, 1024  ;;  %p3587_p8 = scmp.lt.s32.totalorder %s4907_s20, %s3585_s28 }
 0x154   : > { %v898_v28 = vor.u32 %v897_v18, %v893_v4  ;;  %v611_v24 = vadd.f32 %v4329_v13, %v584_v20  ;;  %vm656_vm13 = vcmp.ge.s32.totalorder %v646_v21, 0  ;;  %vm666_vm14 = vcmp.lt.s32.totalorder %v646_v21, 16  ;;  %v4585_v20 = vld [vmem:[#allocation7 + $0xe] sm:$0x3]  ;;  %p3581_p11 = scmp.ne.s32.totalorder %s4907_s20, %s3580_s19  ;;  %p3588_p10 = scmp.lt.s32.totalorder %s3586_s7, %s3580_s19 }
 0x155   : > { %v770_v29 = vor.u32 %v768_v7, %v767_v23  ;;  %v4538_v31 = vsel %vm4383_vm2, %v767_v23, 0  ;;  %v774_v33 = vrot.slane %v772_v25, 7  ;;  %v612_v34 = vadd.f32 %v4329_v13, %v585_v27  ;;  %vm676_vm1 = vmand %vm656_vm13, %vm666_vm14 }
 0x156   : > { %v4542_v35 = vsel %vm843_vm15, %v898_v28, %v902_v19  ;;  %v912_v36 = vshll.u32 %v4538_v31, 16  ;;  %v631_v38 = vmax.f32 %v611_v24, 0.0  ;;  %v1211_v47 = vrot.slane %v4441_v59, 1  ;;  %p3582_p5 = pnand %p3581_p11, %p5185_p6  ;;  %p3589_p7 = por %p3588_p10, %p3587_p8 }
 0x157   : > { %3000 = vmatmul.mubr.msk.bf16.gmra.mrb[4].mxu0 %vm942_vm3, %v4542_v35  ;;  %2931 = vmatprep.mubr.msk.bf16.mxu1 %vm942_vm3, %v4542_v35  ;;  %v4552_v40 = vsel %vm4383_vm2, 0, %v770_v29  ;;  %v777_v41 = vor.u32 %v775_v26, %v774_v33  ;;  %v4556_v42 = vsel %vm4383_vm2, %v774_v33, 0  ;;  %v632_v44 = vmax.f32 %v612_v34, 0.0  ;;  %v2830_v29 = vld [vmem:[%s461_s25] sm:$0xff]   ;;  %s5184_s25 = smov %s5183_s17 }
 0x158   : > { %3013 = vmatprep.mubr.msk.bf16.mxu0 %vm942_vm3, %v4523_v60  ;;  %v905_v45 = vshrl.u32 %v4552_v40, 16  ;;  %v907_v52 = vshll.u32 %v4552_v40, 16  ;;  %v924_v46 = vshll.u32 %v4556_v42, 16  ;;  %v713_v49 = vsel %vm676_vm1, %v631_v38, 0.0  ;;  %p3583_p1 = pneg %p3582_p5 }
 0x159   : > { %v4566_v48 = vsel %vm4383_vm2, 0, %v777_v41  ;;  %v714_v50 = vsel %vm676_vm1, %v632_v44, 0.0  ;;  %v914_v54 = vrot.slane %v912_v36, 1  ;;  %v1202_v32 = vrot.slane %v4389_v15, 1 }
 0x15a   : > { %v909_v53 = vrot.slane %v907_v52, 1  ;;  %v917_v55 = vshrl.u32 %v4566_v48, 16  ;;  %v919_v56 = vshll.u32 %v4566_v48, 16  ;;  %v4573_v62 = vsel %vm1200_vm11, %v1207_v1, %v1208_v61  ;;  %p3590_p2 = pnand %p3589_p7, %p3583_p1 }
 0x15b   : > { %v1752_v59 = vsel %vm967_vm0, %v4463_v16, 0  ;;  %v726_v4 = vpack.c.bf16 %v714_v50, %v713_v49  ;;  %v926_v3 = vrot.slane %v924_v46, 1  ;;  %v4578_v7 = vsel %vm1200_vm11, %v1210_v37, %v1211_v47 }
 0x15c   : > { %v910_v63 = vor.u32 %v909_v53, %v905_v45  ;;  %v921_v2 = vrot.slane %v919_v56, 1  ;;  %v1213_v18 = vrot.slane %v4520_v58, 1  ;;  %v2827_v19 = vunpack.c.l.bf16 %v2839_v57 }
 0x15d   : > { %v779_v8 = vshrl.u32 %v726_v4, 16  ;;  %v782_v17 = vshll.u32 %v726_v4, 16  ;;  %v1214_v1 = vrot.slane %v4513_v51, 1  ;;  %v2828_v16 = vunpack.c.h.bf16 %v2839_v57 }
 0x15e   : > { %v4582_v15 = vsel %vm843_vm15, %v910_v63, %v914_v54  ;;  %v922_v61 = vor.u32 %v921_v2, %v917_v55  ;;  %v1216_v23 = vrot.slane %v4552_v40, 1  ;;  %v586_v25 = vmul.f32 %v2827_v19, %v4327_v12 }
 0x15f   : > { %2932 = vmatmul.mubr.msk.bf16.gmra.mrb[8].mxu1 %vm942_vm3, %v4582_v15  ;;  %3014 = vmatmul.mubr.msk.bf16.vlgmr.msra.gmra.mrb[0].mxu0 %vm942_vm3, %v4573_v62  ;;  %v781_v21 = vrot.slane %v779_v8, 7  ;;  %v647_v26 = vadd.s32 8, %v4305_v0  ;;  %v1217_v51 = vrot.slane %v4538_v31, 1  ;;  %v587_v28 = vmul.f32 %v2828_v16, %v4327_v12 }
 0x160   : > { %3030 = vmatpush3.bf16.msra.mxu0 %v1752_v59  ;;  %v4595_v27 = vsel %vm843_vm15, %v922_v61, %v926_v3  ;;  %3017 = vmatprep.mubr.msk.bf16.mxu0 %vm942_vm3, %v4578_v7  ;;  %v1201_v24 = vrot.slane %v4395_v22, 1  ;;  %v613_v36 = vadd.f32 %v4329_v13, %v586_v25  ;;  %v2831_v52 = vunpack.c.l.bf16 %v2830_v29 }
 0x161   : > { %2935 = vmatprep.mubr.msk.bf16.mxu1 %vm942_vm3, %v4595_v27  ;;  %v784_v33 = vor.u32 %v782_v17, %v781_v21  ;;  %v839_v34 = vsel %vm4383_vm2, %v781_v21, 0  ;;  %vm657_vm4 = vcmp.ge.s32.totalorder %v647_v26, 0  ;;  %3221 = vmatprep.subr.msk.bf16.mxu0 %vm967_vm0, %v4585_v20  ;;  %v614_v37 = vadd.f32 %v4329_v13, %v587_v28 }
 0x162   : > { %v936_v31 = vshll.u32 %v839_v34, 16  ;;  %vm667_vm5 = vcmp.lt.s32.totalorder %v647_v26, 16  ;;  %v633_v41 = vmax.f32 %v613_v36, 0.0  ;;  %v4621_v45 = vsel %vm1200_vm11, %v1201_v24, %v1202_v32 }
 0x163   : > { %v4614_v38 = vsel %vm4383_vm2, 0, %v784_v33  ;;  %vm4616_vm6 = vmand %vm657_vm4, %vm667_vm5  ;;  %v4626_v49 = vsel %vm1200_vm11, %v1213_v18, %v1214_v1  ;;  %v4629_v50 = vsel %vm1200_vm11, %v1216_v23, %v1217_v51  ;;  %v634_v53 = vmax.f32 %v614_v37, 0.0 }
 0x164   : > { %v929_v46 = vshrl.u32 %v4614_v38, 16  ;;  %v931_v47 = vshll.u32 %v4614_v38, 16  ;;  %v715_v54 = vsel %vm4616_vm6, %v633_v41, 0.0  ;;  %v2832_v55 = vunpack.c.h.bf16 %v2830_v29  ;;  %v1368_v41 = vld [vmem:[#allocation7 + $0x6] sm:$0x3] }
 0x165   : > { %v588_v56 = vmul.f32 %v2831_v52, %v4327_v12  ;;  %v938_v32 = vrot.slane %v936_v31, 1  ;;  %v1219_v59 = vrot.slane %v4566_v48, 1  ;;  %v648_v4 = vadd.s32 9, %v4305_v0 }
 0x166   : > { %v933_v57 = vrot.slane %v931_v47, 1  ;;  %v1220_v63 = vrot.slane %v4556_v42, 1  ;;  %v716_v2 = vsel %vm4616_vm6, %v634_v53, 0.0  ;;  %v589_v3 = vmul.f32 %v2832_v55, %v4327_v12 }
 0x167   : > { %3018 = vmatmul.mubr.msk.bf16.gmra.mrb[4].mxu0 %vm942_vm3, %v4626_v49  ;;  %v615_v8 = vadd.f32 %v4329_v13, %v588_v56  ;;  %v727_v18 = vpack.c.bf16 %v716_v2, %v715_v54  ;;  %vm658_vm7 = vcmp.ge.s32.totalorder %v648_v4, 0  ;;  %vm668_vm8 = vcmp.lt.s32.totalorder %v648_v4, 16 }
 0x168   : > { %v934_v17 = vor.u32 %v933_v57, %v929_v46  ;;  %3021 = vmatprep.mubr.msk.bf16.mxu0 %vm942_vm3, %v4629_v50  ;;  %v1222_v0 = vrot.slane %v4614_v38, 1  ;;  %v1223_v19 = vrot.slane %v839_v34, 1  ;;  %v616_v61 = vadd.f32 %v4329_v13, %v589_v3  ;;  %vm678_vm9 = vmand %vm658_vm7, %vm668_vm8  ;;  %v2005_v3 = vld [vmem:[#allocation7 + $0x10] sm:$0x3] }
 0x169   : > { %v635_v42 = vmax.f32 %v615_v8, 0.0  ;;  %v786_v12 = vshrl.u32 %v727_v18, 16  ;;  %v789_v16 = vshll.u32 %v727_v18, 16  ;;  %v4655_v25 = vsel %vm1200_vm11, %v1219_v59, %v1220_v63 }
 0x16a   : > { %v4648_v1 = vsel %vm843_vm15, %v934_v17, %v938_v32  ;;  %v636_v21 = vmax.f32 %v616_v61, 0.0  ;;  %v4658_v13 = vsel %vm1200_vm11, %v1222_v0, %v1223_v19  ;;  %v1252_v31 = vsel %vm967_vm0, %v4456_v10, 0 }
 0x16b   : > { %2936 = vmatmul.mubr.msk.bf16.gmra.mrb[12].mxu1 %vm942_vm3, %v4648_v1  ;;  %v717_v23 = vsel %vm678_vm9, %v635_v42, 0.0  ;;  %v788_v26 = vrot.slane %v786_v12, 7  ;;  %v1884_v5 = vsel %vm967_vm0, %v4585_v20, 0  ;;  %v1373_v20 = vsel %vm967_vm0, %v1368_v41, 0 }
 0x16c   : > { %2941 = vmatprep.mubr.msk.bf16.mxu1 %vm942_vm3, %v4395_v22  ;;  %v718_v51 = vsel %vm678_vm9, %v636_v21, 0.0 }
 0x16d   : > { %v791_v28 = vor.u32 %v789_v16, %v788_v26  ;;  %v4662_v24 = vsel %vm4383_vm2, %v788_v26, 0  ;;  %v728_v29 = vpack.c.bf16 %v718_v51, %v717_v23 }
 0x16e   : > { %v1623_v33 = vrot.slane %v4662_v24, 1  ;;  %v1495_v8 = vshll.u32 %v4662_v24, 16 }
 0x16f   : > { %3022 = vmatmul.mubr.msk.bf16.gmra.mrb[8].mxu0 %vm942_vm3, %v4655_v25  ;;  %v4670_v22 = vsel %vm4383_vm2, 0, %v791_v28  ;;  %v793_v34 = vshrl.u32 %v728_v29, 16  ;;  %v796_v36 = vshll.u32 %v728_v29, 16 }
 0x170   : > { %3025 = vmatprep.mubr.msk.bf16.mxu0 %vm942_vm3, %v4658_v13  ;;  %v1622_v37 = vrot.slane %v4670_v22, 1 }
 0x171   : > { %v795_v44 = vrot.slane %v793_v34, 7 }
 0x172   : > { %v4681_v52 = vsel %vm1200_vm11, %v1622_v37, %v1623_v33 }
 0x173   : > { %2942 = vmatmul.mubr.msk.bf16.vlgmr.msra.gmra.mrb[0].mxu1 %vm942_vm3, %v4407_v30  ;;  %v798_v46 = vor.u32 %v796_v36, %v795_v44  ;;  %v841_v47 = vsel %vm4383_vm2, %v795_v44, 0 }
 0x174   : > { %2958 = vmatpush3.bf16.msra.mxu1 %v1252_v31  ;;  %2945 = vmatprep.mubr.msk.bf16.mxu1 %vm942_vm3, %v4418_v39  ;;  %v1874_v10 = vshll.u32 %v841_v47, 16  ;;  %v2002_v53 = vrot.slane %v841_v47, 1 }
 0x175   : > { %3216 = vmatprep.subr.msk.bf16.mxu1 %vm967_vm0, %v1368_v41  ;;  %v831_v54 = vsel %vm4383_vm2, 0, %v798_v46  ;;  %vm2237_vm2 = vcmask 27648  }
 0x176   : > { %v1867_v55 = vshrl.u32 %v831_v54, 16  ;;  %v1869_v56 = vshll.u32 %v831_v54, 16  ;;  %v2001_v57 = vrot.slane %v831_v54, 1  ;;  %v1876_v59 = vrot.slane %v1874_v10, 1 }
 0x177   : > { %3026 = vmatmul.mubr.msk.bf16.gmra.mrb[12].mxu0 %vm942_vm3, %v4681_v52 }
 0x178   : > { %3031 = vmatprep.mubr.msk.bf16.mxu0 %vm942_vm3, %v4418_v39  ;;  %v1871_v32 = vrot.slane %v1869_v56, 1  ;;  %v4693_v4 = vsel %vm1200_vm11, %v2001_v57, %v2002_v53 }
 0x17a   : > { %v1872_v63 = vor.u32 %v1871_v32, %v1867_v55 }
 0x17b   : > { %2946 = vmatmul.mubr.msk.bf16.gmra.mrb[4].mxu1 %vm942_vm3, %v4451_v14 }
 0x17c   : > { %2949 = vmatprep.mubr.msk.bf16.mxu1 %vm942_vm3, %v4520_v58  ;;  %v1877_v2 = vsel %vm843_vm15, %v1872_v63, %v1876_v59 }
 0x17f   : > { %3032 = vmatmul.mubr.msk.bf16.vlgmr.msra.gmra.mrb[0].mxu0 %vm942_vm3, %v4451_v14 }
 0x180   : > { %3048 = vmatpush3.bf16.msra.mxu0 %v1884_v5  ;;  %3035 = vmatprep.mubr.msk.bf16.mxu0 %vm942_vm3, %v4520_v58 }
 0x181   : > { %3222 = vmatprep.subr.msk.bf16.mxu0 %vm967_vm0, %v2005_v3 }
 0x183   : > { %2950 = vmatmul.mubr.msk.bf16.gmra.mrb[8].mxu1 %vm942_vm3, %v4552_v40 }
 0x184   : > { %2953 = vmatprep.mubr.msk.bf16.mxu1 %vm942_vm3, %v4566_v48 }
 0x187   : > { %3036 = vmatmul.mubr.msk.bf16.gmra.mrb[4].mxu0 %vm942_vm3, %v4552_v40 }
 0x188   : > { %3039 = vmatprep.mubr.msk.bf16.mxu0 %vm942_vm3, %v4566_v48 }
 0x18b   : > { %2954 = vmatmul.mubr.msk.bf16.gmra.mrb[12].mxu1 %vm942_vm3, %v4614_v38 }
 0x18c   : > { %2959 = vmatprep.mubr.msk.bf16.mxu1 %vm942_vm3, %v4621_v45 }
 0x18f   : > { %3040 = vmatmul.mubr.msk.bf16.gmra.mrb[8].mxu0 %vm942_vm3, %v4614_v38 }
 0x190   : > { %3043 = vmatprep.mubr.msk.bf16.mxu0 %vm942_vm3, %v4670_v22 }
 0x193   : > { %2960 = vmatmul.mubr.msk.bf16.vlgmr.msra.gmra.mrb[0].mxu1 %vm942_vm3, %v4523_v60  ;;  %v2010_v60 = vsel %vm967_vm0, %v2005_v3, 0 }
 0x194   : > { %2976 = vmatpush3.bf16.msra.mxu1 %v1373_v20  ;;  %2963 = vmatprep.mubr.msk.bf16.mxu1 %vm942_vm3, %v4573_v62 }
 0x195   : > { %3218 = vmatprep.subr.msk.bf16.mxu1 %vm967_vm0, %v4317_v6  ;;  %v1490_v6 = vshll.u32 %v4670_v22, 16 }
 0x197   : > { %3044 = vmatmul.mubr.msk.bf16.gmra.mrb[12].mxu0 %vm942_vm3, %v831_v54  ;;  %v1492_v45 = vrot.slane %v1490_v6, 1 }
 0x198   : > { %3049 = vmatprep.mubr.msk.bf16.mxu0 %vm942_vm3, %v4459_v11  ;;  %v1488_v11 = vshrl.u32 %v4670_v22, 16 }
 0x19b   : > { %2964 = vmatmul.mubr.msk.bf16.gmra.mrb[4].mxu1 %vm942_vm3, %v4578_v7 }
 0x19c   : > { %2967 = vmatprep.mubr.msk.bf16.mxu1 %vm942_vm3, %v4626_v49 }
 0x19f   : > { %3050 = vmatmul.mubr.msk.bf16.vlgmr.msra.gmra.mrb[0].mxu0 %vm942_vm3, %v4494_v43  ;;  %v1493_v43 = vor.u32 %v1492_v45, %v1488_v11 }
 0x1a0   : > { %3066 = vmatpush3.bf16.msra.mxu0 %v2010_v60  ;;  %3053 = vmatprep.mubr.msk.bf16.mxu0 %vm942_vm3, %v4542_v35  ;;  %v1497_v35 = vrot.slane %v1495_v8, 1 }
 0x1a2   : > { %v1498_v17 = vsel %vm843_vm15, %v1493_v43, %v1497_v35 }
 0x1a3   : > { %2968 = vmatmul.mubr.msk.bf16.gmra.mrb[8].mxu1 %vm942_vm3, %v4629_v50 }
 0x1a4   : > { %2971 = vmatprep.mubr.msk.bf16.mxu1 %vm942_vm3, %v4655_v25 }
 0x1a7   : > { %3054 = vmatmul.mubr.msk.bf16.gmra.mrb[4].mxu0 %vm942_vm3, %v4582_v15 }
 0x1a8   : > { %3057 = vmatprep.mubr.msk.bf16.mxu0 %vm942_vm3, %v4595_v27 }
 0x1ab   : > { %2972 = vmatmul.mubr.msk.bf16.gmra.mrb[12].mxu1 %vm942_vm3, %v4658_v13 }
 0x1ac   : > { %2977 = vmatprep.mubr.msk.bf16.mxu1 %vm942_vm3, %v4407_v30 }
 0x1af   : > { %3058 = vmatmul.mubr.msk.bf16.gmra.mrb[8].mxu0 %vm942_vm3, %v4648_v1 }
 0x1b0   : > { %3061 = vmatprep.mubr.msk.bf16.mxu0 %vm942_vm3, %v1498_v17 }
 0x1b3   : > { %2978 = vmatmul.mubr.msk.bf16.vlgmr.msra.gmra.mrb[0].mxu1 %vm942_vm3, %v4418_v39 }
 0x1b4   : > { %3084 = vmatpush3.bf16.msra.mxu1 %v4325_v9  ;;  %2981 = vmatprep.mubr.msk.bf16.mxu1 %vm942_vm3, %v4451_v14 }
 0x1b7   : > { %3062 = vmatmul.mubr.msk.bf16.gmra.mrb[12].mxu0 %vm942_vm3, %v1877_v2 }
 0x1b8   : > { %3067 = vmatprep.mubr.msk.bf16.mxu0 %vm942_vm3, %v4573_v62 }
 0x1bb   : > { %2982 = vmatmul.mubr.msk.bf16.gmra.mrb[4].mxu1 %vm942_vm3, %v4520_v58  ;;  %v4802_v58 = vstv %s2668_s1  ;;  %s2348_s1 = scalar_lea.sflag [#allocation4], %s4283_s27 }
 0x1bc   : > { %2985 = vmatprep.mubr.msk.bf16.mxu1 %vm942_vm3, %v4552_v40  ;;  %vm2133_vm15 = vcmp.lt.s32.totalorder %v4802_v58, 16  ;;  %v2128_v12 = vadd.s32 3, %v4802_v58  ;;  %v2127_v16 = vadd.s32 2, %v4802_v58 }
 0x1be   : > { %vm2136_vm10 = vcmp.lt.s32.totalorder %v2128_v12, 16  ;;  %vm2135_vm11 = vcmp.lt.s32.totalorder %v2127_v16, 16 }
 0x1bf   : > { %3068 = vmatmul.mubr.msk.bf16.vlgmr.msra.gmra.mrb[0].mxu0 %vm942_vm3, %v4578_v7 }
 0x1c0   : > { %3071 = vmatprep.mubr.msk.bf16.mxu0 %vm942_vm3, %v4626_v49 }
 0x1c3   : > { %2986 = vmatmul.mubr.msk.bf16.gmra.mrb[8].mxu1 %vm942_vm3, %v4566_v48  ;;  %v2126_v48 = vadd.s32 1, %v4802_v58 }
 0x1c4   : > { %2989 = vmatprep.mubr.msk.bf16.mxu1 %vm942_vm3, %v4614_v38 }
 0x1c5   : > { %vm2134_vm0 = vcmp.lt.s32.totalorder %v2126_v48, 16 }
 0x1c7   : > { %3072 = vmatmul.mubr.msk.bf16.gmra.mrb[4].mxu0 %vm942_vm3, %v4629_v50 }
 0x1c8   : > { %3075 = vmatprep.mubr.msk.bf16.mxu0 %vm942_vm3, %v4655_v25 }
 0x1cb   : > { %2990 = vmatmul.mubr.msk.bf16.gmra.mrb[12].mxu1 %vm942_vm3, %v4670_v22 }
 0x1cc   : > { %3003 = vmatprep.mubr.msk.bf16.mxu1 %vm942_vm3, %v4582_v15 }
 0x1cf   : > { %3076 = vmatmul.mubr.msk.bf16.gmra.mrb[8].mxu0 %vm942_vm3, %v4658_v13 }
 0x1d0   : > { %3079 = vmatprep.mubr.msk.bf16.mxu0 %vm942_vm3, %v4681_v52 }
 0x1d3   : > { %3004 = vmatmul.mubr.msk.bf16.vlgmr.msra.gmra.mrb[8].mxu1 %vm942_vm3, %v4595_v27 }
 0x1d4   : > { %3007 = vmatprep.mubr.msk.bf16.mxu1 %vm942_vm3, %v4648_v1 }
 0x1d7   : > { %3080 = vmatmul.mubr.msk.bf16.gmra.mrb[12].mxu0 %vm942_vm3, %v4693_v4 }
 0x1db   : > { %3008 = vmatmul.mubr.msk.bf16.gmra.mrb[12].mxu1 %vm942_vm3, %v1498_v17  ;;  %v2130_v17 = vadd.s32 5, %v4802_v58 }
 0x1dd   : > { %vm2138_vm12 = vcmp.lt.s32.totalorder %v2130_v17, 16 }
 0x286   : > { %v2979_v9 = vpop.f32.mrb[0].mxu1 }
 0x287   : > { %v1409_v30 = vpop.f32.mrb[1].mxu1 }
 0x288   : > { %v2980_v39 = vpop.f32.mrb[2].mxu1 }
 0x289   : > { %v1412_v14 = vpop.f32.mrb[3].mxu1 }
 0x28e   : > { %v2983_v40 = vpop.f32.mrb[4].mxu1 }
 0x28f   : > { %v1425_v62 = vpop.f32.mrb[5].mxu1 }
 0x290   : > { %v2984_v7 = vpop.f32.mrb[6].mxu1 }
 0x291   : > { %v4805_v15 = vpop.f32.mrb[7].mxu1 }
 0x292   : > { %v3069_v27 = vpop.f32.mrb[0].mxu0 }
 0x293   : > { %v3085_v38 = vadd.f32 %v3069_v27, %v2979_v9  ;;  %v2046_v49 = vpop.f32.mrb[1].mxu0 }
 0x294   : > { %v3086_v50 = vadd.f32 %v2046_v49, %v1409_v30  ;;  %v3070_v18 = vpop.f32.mrb[2].mxu0 }
 0x295   : > { %v2159_v0 = vsel %vm2134_vm0, %v3085_v38, 0.0  ;;  %v3087_v19 = vadd.f32 %v3070_v18, %v2980_v39  ;;  %v2049_v61 = vpop.f32.mrb[3].mxu0 }
 0x296   : > { %v2778_v42 = vpack.c.bf16 %v2159_v0, %v2159_v0  ;;  %v2157_v1 = vsel %vm2133_vm15, %v3086_v50, 0.0  ;;  %v2295_v26 = vmul.f32 %v2159_v0, %v2159_v0  ;;  %v3088_v13 = vadd.f32 %v2049_v61, %v1412_v14 }
 0x297   : > { %v2776_v21 = vpack.c.bf16 %v2157_v1, %v2157_v1  ;;  %v2160_v23 = vsel %vm2134_vm0, %v3087_v19, 0.0  ;;  %v2293_v51 = vmul.f32 %v2157_v1, %v2157_v1  ;;  %v2257_v24 = vsel %vm942_vm3, %v2159_v0, 0.0 }
 0x298   : > { %2240 = vst.msk [vmem:[%s4814_s23 + $0x8] sm:$0xf] %vm2237_vm2, %v2778_v42  ;;  %v2779_v25 = vpack.c.bf16 %v2160_v23, %v2160_v23  ;;  %v2254_v29 = vsel %vm942_vm3, %v2157_v1, 0.0  ;;  %v2158_v22 = vsel %vm2133_vm15, %v3088_v13, 0.0  ;;  %v2312_v52 = vsel %vm942_vm3, %v2295_v26, 0.0 }
 0x299   : > { %2238 = vst.msk [vmem:[%s4814_s23] sm:$0xf] %vm2237_vm2, %v2776_v21  ;;  %v2777_v36 = vpack.c.bf16 %v2158_v22, %v2158_v22  ;;  %v2255_v31 = vsel %vm942_vm3, %v2158_v22, 0.0  ;;  %v2294_v37 = vmul.f32 %v2158_v22, %v2158_v22  ;;  %v2309_v54 = vsel %vm942_vm3, %v2293_v51, 0.0 }
 0x29a   : > { %2241 = vst.msk [vmem:[%s4814_s23 + $0xc] sm:$0xf] %vm2237_vm2, %v2779_v25  ;;  %v3073_v28 = vpop.f32.mrb[4].mxu0  ;;  %v2256_v46 = vadd.f32 %v2255_v31, %v2254_v29  ;;  %v2296_v55 = vmul.f32 %v2160_v23, %v2160_v23  ;;  %v2259_v5 = vsel %vm942_vm3, %v2160_v23, 0.0  ;;  %v2129_v14 = vadd.s32 4, %v4802_v58 }
 0x29b   : > { %v3089_v33 = vadd.f32 %v3073_v28, %v2983_v40  ;;  %v2062_v34 = vpop.f32.mrb[5].mxu0  ;;  %2239 = vst.msk [vmem:[%s4814_s23 + $0x4] sm:$0xf] %vm2237_vm2, %v2777_v36  ;;  %v2310_v56 = vsel %vm942_vm3, %v2294_v37, 0.0  ;;  %v4857_v28 = vadd.s32 7, %v4802_v58 }
 0x29c   : > { %v3090_v41 = vadd.f32 %v2062_v34, %v1425_v62  ;;  %v3074_v44 = vpop.f32.mrb[6].mxu0  ;;  %v2258_v32 = vadd.f32 %v2257_v24, %v2256_v46  ;;  %v2311_v59 = vadd.f32 %v2310_v56, %v2309_v54  ;;  %v2314_v45 = vsel %vm942_vm3, %v2296_v55, 0.0 }
 0x29d   : > { %v2163_v47 = vsel %vm2136_vm10, %v3089_v33, 0.0  ;;  %v3091_v10 = vadd.f32 %v3074_v44, %v2984_v7  ;;  %v2065_v53 = vpop.f32.mrb[7].mxu0  ;;  %vm2137_vm13 = vcmp.lt.s32.totalorder %v2129_v14, 16  ;;  %v4861_v34 = vadd.s32 6, %v4802_v58 }
 0x29e   : > { %v2782_v57 = vpack.c.bf16 %v2163_v47, %v2163_v47  ;;  %v2161_v4 = vsel %vm2135_vm11, %v3090_v41, 0.0  ;;  %v2313_v60 = vadd.f32 %v2312_v52, %v2311_v59  ;;  %v2260_v6 = vadd.f32 %v2259_v5, %v2258_v32 }
 0x29f   : > { %v2164_v63 = vsel %vm2136_vm10, %v3091_v10, 0.0  ;;  %v2780_v2 = vpack.c.bf16 %v2161_v4, %v2161_v4  ;;  %v2261_v3 = vsel %vm942_vm3, %v2161_v4, 0.0  ;;  %v2297_v20 = vmul.f32 %v2161_v4, %v2161_v4 }
 0x2a0   : > { %2244 = vst.msk [vmem:[%s4814_s23 + $0x18] sm:$0xf] %vm2237_vm2, %v2782_v57  ;;  %v2783_v11 = vpack.c.bf16 %v2164_v63, %v2164_v63  ;;  %v3092_v43 = vadd.f32 %v2065_v53, %v4805_v15  ;;  %v2262_v9 = vadd.f32 %v2261_v3, %v2260_v6  ;;  %v2315_v30 = vadd.f32 %v2314_v45, %v2313_v60 }
 0x2a1   : > { %2242 = vst.msk [vmem:[%s4814_s23 + $0x10] sm:$0xf] %vm2237_vm2, %v2780_v2  ;;  %v2316_v8 = vsel %vm942_vm3, %v2297_v20, 0.0  ;;  %v2299_v40 = vmul.f32 %v2163_v47, %v2163_v47  ;;  %v2265_v0 = vsel %vm942_vm3, %v2163_v47, 0.0  ;;  %v2300_v1 = vmul.f32 %v2164_v63, %v2164_v63 }
 0x2a2   : > { %v3077_v35 = vpop.f32.mrb[8].mxu0  ;;  %2245 = vst.msk [vmem:[%s4814_s23 + $0x1c] sm:$0xf] %vm2237_vm2, %v2783_v11  ;;  %v2162_v48 = vsel %vm2135_vm11, %v3092_v43, 0.0  ;;  %v2317_v7 = vadd.f32 %v2316_v8, %v2315_v30  ;;  %v2267_v24 = vsel %vm942_vm3, %v2164_v63, 0.0  ;;  %vm2140_vm14 = vcmp.lt.s32.totalorder %v4857_v28, 16 }
 0x2a3   : > { %v2078_v39 = vpop.f32.mrb[9].mxu0  ;;  %v2781_v27 = vpack.c.bf16 %v2162_v48, %v2162_v48  ;;  %v2263_v38 = vsel %vm942_vm3, %v2162_v48, 0.0  ;;  %v2298_v15 = vmul.f32 %v2162_v48, %v2162_v48  ;;  %v2320_v25 = vsel %vm942_vm3, %v2299_v40, 0.0 }
 0x2a4   : > { %v3078_v62 = vpop.f32.mrb[10].mxu0  ;;  %v2264_v50 = vadd.f32 %v2263_v38, %v2262_v9  ;;  %v2322_v52 = vsel %vm942_vm3, %v2300_v1, 0.0  ;;  %vm2139_vm1 = vcmp.lt.s32.totalorder %v4861_v34, 16 }
 0x2a5   : > { %v2081_v49 = vpop.f32.mrb[11].mxu0  ;;  %2243 = vst.msk [vmem:[%s4814_s23 + $0x14] sm:$0xf] %vm2237_vm2, %v2781_v27  ;;  %v2318_v19 = vsel %vm942_vm3, %v2298_v15, 0.0 }
 0x2a6   : > { %v3005_v18 = vpop.f32.mrb[8].mxu1  ;;  %v2266_v12 = vadd.f32 %v2265_v0, %v2264_v50  ;;  %v2319_v16 = vadd.f32 %v2318_v19, %v2317_v7 }
 0x2a7   : > { %v3093_v61 = vadd.f32 %v3077_v35, %v3005_v18  ;;  %v1573_v42 = vpop.f32.mrb[9].mxu1 }
 0x2a8   : > { %v3094_v21 = vadd.f32 %v2078_v39, %v1573_v42  ;;  %v3006_v23 = vpop.f32.mrb[10].mxu1  ;;  %v2321_v29 = vadd.f32 %v2320_v25, %v2319_v16  ;;  %v2268_v31 = vadd.f32 %v2267_v24, %v2266_v12 }
 0x2a9   : > { %v2167_v26 = vsel %vm2138_vm12, %v3093_v61, 0.0  ;;  %v3095_v13 = vadd.f32 %v3078_v62, %v3006_v23  ;;  %v1576_v51 = vpop.f32.mrb[11].mxu1 }
 0x2aa   : > { %v2786_v22 = vpack.c.bf16 %v2167_v26, %v2167_v26  ;;  %v3081_v33 = vpop.f32.mrb[12].mxu0  ;;  %v2165_v36 = vsel %vm2137_vm13, %v3094_v21, 0.0  ;;  %v3096_v41 = vadd.f32 %v2081_v49, %v1576_v51  ;;  %v2323_v54 = vadd.f32 %v2322_v52, %v2321_v29 }
 0x2ab   : > { %v2168_v37 = vsel %vm2138_vm12, %v3095_v13, 0.0  ;;  %v2094_v44 = vpop.f32.mrb[13].mxu0  ;;  %v2784_v46 = vpack.c.bf16 %v2165_v36, %v2165_v36  ;;  %v2269_v47 = vsel %vm942_vm3, %v2165_v36, 0.0  ;;  %v2301_v10 = vmul.f32 %v2165_v36, %v2165_v36 }
 0x2ac   : > { %2248 = vst.msk [vmem:[%s4814_s23 + $0x28] sm:$0xf] %vm2237_vm2, %v2786_v22  ;;  %v3082_v58 = vpop.f32.mrb[14].mxu0  ;;  %v2270_v53 = vadd.f32 %v2269_v47, %v2268_v31  ;;  %v2787_v55 = vpack.c.bf16 %v2168_v37, %v2168_v37  ;;  %v2303_v57 = vmul.f32 %v2167_v26, %v2167_v26  ;;  %v2166_v59 = vsel %vm2137_vm13, %v3096_v41, 0.0 }
 0x2ad   : > { %v2097_v56 = vpop.f32.mrb[15].mxu0  ;;  %2246 = vst.msk [vmem:[%s4814_s23 + $0x20] sm:$0xf] %vm2237_vm2, %v2784_v46  ;;  %v2324_v32 = vsel %vm942_vm3, %v2301_v10, 0.0  ;;  %v2785_v5 = vpack.c.bf16 %v2166_v59, %v2166_v59  ;;  %v2271_v2 = vsel %vm942_vm3, %v2166_v59, 0.0  ;;  %v2302_v3 = vmul.f32 %v2166_v59, %v2166_v59 }
 0x2ae   : > { %v3009_v4 = vpop.f32.mrb[12].mxu1  ;;  %v2325_v63 = vadd.f32 %v2324_v32, %v2323_v54  ;;  %2249 = vst.msk [vmem:[%s4814_s23 + $0x2c] sm:$0xf] %vm2237_vm2, %v2787_v55  ;;  %v2272_v60 = vadd.f32 %v2271_v2, %v2270_v53  ;;  %v2273_v8 = vsel %vm942_vm3, %v2167_v26, 0.0  ;;  %v2304_v43 = vmul.f32 %v2168_v37, %v2168_v37 }
 0x2af   : > { %v1589_v20 = vpop.f32.mrb[13].mxu1  ;;  %v3097_v6 = vadd.f32 %v3081_v33, %v3009_v4  ;;  %2247 = vst.msk [vmem:[%s4814_s23 + $0x24] sm:$0xf] %vm2237_vm2, %v2785_v5  ;;  %v2326_v35 = vsel %vm942_vm3, %v2302_v3, 0.0  ;;  %v2328_v48 = vsel %vm942_vm3, %v2303_v57, 0.0  ;;  %v2275_v62 = vsel %vm942_vm3, %v2168_v37, 0.0 }
 0x2b0   : > { %v3098_v11 = vadd.f32 %v2094_v44, %v1589_v20  ;;  %v3010_v45 = vpop.f32.mrb[14].mxu1  ;;  %v2274_v30 = vadd.f32 %v2273_v8, %v2272_v60  ;;  %v2327_v39 = vadd.f32 %v2326_v35, %v2325_v63  ;;  %v2330_v18 = vsel %vm942_vm3, %v2304_v43, 0.0 }
 0x2b1   : > { %v3099_v17 = vadd.f32 %v3082_v58, %v3010_v45  ;;  %v1592_v9 = vpop.f32.mrb[15].mxu1  ;;  %v2171_v14 = vsel %vm2140_vm14, %v3097_v6, 0.0 }
 0x2b2   : > { %v2169_v40 = vsel %vm2139_vm1, %v3098_v11, 0.0  ;;  %v2790_v7 = vpack.c.bf16 %v2171_v14, %v2171_v14  ;;  %v2329_v38 = vadd.f32 %v2328_v48, %v2327_v39  ;;  %v2276_v15 = vadd.f32 %v2275_v62, %v2274_v30 }
 0x2b3   : > { %v2788_v27 = vpack.c.bf16 %v2169_v40, %v2169_v40  ;;  %v2277_v49 = vsel %vm942_vm3, %v2169_v40, 0.0  ;;  %v2305_v50 = vmul.f32 %v2169_v40, %v2169_v40  ;;  %v2172_v0 = vsel %vm2140_vm14, %v3099_v17, 0.0 }
 0x2b4   : > { %2252 = vst.msk [vmem:[%s4814_s23 + $0x38] sm:$0xf] %vm2237_vm2, %v2790_v7  ;;  %v3100_v19 = vadd.f32 %v2097_v56, %v1592_v9  ;;  %v2278_v61 = vadd.f32 %v2277_v49, %v2276_v15  ;;  %v2331_v42 = vadd.f32 %v2330_v18, %v2329_v38  ;;  %v2791_v12 = vpack.c.bf16 %v2172_v0, %v2172_v0 }
 0x2b5   : > { %2250 = vst.msk [vmem:[%s4814_s23 + $0x30] sm:$0xf] %vm2237_vm2, %v2788_v27  ;;  %v2332_v1 = vsel %vm942_vm3, %v2305_v50, 0.0  ;;  %v2307_v16 = vmul.f32 %v2171_v14, %v2171_v14  ;;  %v2281_v28 = vsel %vm942_vm3, %v2171_v14, 0.0  ;;  %v2308_v24 = vmul.f32 %v2172_v0, %v2172_v0 }
 0x2b6   : > { %v2170_v21 = vsel %vm2139_vm1, %v3100_v19, 0.0  ;;  %v2333_v23 = vadd.f32 %v2332_v1, %v2331_v42  ;;  %2253 = vst.msk [vmem:[%s4814_s23 + $0x3c] sm:$0xf] %vm2237_vm2, %v2791_v12 }
 0x2b7   : > { %v2789_v25 = vpack.c.bf16 %v2170_v21, %v2170_v21  ;;  %v2279_v26 = vsel %vm942_vm3, %v2170_v21, 0.0  ;;  %v2306_v13 = vmul.f32 %v2170_v21, %v2170_v21 }
 0x2b8   : > { %v2280_v51 = vadd.f32 %v2279_v26, %v2278_v61 }
 0x2b9   : > { %2251 = vst.msk [vmem:[%s4814_s23 + $0x34] sm:$0xf] %vm2237_vm2, %v2789_v25  ;;  %v2334_v29 = vsel %vm942_vm3, %v2306_v13, 0.0 }
 0x2ba   : > { %v2282_v22 = vadd.f32 %v2281_v28, %v2280_v51  ;;  %v2335_v33 = vadd.f32 %v2334_v29, %v2333_v23 }
 0x2bb   : > { %3593 = shalt.err (!%p3590_p2)
}
 0x2bc   : > { %s3594_s23 = scalar_lea.hbm %s4905_s12, 1024  ;;  %s3598_s11 = scalar_lea.hbm %s5184_s25, 4096 }
 0x2bd   : > { %p3595_p4 = scmp.ne.s32.totalorder %s4905_s12, %s3594_s23  ;;  %p3599_p9 = scmp.lt.u32.totalorder %s4905_s12, %s5184_s25 }
 0x2be   : > { %p3600_p0 = scmp.lt.u32.totalorder %s3598_s11, %s3594_s23  ;;  %p3602_p11 = scmp.lt.u32.totalorder %s3594_s23, %s4905_s12 }
 0x2bf   : > { %p3596_p12 = pnand %p3595_p4, %p5185_p6 }
 0x2c0   : > { %p3601_p13 = por %p3600_p0, %p3599_p9 }
 0x2c1   : > { %p3597_p3 = pneg %p3596_p12 }
 0x2c2   : > { %p3603_p5 = por %p3602_p11, %p3601_p13 }
 0x2c4   : > { %p3604_p1 = pnand %p3603_p5, %p3597_p3 }
 0x2c6   : > { %3607 = shalt.err (!%p3604_p1)
}
 0x2c7   : > { %s3815_s19 = smov 64   ;;  %s3816_s28 = smov 4   ;;  %v2336_v34 = vsel %vm942_vm3, %v2307_v16, 0.0  ;;  %v2283_v36 = vsel %vm942_vm3, %v2172_v0, 0.0  ;;  %v2338_v41 = vsel %vm942_vm3, %v2308_v24, 0.0  ;;  %vm2291_vm3 = vcmask 24576  }
 0x2c8   : > { %3241 = dma.vmem_to_hbm [thread:$0]  (%p5185_p6), %s4907_s20, 1024, %s4905_s12, %s2348_s1, %s3815_s19, %s3815_s19, %s3816_s28   ;;  %v2284_v31 = vadd.f32 %v2283_v36, %v2282_v22  ;;  %v2337_v37 = vadd.f32 %v2336_v34, %v2335_v33 }
 0x2c9   : > { %s2763_s7 = sshll.u32 %s5182_s29, 1  ;;  %s505_s12 = scalar_lea.vmem [#allocation14], %s4283_s27 }
 0x2ca   : > { %v2285_v44 = vrot.slane %v2284_v31, 4  ;;  %v2339_v52 = vadd.f32 %v2338_v41, %v2337_v37  ;;  %s2386_s23 = sadd.s32 %s5171_s2, %s2763_s7  ;;  %s2390_s1 = sshll.u32 %s505_s12, 4  ;;  %s4954_s1 = int_to_ptr.vmem [resolvable:$true] %s2390_s1 }
 0x2cb   : > { %s2764_s20 = sshll.u32 %s2386_s23, 4  ;;  %s5106_s0 = scalar_lea.vmem [#allocation16], %s4283_s27 }
 0x2cc   : > { %v2286_v46 = vadd.f32 %v2285_v44, %v2284_v31  ;;  %v2340_v47 = vrot.slane %v2339_v52, 4  ;;  %s2405_s3 = sshll.u32 %s5106_s0, 4  ;;  %s5186_s17 = sld [smem:[#allocation41_spill]]  ;;  %s4962_s3 = int_to_ptr.vmem [resolvable:$true] %s2405_s3 }
 0x2cd   : > { %s5188_s7 = sld [smem:[#allocation42_spill]]  ;;  %s4966_s0 = scalar_lea.sflag [#allocation15], %s439_s22 }
 0x2ce   : > { %v2287_v10 = vrot.slane %v2286_v46, 2  ;;  %v2341_v58 = vadd.f32 %v2340_v47, %v2339_v52  ;;  %s3608_s29 = scalar_lea.vmem %s4954_s1, 16  ;;  %s3817_s11 = smov [#allocation14]  }
 0x2cf   : > { %p3609_p8 = scmp.ne.s32.totalorder %s4954_s1, %s3608_s29 }
 0x2d0   : > { %v2288_v53 = vadd.f32 %v2287_v10, %v2286_v46  ;;  %v2342_v54 = vrot.slane %v2341_v58, 2 }
 0x2d1   : > { %p3610_p10 = pnand %p3609_p8, %p5185_p6 }
 0x2d2   : > { %v2343_v55 = vadd.f32 %v2342_v54, %v2341_v58  ;;  %v2289_v56 = vrot.slane %v2288_v53, 1  ;;  %s5187_s26 = smov %s5186_s17  ;;  %s4952_s19 = scalar_lea.hbm %s5186_s17, %s2764_s20 }
 0x2d3   : > { %s4960_s23 = scalar_lea.hbm %s5188_s7, %s2764_s20  ;;  %p3611_p7 = pneg %p3610_p10 }
 0x2d4   : > { %v2344_v57 = vrot.slane %v2343_v55, 1  ;;  %v2290_v32 = vadd.f32 %v2289_v56, %v2288_v53  ;;  %s3612_s17 = sshll.u32 %s3817_s11, 4  ;;  %s3613_s17 = int_to_ptr.vmem [resolvable:$false] %s3612_s17 }
 0x2d5   : > { %p3615_p2 = scmp.lt.s32.totalorder %s4954_s1, %s3613_s17 }
 0x2d6   : > { %2292 = vst.msk [vmem:[%s505_s12] sm:$0x1] %vm2291_vm3, %v2290_v32  ;;  %v2345_v59 = vadd.f32 %v2344_v57, %v2343_v55  ;;  %s3614_s12 = scalar_lea.vmem %s3613_s17, 32 }
 0x2d7   : > { %p3616_p4 = scmp.lt.s32.totalorder %s3614_s12, %s3608_s29 }
 0x2d9   : > { %p3617_p12 = por %p3616_p4, %p3615_p2 }
 0x2db   : > { %p3618_p3 = pnand %p3617_p12, %p3611_p7 }
 0x2dd   : > { %3621 = shalt.err (!%p3618_p3)
}
 0x2de   : > { %s3622_s21 = scalar_lea.hbm %s4952_s19, 16  ;;  %s3626_s2 = scalar_lea.hbm %s5187_s26, 64 }
 0x2df   : > { %p3623_p9 = scmp.ne.s32.totalorder %s4952_s19, %s3622_s21  ;;  %p3627_p11 = scmp.lt.u32.totalorder %s4952_s19, %s5187_s26 }
 0x2e0   : > { %p3628_p5 = scmp.lt.u32.totalorder %s3626_s2, %s3622_s21  ;;  %p3630_p8 = scmp.lt.u32.totalorder %s3622_s21, %s4952_s19 }
 0x2e1   : > { %p3624_p0 = pnand %p3623_p9, %p5185_p6 }
 0x2e2   : > { %p3629_p1 = por %p3628_p5, %p3627_p11 }
 0x2e3   : > { %p3625_p13 = pneg %p3624_p0 }
 0x2e4   : > { %p3631_p10 = por %p3630_p8, %p3629_p1 }
 0x2e6   : > { %p3632_p7 = pnand %p3631_p10, %p3625_p13 }
 0x2e8   : > { %3635 = shalt.err (!%p3632_p7)
}
 0x2e9   : > { %3242 = dma.vmem_to_hbm [thread:$0]  (%p5185_p6), %s4954_s1, 16, %s4952_s19, %s4966_s0  }
 0x2ea   : > { %s5189_s29 = scalar_lea.vmem [#allocation16], %s4283_s27  ;;  %s3636_s17 = scalar_lea.vmem %s4962_s3, 16 }
 0x2eb   : > { %2346 = vst.msk [vmem:[%s5189_s29] sm:$0x1] %vm2291_vm3, %v2345_v59  ;;  %p3637_p2 = scmp.ne.s32.totalorder %s4962_s3, %s3636_s17  ;;  %s3818_s12 = smov [#allocation16]  }
 0x2ec   : > { %s3640_s21 = sshll.u32 %s3818_s12, 4  ;;  %s3641_s21 = int_to_ptr.vmem [resolvable:$false] %s3640_s21 }
 0x2ed   : > { %p3638_p4 = pnand %p3637_p2, %p5185_p6  ;;  %s3642_s22 = scalar_lea.vmem %s3641_s21, 32 }
 0x2ee   : > { %p3643_p3 = scmp.lt.s32.totalorder %s4962_s3, %s3641_s21  ;;  %p3644_p9 = scmp.lt.s32.totalorder %s3642_s22, %s3636_s17 }
 0x2ef   : > { %p3639_p12 = pneg %p3638_p4 }
 0x2f0   : > { %p3645_p0 = por %p3644_p9, %p3643_p3 }
 0x2f2   : > { %p3646_p13 = pnand %p3645_p0, %p3639_p12 }
 0x2f4   : > { %3649 = shalt.err (!%p3646_p13)
}
 0x2f5   : > { %s3650_s27 = scalar_lea.hbm %s4960_s23, 16  ;;  %s3654_s20 = scalar_lea.hbm %s5188_s7, 64 }
 0x2f6   : > { %p3651_p11 = scmp.ne.s32.totalorder %s4960_s23, %s3650_s27  ;;  %p3655_p8 = scmp.lt.u32.totalorder %s4960_s23, %s5188_s7 }
 0x2f7   : > { %p3656_p10 = scmp.lt.u32.totalorder %s3654_s20, %s3650_s27  ;;  %p3658_p2 = scmp.lt.u32.totalorder %s3650_s27, %s4960_s23 }
 0x2f8   : > { %p3652_p5 = pnand %p3651_p11, %p5185_p6 }
 0x2f9   : > { %p3657_p7 = por %p3656_p10, %p3655_p8 }
 0x2fa   : > { %p3653_p1 = pneg %p3652_p5 }
 0x2fb   : > { %p3659_p4 = por %p3658_p2, %p3657_p7 }
 0x2fd   : > { %p3660_p12 = pnand %p3659_p4, %p3653_p1 }
 0x2ff   : > { %3663 = shalt.err (!%p3660_p12)
}
 0x300   : > { %3243 = dma.vmem_to_hbm [thread:$0]  (%p5185_p6), %s4962_s3, 16, %s4960_s23, %s4966_s0  }
 0x301 PF: > { %p3284_p3 = scmp.ge.s32.totalorder %s3802_s18, 2  ;;  %s2417_s11 = sand.u32 1, %s3762_s30  }
 0x302   : > { %p5190_p9 = scmp.ne.s32.totalorder %s5144_s15, 0  ;;  %s2418_s29 = scalar_lea.sflag [#allocation4], %s2417_s11 }
 0x304   : > { %p3268_p0 = pnand %p3284_p3, %p5190_p9 }
 0x306   : > { %3741 = dma.done.wait (!%p3268_p0), %s2418_s29, 1024  }
 0x307   : > { %3743 = vsyncadd (!%p3268_p0), %s2418_s29, 4294966272  ;;  %s5191_s17 = sadd.s32 4294967294, %s3802_s18  }
 0x308   : > { %s2426_s12 = sand.u32 1, %s5191_s17  }
 0x309   : > { %s2427_s21 = scalar_lea.sflag [#allocation15], %s2426_s12 }
 0x30a   : > { %3745 = dma.done.wait (!%p3268_p0), %s2427_s21, 32  }
 0x30b   : > { %3747 = vsyncadd (!%p3268_p0), %s2427_s21, 4294967264  ;;  %s33_s18 = sadd.s32 1, %s3802_s18   ;;  %s5193_s27 = sld [smem:[#allocation25_spill]] }
 0x30c   : > { %p5022_p6 = scmp.ge.s32.totalorder %s33_s18, 6   ;;  %s5194_s28 = sld [smem:[#allocation26_spill]] }
 0x30d   : > { %s5195_s11 = sld [smem:[#allocation27_spill]]  ;;  %s5196_s15 = sld [smem:[#allocation34_spill]] }
 0x30e   : > { %s5197_s0 = sld [smem:[#allocation30_spill]]  ;;  %s5198_s17 = sld [smem:[#allocation32_spill]] }
 0x30f   : > { %s5200_s29 = smov %s5224_s24  ;;  %s5201_s30 = smov %s3766_s9 }
 0x310   : > { %s5202_s9 = smov %s3770_s10  ;;  %s5203_s10 = smov %s4123_s8 }
 0x311   : > { %s5204_s12 = smov %s3782_s13  ;;  %s5206_s14 = smov %s3794_s16 }
 0x312   : > { %s5208_s16 = smov %s5210_s6  ;;  %32 = sbr.rel (!%p5022_p6) target bundleno = 25 (0x19), region = 166 }
 0x313   : > { %s5205_s13 = smov %s5196_s15 }
 0x314   : > { %s5207_s15 = smov %s5197_s0 }
 0x319   :  { %2439 = vsyncpa [#allocation3], 1 }
 0x31a   :  { %2441 = vsyncpa [#allocation3 + $0x1], 1 }
 0x31b   :  { %2442 = vsyncpa [#allocation6], 1 }
 0x31c   :  { %2443 = vsyncpa [#allocation9], 1 }
 0x31d   :  { %2445 = vsyncpa [#allocation9 + $0x1], 1 }
 0x31e   :  { %2446 = vsyncpa [#allocation12], 1 }
 0x31f   :  { %2448 = vsyncpa [#allocation12 + $0x1], 1 }
 0x320   :  { %2449 = vsyncpa [#allocation4], 1 }
 0x321   :  { %2451 = vsyncpa [#allocation4 + $0x1], 1 }
 0x322   :  { %2452 = vsyncpa [#allocation15], 1 }
 0x323   :  { %2454 = vsyncpa [#allocation15 + $0x1], 1 }

</bundles_post_ra>
